<compile_context>
chip_gen: v7x
topology: tpu7x:2x2x1
jax: 0.10.0
libtpu: 0.0.40
codegen_flags: <defaults>
</compile_context>

<pallas_src>
import functools

import jax
import jax.numpy as jnp
from jax.experimental import pallas as pl
from jax.experimental.pallas import tpu as pltpu


def _round_up(x, m):
    return (x + m - 1) // m * m


def _vmem_capacity_bytes():
    """Physical VMEM per TensorCore (generation-aware), with a conservative fallback."""
    try:
        info = pltpu.get_tpu_info()
        cap = int(getattr(info, "vmem_capacity_bytes", 0))
        if cap > 0:
            return cap
    except Exception:
        pass
    return 64 * 2**20  # v7x per-TC VMEM (smallest of the supported generations)


# ---------------------------------------------------------------------------
# Kernels
# ---------------------------------------------------------------------------
def _maxout_kernel(x_ref, w_ref, b_ref, o_ref, *, k, tn):
    """Fused path (no in_dim tiling): one wide MXU matmul + pure-VPU k-way max."""
    x = x_ref[...]
    if x.dtype != w_ref.dtype:          # skip the cast when x already matches (e.g. bf16 x)
        x = x.astype(w_ref.dtype)
    y = jnp.dot(x, w_ref[...], preferred_element_type=jnp.float32)  # (tb, k*tn) on the MXU
    y = y + b_ref[...]                   # single f32 bias add (broadcast over rows)
    m = y[:, 0:tn]
    for j in range(1, k):                # k static & small -> unrolled, lane-aligned slices
        m = jnp.maximum(m, y[:, j * tn:(j + 1) * tn])
    o_ref[...] = m.astype(o_ref.dtype)


def _maxout_kernel_ktiled(x_ref, w_ref, b_ref, o_ref, acc_ref, *, k, tn, k_axis):
    """in_dim-tiled path: accumulate partial matmuls, finalize on the last K step."""
    kk = pl.program_id(k_axis)

    @pl.when(kk == 0)
    def _():
        acc_ref[...] = jnp.zeros_like(acc_ref)

    x = x_ref[...]
    if x.dtype != w_ref.dtype:
        x = x.astype(w_ref.dtype)
    acc_ref[...] += jnp.dot(x, w_ref[...], preferred_element_type=jnp.float32)

    @pl.when(kk == pl.num_programs(k_axis) - 1)
    def _():
        y = acc_ref[...] + b_ref[...]
        m = y[:, 0:tn]
        for j in range(1, k):
            m = jnp.maximum(m, y[:, j * tn:(j + 1) * tn])
        o_ref[...] = m.astype(o_ref.dtype)


# ---------------------------------------------------------------------------
# Parameter preparation (call ONCE at parameter-load time, not per forward)
# ---------------------------------------------------------------------------
def pick_tn(out_dim, k):
    """Lane-aligned output tile width tn and 128-padded out_dim.

    Prefers tn such that the matmul N dimension (k*tn) is a multiple of 256
    (v6e/v7x MXUs are 2x256^2); 128-multiples are already optimal on v5e.
    """
    out_dim_p = _round_up(out_dim, 128)
    for cand in (512, 256, 128):
        if out_dim_p % cand == 0 and (k * cand) % 256 == 0:
            return cand, out_dim_p
    for cand in (512, 256, 128):
        if out_dim_p % cand == 0:
            return cand, out_dim_p
    return out_dim_p, out_dim_p  # unreachable in practice (out_dim_p is a multiple of 128)


def prepare_maxout_params(weight, bias, *, out_dim, k, param_dtype=jnp.bfloat16):
    """Rearrange nn.Linear(in_dim, k*out_dim) params for the fused kernel.

    weight: (k*out_dim, in_dim), bias: (k*out_dim,).  Linear output column
    c = i*k + j (i: output index, j: piece).  Columns are regrouped as
    [out-tile n][piece j][within-tile t] so each output tile sees a contiguous
    (in_dim, k*tn) RHS block and the k pieces occupy contiguous 128-aligned
    column slices of the matmul result.  out_dim is padded to a multiple of 128
    (zero weight/bias columns) so output stores are lane-dense; the wrapper
    slices the pad off.
    """
    in_dim = weight.shape[1]
    tn, out_dim_p = pick_tn(out_dim, k)
    nb = out_dim_p // tn

    w = weight.T.reshape(in_dim, out_dim, k)            # [in, i, j]
    b = bias.reshape(out_dim, k)                        # [i, j]
    if out_dim_p != out_dim:
        pad = out_dim_p - out_dim
        w = jnp.pad(w, ((0, 0), (0, pad), (0, 0)))
        b = jnp.pad(b, ((0, pad), (0, 0)))
    w = w.reshape(in_dim, nb, tn, k).transpose(0, 1, 3, 2).reshape(in_dim, nb * k * tn)
    b = b.reshape(nb, tn, k).transpose(0, 2, 1).reshape(1, nb * k * tn)

    return {
        "w": w.astype(param_dtype),
        "b": b.astype(jnp.float32),
        "k": k,
        "tn": tn,
        "out_dim": out_dim,
        "out_dim_padded": out_dim_p,
        "in_dim": in_dim,
    }


# ---------------------------------------------------------------------------
# Forward wrapper
# ---------------------------------------------------------------------------
def maxout(x, params, *, tb=None):
    """x: (batch, in_dim) f32 or bf16; params from prepare_maxout_params().

    Matches: (x @ weight.T + bias).reshape(batch, out_dim, k).max(-1)
    """
    batch, in_dim = x.shape
    w_fused, b_fused = params["w"], params["b"]
    k, tn = params["k"], params["tn"]
    out_dim, out_dim_p = params["out_dim"], params["out_dim_padded"]
    assert in_dim == params["in_dim"], "x feature dim must match prepared params"
    nb = out_dim_p // tn

    x_item = jnp.dtype(x.dtype).itemsize
    w_item = jnp.dtype(w_fused.dtype).itemsize
    o_item = x_item

    vmem_phys = _vmem_capacity_bytes()
    vmem_cap = int(0.8 * vmem_phys)          # never request more than ~80% of physical VMEM

    # --- tile selection (generation-aware) ----------------------------------
    if tb is None:
        # 128-MiB-VMEM chips (v5e/v6e) take the larger batch tile; v7x keeps 256.
        tb = 512 if vmem_phys >= 96 * 2**20 else 256

    def footprint(tb_, tk_, w_bufs):
        cast = tb_ * tk_ * w_item if x.dtype != w_fused.dtype else 0
        return (2 * tb_ * tk_ * x_item + cast      # x tiles (double-buffered) + bf16 copy
                + w_bufs * tk_ * k * tn * w_item   # weight tiles
                + 2 * k * tn * 4                   # bias tiles
                + 2 * tb_ * tn * o_item            # output tiles
                + 2 * tb_ * k * tn * 4)            # f32 matmul result + accumulator

    # K (in_dim) tiling only when the un-tiled footprint would blow the VMEM cap,
    # so the common case keeps a resident (single-buffered) weight block.
    tk, n_k = in_dim, 1
    if footprint(tb, in_dim, 1) > vmem_cap:
        for cand in (2048, 1024, 512, 256):        # 256-multiples: full MXU passes on v6e/v7x
            if in_dim % cand == 0:
                tk, n_k = cand, in_dim // cand
                break
    while tb > 128 and footprint(tb, tk, 1 if n_k == 1 else 2) > vmem_cap:
        tb //= 2                                   # shrink tiles rather than raise the limit

    n_i = pl.cdiv(batch, tb)                       # ragged batch -> partial last block

    # --- grid order: minimize redundant HBM re-fetch ------------------------
    # n-outer keeps the weight block resident but re-reads x nb times;
    # i-outer keeps the x block resident but re-reads the weight n_i times.
    x_bytes = batch * in_dim * x_item
    w_bytes = in_dim * k * out_dim_p * w_item
    if nb == 1:
        axes = ("i",)                              # flattened grid: clean megacore split
    elif nb * x_bytes + w_bytes <= x_bytes + n_i * w_bytes:
        axes = ("n", "i")
    else:
        axes = ("i", "n")
    if n_k > 1:
        axes = axes + ("kk",)                      # reduction axis last

    def _mk_map(expr):
        def index_map(*idx):
            d = dict(zip(axes, idx))
            d.setdefault("n", 0)
            d.setdefault("kk", 0)
            return expr(d)
        return index_map

    x_map = _mk_map(lambda d: (d["i"], d["kk"]))
    w_map = _mk_map(lambda d: (d["kk"], d["n"]))
    b_map = _mk_map(lambda d: (0, d["n"]))
    o_map = _mk_map(lambda d: (d["i"], d["n"]))

    grid_sizes = {"i": n_i, "n": nb, "kk": n_k}
    grid = tuple(grid_sizes[a] for a in axes)
    sem = tuple("arbitrary" if a == "kk" else "parallel" for a in axes)

    # Weight/bias block index constant across every inner axis -> single-buffer them.
    single_buffer_wb = (n_k == 1) and (nb == 1 or axes[0] == "n")

    if n_k == 1:
        kernel = functools.partial(_maxout_kernel, k=k, tn=tn)
        scratch = []
    else:
        kernel = functools.partial(_maxout_kernel_ktiled, k=k, tn=tn,
                                   k_axis=axes.index("kk"))
        scratch = [pltpu.VMEM((tb, k * tn), jnp.float32)]

    vmem_limit = int(min(vmem_cap, max(32 * 2**20, 2 * footprint(tb, tk, 2))))

    cost = pl.CostEstimate(
        flops=2 * batch * in_dim * k * out_dim_p,
        transcendentals=0,
        bytes_accessed=x_bytes + w_bytes + k * out_dim_p * 4 + batch * out_dim_p * o_item,
    )

    def _wb_spec(shape, index_map, single_buffer):
        if single_buffer:
            return pl.BlockSpec(shape, index_map, pipeline_mode=pl.Buffered(1))
        return pl.BlockSpec(shape, index_map)

    def _call(single_buffer):
        return pl.pallas_call(
            kernel,
            out_shape=jax.ShapeDtypeStruct((batch, out_dim_p), x.dtype),
            grid_spec=pltpu.PrefetchScalarGridSpec(
                num_scalar_prefetch=0,
                grid=grid,
                in_specs=[
                    pl.BlockSpec((tb, tk), x_map),                    # x
                    _wb_spec((tk, k * tn), w_map, single_buffer),     # fused weight
                    _wb_spec((1, k * tn), b_map, single_buffer),      # fused bias
                ],
                out_specs=pl.BlockSpec((tb, tn), o_map),
                scratch_shapes=scratch,
            ),
            compiler_params=pltpu.CompilerParams(
                dimension_semantics=sem,
                vmem_limit_bytes=vmem_limit,
            ),
            cost_estimate=cost,
        )(x, w_fused, b_fused)

    if single_buffer_wb:
        try:
            out = _call(True)
        except Exception:
            # pipeline_mode / pl.Buffered(1) not supported by this JAX build:
            # fall back to default (double) buffering — correctness unaffected.
            out = _call(False)
    else:
        out = _call(False)

    if out_dim_p != out_dim:
        out = out[:, :out_dim]
    return out


# ---------------------------------------------------------------------------
# Demo / correctness check
# ---------------------------------------------------------------------------
if __name__ == "__main__":
    # Small shapes consistent with the module; batch=384 deliberately not a
    # multiple of the batch tile to exercise the partial-block (ragged) path.
    batch, in_dim, out_dim, k = 384, 256, 256, 4

    key = jax.random.PRNGKey(0)
    kx, kw, kb = jax.random.split(key, 3)

    x = jax.random.normal(kx, (batch, in_dim), dtype=jnp.float32)
    # nn.Linear(in_dim, k*out_dim): weight (k*out_dim, in_dim), bias (k*out_dim,)
    weight = jax.random.normal(kw, (k * out_dim, in_dim), dtype=jnp.float32) * 0.1
    bias = jax.random.normal(kb, (k * out_dim,), dtype=jnp.float32) * 0.1

    # One-time parameter rearrangement (hoisted out of the forward path).
    params = prepare_maxout_params(weight, bias, out_dim=out_dim, k=k)

    out = maxout(x, params)
    out = jax.block_until_ready(out)

    # Reference (plain JAX, mirrors the PyTorch forward exactly, full f32).
    ref = (x @ weight.T + bias).reshape(batch, out_dim, k).max(axis=2)

    assert out.shape == (batch, out_dim)
    # bf16 weights (documented precision choice) -> loosened tolerance.
    assert jnp.allclose(out, ref, atol=5e-2, rtol=5e-2), (
        float(jnp.max(jnp.abs(out - ref))))

    print("KERNEL_OK")
</pallas_src>

<mosaic_0001>
module attributes {stable_mosaic.version = 11 : i64} {
  func.func @_maxout_kernel(%arg0: i32, %arg1: memref<256x256xf32, #tpu.memory_space<vmem>>, %arg2: memref<256x1024xbf16, #tpu.memory_space<vmem>>, %arg3: memref<1x1024xf32, #tpu.memory_space<vmem>>, %arg4: memref<256x256xf32, #tpu.memory_space<vmem>>) attributes {dimension_semantics = [#tpu.dimension_semantics<parallel>], iteration_bounds = array<i64: 2>, scalar_prefetch = 0 : i64, scratch_operands = 0 : i64, tpu.core_type = #tpu.core_type<tc>, window_params = [{transform_indices = @transform_0, window_bounds = array<i64: 256, 256>}, {pipeline_mode = #tpu.pipeline_mode<synchronous>, transform_indices = @transform_1, window_bounds = array<i64: 256, 1024>}, {pipeline_mode = #tpu.pipeline_mode<synchronous>, transform_indices = @transform_2, window_bounds = array<i64: 1, 1024>}, {transform_indices = @transform_3, window_bounds = array<i64: 256, 256>}]} {
    %c0 = arith.constant 0 : index
    %c0_0 = arith.constant 0 : index
    %0 = vector.load %arg1[%c0, %c0_0] : memref<256x256xf32, #tpu.memory_space<vmem>>, vector<256x256xf32>
    %1 = arith.truncf %0 : vector<256x256xf32> to vector<256x256xbf16>
    %c0_1 = arith.constant 0 : index
    %c0_2 = arith.constant 0 : index
    %2 = vector.load %arg2[%c0_1, %c0_2] : memref<256x1024xbf16, #tpu.memory_space<vmem>>, vector<256x1024xbf16>
    %cst = arith.constant dense<0.000000e+00> : vector<256x1024xf32>
    %3 = tpu.matmul %1, %2, %cst {dimension_numbers = #tpu.dot_dimension_numbers<[1], [0], [0], [1], [0, 0, 1, 1], [], []>} : vector<256x256xbf16>, vector<256x1024xbf16>, vector<256x1024xf32> -> vector<256x1024xf32>
    %c0_3 = arith.constant 0 : index
    %c0_4 = arith.constant 0 : index
    %4 = vector.load %arg3[%c0_3, %c0_4] : memref<1x1024xf32, #tpu.memory_space<vmem>>, vector<1x1024xf32>
    %5 = vector.broadcast %4 : vector<1x1024xf32> to vector<256x1024xf32>
    %6 = arith.addf %3, %5 : vector<256x1024xf32>
    %7 = vector.extract_strided_slice %6 {offsets = [0, 0], sizes = [256, 256], strides = [1, 1]} : vector<256x1024xf32> to vector<256x256xf32>
    %8 = vector.extract_strided_slice %6 {offsets = [0, 256], sizes = [256, 256], strides = [1, 1]} : vector<256x1024xf32> to vector<256x256xf32>
    %9 = arith.maximumf %7, %8 : vector<256x256xf32>
    %10 = vector.extract_strided_slice %6 {offsets = [0, 512], sizes = [256, 256], strides = [1, 1]} : vector<256x1024xf32> to vector<256x256xf32>
    %11 = arith.maximumf %9, %10 : vector<256x256xf32>
    %12 = vector.extract_strided_slice %6 {offsets = [0, 768], sizes = [256, 256], strides = [1, 1]} : vector<256x1024xf32> to vector<256x256xf32>
    %13 = arith.maximumf %11, %12 : vector<256x256xf32>
    %c0_5 = arith.constant 0 : index
    %c0_6 = arith.constant 0 : index
    %14 = vector.load %arg4[%c0_5, %c0_6] : memref<256x256xf32, #tpu.memory_space<vmem>>, vector<256x256xf32>
    tpu.vector_store %arg4[%c0_5, %c0_6], %13 {strides = array<i32>} : memref<256x256xf32, #tpu.memory_space<vmem>>, vector<256x256xf32>,
    return
  }
  func.func @transform_0(%arg0: i32) -> (i32, i32) {
    %c0_i32 = arith.constant 0 : i32
    %c0_i32_0 = arith.constant 0 : i32
    return %arg0, %c0_i32 : i32, i32
  }
  func.func @transform_1(%arg0: i32) -> (i32, i32) {
    %c0_i32 = arith.constant 0 : i32
    %c0_i32_0 = arith.constant 0 : i32
    %c0_i32_1 = arith.constant 0 : i32
    return %c0_i32, %c0_i32_0 : i32, i32
  }
  func.func @transform_2(%arg0: i32) -> (i32, i32) {
    %c0_i32 = arith.constant 0 : i32
    %c0_i32_0 = arith.constant 0 : i32
    %c0_i32_1 = arith.constant 0 : i32
    return %c0_i32, %c0_i32_0 : i32, i32
  }
  func.func @transform_3(%arg0: i32) -> (i32, i32) {
    %c0_i32 = arith.constant 0 : i32
    %c0_i32_0 = arith.constant 0 : i32
    return %arg0, %c0_i32 : i32, i32
  }
}

module attributes {stable_mosaic.version = 11 : i64} {
  func.func @_maxout_kernel(%arg0: i32, %arg1: memref<256x256xf32, #tpu.memory_space<vmem>>, %arg2: memref<256x1024xbf16, #tpu.memory_space<vmem>>, %arg3: memref<1x1024xf32, #tpu.memory_space<vmem>>, %arg4: memref<256x256xf32, #tpu.memory_space<vmem>>) attributes {dimension_semantics = [#tpu.dimension_semantics<parallel>], iteration_bounds = array<i64: 2>, scalar_prefetch = 0 : i64, scratch_operands = 0 : i64, tpu.core_type = #tpu.core_type<tc>, window_params = [{transform_indices = @transform_0, window_bounds = array<i64: 256, 256>}, {pipeline_mode = #tpu.pipeline_mode<synchronous>, transform_indices = @transform_1, window_bounds = array<i64: 256, 1024>}, {pipeline_mode = #tpu.pipeline_mode<synchronous>, transform_indices = @transform_2, window_bounds = array<i64: 1, 1024>}, {transform_indices = @transform_3, window_bounds = array<i64: 256, 256>}]} {
    %c0 = arith.constant 0 : index
    %c0_0 = arith.constant 0 : index
    %0 = vector.load %arg1[%c0, %c0_0] : memref<256x256xf32, #tpu.memory_space<vmem>>, vector<256x256xf32>
    %1 = arith.truncf %0 : vector<256x256xf32> to vector<256x256xbf16>
    %c0_1 = arith.constant 0 : index
    %c0_2 = arith.constant 0 : index
    %2 = vector.load %arg2[%c0_1, %c0_2] : memref<256x1024xbf16, #tpu.memory_space<vmem>>, vector<256x1024xbf16>
    %cst = arith.constant dense<0.000000e+00> : vector<256x1024xf32>
    %3 = tpu.matmul %1, %2, %cst {dimension_numbers = #tpu.dot_dimension_numbers<[1], [0], [0], [1], [0, 0, 1, 1], [], []>} : vector<256x256xbf16>, vector<256x1024xbf16>, vector<256x1024xf32> -> vector<256x1024xf32>
    %c0_3 = arith.constant 0 : index
    %c0_4 = arith.constant 0 : index
    %4 = vector.load %arg3[%c0_3, %c0_4] : memref<1x1024xf32, #tpu.memory_space<vmem>>, vector<1x1024xf32>
    %5 = vector.broadcast %4 : vector<1x1024xf32> to vector<256x1024xf32>
    %6 = arith.addf %3, %5 : vector<256x1024xf32>
    %7 = vector.extract_strided_slice %6 {offsets = [0, 0], sizes = [256, 256], strides = [1, 1]} : vector<256x1024xf32> to vector<256x256xf32>
    %8 = vector.extract_strided_slice %6 {offsets = [0, 256], sizes = [256, 256], strides = [1, 1]} : vector<256x1024xf32> to vector<256x256xf32>
    %9 = arith.maximumf %7, %8 : vector<256x256xf32>
    %10 = vector.extract_strided_slice %6 {offsets = [0, 512], sizes = [256, 256], strides = [1, 1]} : vector<256x1024xf32> to vector<256x256xf32>
    %11 = arith.maximumf %9, %10 : vector<256x256xf32>
    %12 = vector.extract_strided_slice %6 {offsets = [0, 768], sizes = [256, 256], strides = [1, 1]} : vector<256x1024xf32> to vector<256x256xf32>
    %13 = arith.maximumf %11, %12 : vector<256x256xf32>
    %c0_5 = arith.constant 0 : index
    %c0_6 = arith.constant 0 : index
    %14 = vector.load %arg4[%c0_5, %c0_6] : memref<256x256xf32, #tpu.memory_space<vmem>>, vector<256x256xf32>
    tpu.vector_store %arg4[%c0_5, %c0_6], %13 {strides = array<i32>} : memref<256x256xf32, #tpu.memory_space<vmem>>, vector<256x256xf32>,
    return
  }
  func.func @transform_0(%arg0: i32) -> (i32, i32) {
    %c0_i32 = arith.constant 0 : i32
    %c0_i32_0 = arith.constant 0 : i32
    return %arg0, %c0_i32 : i32, i32
  }
  func.func @transform_1(%arg0: i32) -> (i32, i32) {
    %c0_i32 = arith.constant 0 : i32
    %c0_i32_0 = arith.constant 0 : i32
    %c0_i32_1 = arith.constant 0 : i32
    return %c0_i32, %c0_i32_0 : i32, i32
  }
  func.func @transform_2(%arg0: i32) -> (i32, i32) {
    %c0_i32 = arith.constant 0 : i32
    %c0_i32_0 = arith.constant 0 : i32
    %c0_i32_1 = arith.constant 0 : i32
    return %c0_i32, %c0_i32_0 : i32, i32
  }
  func.func @transform_3(%arg0: i32) -> (i32, i32) {
    %c0_i32 = arith.constant 0 : i32
    %c0_i32_0 = arith.constant 0 : i32
    return %arg0, %c0_i32 : i32, i32
  }
}

</mosaic_0001>

<bundles_post_ra>
// kernel: tpu_custom_call.1
= control target key start
LH: loop header
LB: loop body
LE: loop exit
PB: predicated region body
PF: predicated region fallthrough
CT: control target
= control target key end

     0   :  { %8 = vsyncpa [#allocation3], 0  ;;  %s4142_s0 = inlined_call_operand.hbm [shape: f32[384,256], index: 0, kind: input, shape index: {}]   ;;  %s4143_s1 = inlined_call_operand.hbm [shape: bf16[256,1024], index: 1, kind: input, shape index: {}]   ;;  %s4144_s2 = inlined_call_operand.hbm [shape: f32[1,1024], index: 2, kind: input, shape index: {}]   ;;  %s4145_s3 = inlined_call_operand.hbm [shape: f32[384,256], index: 3, kind: output, shape index: {}]  }
   0x1   :  { %10 = vsyncpa [#allocation3 + $0x1], 0 }
   0x2   :  { %11 = vsyncpa [#allocation6], 0 }
   0x3   :  { %12 = vsyncpa [#allocation4], 0 }
   0x4   :  { %14 = vsyncpa [#allocation4 + $0x1], 0  ;;  %s2700_s12 = smov 0   ;;  %s2702_s13 = smov 0  }
   0x5   :  { %s2704_s14 = smov 0   ;;  %s2706_s15 = smov 0  }
   0x6 LB: > { %s2721_s16 = sadd.s32 4294967295, %s2668_s15   ;;  %s2284_s17 = sadd.s32 4294967294, %s2668_s15   ;;  %s2668_s15 = sphi %s2706_s15, %s4487_s15   ;;  %s2664_s14 = sphi %s2704_s14, %s4486_s14   ;;  %s2660_s13 = sphi %s2702_s13, %s4485_s13   ;;  %s2656_s12 = sphi %s2700_s12, %s4484_s12  }
   0x7   : > { %s2725_s18 = sadd.s32 1, %s2668_s15   ;;  %s27_s19 = sadd.s32 1, %s2664_s14 }
   0x8   : > { %s24_s20 = ssub.s32 %s2668_s15, %s2725_s18  ;;  %p34_p0 = scmp.ne.s32.totalorder %s2664_s14, %s2660_s13 }
   0x9   : > { %p25_p1 = scmp.eq.s32.totalorder %s24_s20, 0  ;;  %p35_p2 = scmp.eq.s32.totalorder %s2668_s15, 0 }
   0xa   : > { %p40_p3 = scmp.ne.s32.totalorder %s2660_s13, %s2656_s12  ;;  %p4146_p4 = scmp.eq.s32.totalorder %s2721_s16, 0 }
   0xb   : > { %s2737_s21 = scalar_select %p25_p1, %s2664_s14, %s27_s19  }
   0xc   : > { %p2739_p5 = por %p35_p2, %p34_p0  ;;  %p2745_p6 = por %p4146_p4, %p40_p3 }
   0xd   : > { %p106_p7 = scmp.eq.s32.totalorder %s2721_s16, 1  ;;  %p112_p8 = scmp.eq.s32.totalorder %s2284_s17, 1 }
   0xe   : > { %s4235_s22 = scalar_select %p2739_p5, 1, 0 }
   0xf   : > { %s4236_s23 = scalar_select %p2745_p6, 1, 0 }
  0x10   : > { %p2285_p9 = scmp.ge.s32.totalorder %s2668_s15, 1  ;;  %p119_p10 = scmp.lt.s32.totalorder %s2668_s15, 3 }
  0x11   : > { %p2752_p11 = por %p106_p7, %p34_p0  ;;  %p2756_p12 = por %p112_p8, %p40_p3 }
  0x12   : > { %p2760_p13 = pnand %p2285_p9, %p119_p10  ;;  %s2670_s27 = smov [#allocation5]  }
  0x13   : > { %s4237_s24 = scalar_select %p2752_p11, 1, 0 }
  0x14   : > { %s4238_s25 = scalar_select %p2756_p12, 1, 0 }
  0x15   : > { %s4239_s26 = scalar_select %p2760_p13, 1, 0 }
  0x16   : > { %p2458_p1 = pneg %p2760_p13  ;;  %s131_s28 = sshll.u32 %s2670_s27, 4  ;;  %s132_s28 = int_to_ptr.vmem [resolvable:$true] %s131_s28 }
  0x17   : > { %s2671_s30 = smov [#allocation7]   ;;  %s2514_s7 = scalar_lea.hbm %s4143_s1, 16384 }
  0x18   : > { %p2768_p2 = pnand %p2458_p1, %p4146_p4  ;;  %s145_s4 = sshll.u32 %s2671_s30, 4  ;;  %s2772_s4 = int_to_ptr.vmem [resolvable:$true] %s145_s4 }
  0x19   : > { %p2515_p0 = scmp.ne.s32.totalorder %s4143_s1, %s2514_s7  ;;  %p2521_p9 = scmp.lt.u32.totalorder %s2514_s7, %s4143_s1 }
  0x1a   : > { %p2516_p3 = pneg %p2768_p2 }
  0x1c   : > { %p2517_p7 = pnand %p2516_p3, %p2515_p0 }
  0x1e   : > { %p2518_p8 = pneg %p2517_p7 }
  0x20   : > { %p2523_p10 = pnand %p2521_p9, %p2518_p8 }
  0x22   : > { %2526 = shalt.err (!%p2523_p10)
}
  0x23   : > { %s2527_s17 = scalar_lea.vmem %s132_s28, 16384  ;;  %p2535_p11 = scmp.lt.s32.totalorder %s132_s28, %s132_s28 }
  0x24   : > { %p2528_p1 = scmp.ne.s32.totalorder %s132_s28, %s2527_s17  ;;  %p2536_p6 = scmp.lt.s32.totalorder %s2527_s17, %s2527_s17 }
  0x26   : > { %p2530_p4 = pnand %p2528_p1, %p2516_p3  ;;  %p2537_p13 = por %p2536_p6, %p2535_p11 }
  0x28   : > { %p2531_p12 = pneg %p2530_p4 }
  0x2a   : > { %p2538_p5 = pnand %p2537_p13, %p2531_p12 }
  0x2c   : > { %2541 = shalt.err (!%p2538_p5)
}
  0x2d   : > { %s2672_s19 = smov 512   ;;  %s2673_s20 = smov 32  }
  0x2e   : > { %2461 = dma.hbm_to_vmem [thread:$0]  (!%p2768_p2), %s4143_s1, 16384, %s132_s28, [#allocation6], %s2672_s19, %s2672_s19, %s2673_s20  }
  0x2f   : > { %s2542_s7 = scalar_lea.hbm %s4144_s2, 128 }
  0x30   : > { %p2543_p4 = scmp.ne.s32.totalorder %s4144_s2, %s2542_s7  ;;  %p2549_p11 = scmp.lt.u32.totalorder %s2542_s7, %s4144_s2 }
  0x32   : > { %p2545_p5 = pnand %p2543_p4, %p2516_p3 }
  0x34   : > { %p2546_p6 = pneg %p2545_p5 }
  0x36   : > { %p2551_p12 = pnand %p2549_p11, %p2546_p6 }
  0x38   : > { %2554 = shalt.err (!%p2551_p12)
}
  0x39   : > { %s2555_s28 = scalar_lea.vmem %s2772_s4, 128  ;;  %p2563_p8 = scmp.lt.s32.totalorder %s2772_s4, %s2772_s4 }
  0x3a   : > { %p2556_p13 = scmp.ne.s32.totalorder %s2772_s4, %s2555_s28  ;;  %p2564_p9 = scmp.lt.s32.totalorder %s2555_s28, %s2555_s28 }
  0x3c   : > { %p2558_p0 = pnand %p2556_p13, %p2516_p3  ;;  %p2565_p10 = por %p2564_p9, %p2563_p8 }
  0x3e   : > { %p2559_p7 = pneg %p2558_p0 }
  0x40   : > { %p2566_p1 = pnand %p2565_p10, %p2559_p7 }
  0x42   : > { %2569 = shalt.err (!%p2566_p1)
}
  0x43   : > { %2464 = dma.hbm_to_vmem [thread:$0]  (!%p2768_p2), %s4144_s2, 128, %s2772_s4, [#allocation6]  }
  0x44   : > { %p2288_p4 = scmp.ge.s32.totalorder %s2668_s15, 2 }
  0x45   : > { %p4241_p3 = scmp.ne.s32.totalorder (!%p2288_p4), %s4235_s22, 0 }
  0x46   : > { %152 = sbr.rel (%p2288_p4) target bundleno = 112 (0x70), region = 24 }
  0x4d   : > { %155 = sbr.rel (!%p4241_p3) target bundleno = 112 (0x70), region = 28  ;;  %s156_s20 = sand.u32 (%p4241_p3), 1, %s2664_s14  }
  0x4e   : > { %s2290_s27 = sshll.u32 (%p4241_p3), %s2668_s15, 5  ;;  %s2289_s30 = sshll.u32 (%p4241_p3), %s156_s20, 9 }
  0x4f   : > { %s162_s5 = ssub.s32 (%p4241_p3), 48, %s2290_s27  ;;  %s2831_s6 = scalar_lea.sflag (%p4241_p3), [#allocation3], %s156_s20 }
  0x50   : > { %p163_p5 = scmp.lt.s32.totalorder (%p4241_p3), %s162_s5, 32  ;;  %s160_s7 = scalar_lea.vmem (%p4241_p3), [#allocation2], %s2289_s30 }
  0x54   : > { %s4489_s5 = smov (!%p163_p5, %s162_s5), 32 }
  0x55   : > { %s2828_s29 = sshll.u32 %s4489_s5, 8 }
  0x56   : > { %s168_s4 = ssub.s32 8192, %s2828_s29 }
  0x57   : > { %169 = vsyncadd %s2831_s6, %s168_s4  ;;  %p2293_p2 = scmp.ne.s32.totalorder %s2828_s29, 0  ;;  %s2444_s22 = sshll.u32 %s2668_s15, 13 }
  0x58   : > { %s2839_s10 = scalar_lea.hbm %s4142_s0, %s2444_s22  ;;  %s175_s11 = sshll.u32 %s160_s7, 4  ;;  %s2841_s11 = int_to_ptr.vmem [resolvable:$true] %s175_s11 }
  0x59   : > { %s2570_s28 = scalar_lea.hbm %s2839_s10, %s2828_s29  ;;  %s2574_s20 = scalar_lea.hbm %s4142_s0, 12288 }
  0x5a   : > { %p2571_p6 = scmp.ne.s32.totalorder %s2839_s10, %s2570_s28  ;;  %p2575_p13 = scmp.lt.u32.totalorder %s2839_s10, %s4142_s0 }
  0x5b   : > { %p2576_p0 = scmp.lt.u32.totalorder %s2574_s20, %s2570_s28  ;;  %p2578_p8 = scmp.lt.u32.totalorder %s2570_s28, %s2839_s10 }
  0x5c   : > { %p2572_p11 = pnand %p2571_p6, %p2293_p2 }
  0x5d   : > { %p2577_p7 = por %p2576_p0, %p2575_p13 }
  0x5e   : > { %p2573_p12 = pneg %p2572_p11 }
  0x5f   : > { %p2579_p9 = por %p2578_p8, %p2577_p7 }
  0x61   : > { %p2580_p10 = pnand %p2579_p9, %p2573_p12 }
  0x63   : > { %2583 = shalt.err (!%p2580_p10)
}
  0x64   : > { %s2584_s5 = scalar_lea.vmem %s2841_s11, %s2828_s29  ;;  %s2674_s4 = smov [#allocation2]  }
  0x65   : > { %p2585_p1 = scmp.ne.s32.totalorder %s2841_s11, %s2584_s5  ;;  %s2588_s7 = sshll.u32 %s2674_s4, 4  ;;  %s2589_s7 = int_to_ptr.vmem [resolvable:$false] %s2588_s7 }
  0x66   : > { %s2590_s22 = scalar_lea.vmem %s2589_s7, 16384  ;;  %p2591_p6 = scmp.lt.s32.totalorder %s2841_s11, %s2589_s7 }
  0x67   : > { %p2586_p3 = pnand %p2585_p1, %p2293_p2  ;;  %p2592_p11 = scmp.lt.s32.totalorder %s2590_s22, %s2584_s5 }
  0x69   : > { %p2587_p5 = pneg %p2586_p3  ;;  %p2593_p13 = por %p2592_p11, %p2591_p6 }
  0x6b   : > { %p2594_p0 = pnand %p2593_p13, %p2587_p5 }
  0x6d   : > { %2597 = shalt.err (!%p2594_p0)
}
  0x6e   : > { %s2675_s8 = smov 256   ;;  %s2676_s9 = smov 16  }
  0x6f   : > { %181 = dma.hbm_to_vmem [thread:$0]  (%p2293_p2), %s2839_s10, %s2828_s29, %s2841_s11, %s2831_s6, %s2675_s8, %s2675_s8, %s2676_s9  }
  0x70 PF: > { %p4242_p12 = scmp.ne.s32.totalorder %s4239_s26, 0 }
  0x72   : > { %187 = sbr.rel (%p4242_p12) target bundleno = 694 (0x2b6), region = 32 }
  0x79   : > { %s2871_s28 = sand.u32 1, %s2660_s13   ;;  %p4243_p7 = scmp.ne.s32.totalorder %s4236_s23, 0 }
  0x7a   : > { %s2299_s17 = sshll.u32 %s2871_s28, 9  ;;  %s190_s19 = scalar_lea.sflag [#allocation3], %s2871_s28 }
  0x7b   : > { %s2877_s20 = scalar_lea.vmem [#allocation2], %s2299_s17 }
  0x7c   : > { %2643 = dma.done.wait (%p4243_p7), %s190_s19, 8192  }
  0x7d   : > { %2645 = vsyncadd (%p4243_p7), %s190_s19, 4294959104  ;;  %p4244_p2 = scmp.eq.s32.totalorder %s2721_s16, 0 }
  0x7f   : > { %2647 = dma.done.wait (%p4244_p2), [#allocation6], 16512   ;;  %p4245_p8 = pmov %p4244_p2 }
  0x80   : > { %v332_v0 = vld [vmem:[#allocation5] sm:$0xff]  ;;  %v333_v2 = vld [vmem:[#allocation5 + $0x8] sm:$0xff]  ;;  %v239_v54 = vld [vmem:[%s2877_s20 + $0x18] sm:$0xff]  ;;  %s3713_s23 = scalar_lea.vmem [#allocation8], %s2299_s17  ;;  %s2171_s26 = scalar_lea.sflag [#allocation4], %s2871_s28 }
  0x81   : > { %2649 = vsyncadd (%p4245_p8), [#allocation6], 4294950784  ;;  %v336_v1 = vld [vmem:[#allocation5 + $0x20] sm:$0xff]  ;;  %v337_v4 = vld [vmem:[#allocation5 + $0x28] sm:$0xff]  ;;  %p4482_p9 = scmp.ne.s32.totalorder %s4237_s24, 0 }
  0x82   : > { %v2304_v3 = vcombine.high %v332_v0, %v336_v1  ;;  %v2303_v5 = vcombine.low %v332_v0, %v336_v1  ;;  %v340_v6 = vld [vmem:[#allocation5 + $0x40] sm:$0xff]  ;;  %v2306_v8 = vcombine.high %v333_v2, %v337_v4  ;;  %v2305_v9 = vcombine.low %v333_v2, %v337_v4  ;;  %v341_v11 = vld [vmem:[#allocation5 + $0x48] sm:$0xff]  ;;  %s2432_s29 = sshll.u32 (%p4482_p9), %s2721_s16, 5 }
  0x83   : > { %v344_v7 = vld [vmem:[#allocation5 + $0x60] sm:$0xff]  ;;  %v345_v12 = vld [vmem:[#allocation5 + $0x68] sm:$0xff]  ;;  %s2179_s6 = ssub.s32 (%p4482_p9), 48, %s2432_s29 }
  0x84   : > { %v2312_v10 = vcombine.high %v340_v6, %v344_v7  ;;  %v348_v13 = vld [vmem:[#allocation5 + $0x80] sm:$0xff]  ;;  %1142 = vmatprep.subr.bf16.mxu0 %v2304_v3  ;;  %v2314_v14 = vcombine.high %v341_v11, %v345_v12  ;;  %v349_v16 = vld [vmem:[#allocation5 + $0x88] sm:$0xff]  ;;  %1335 = vmatprep.subr.bf16.mxu1 %v2306_v8  ;;  %v2311_v18 = vcombine.low %v340_v6, %v344_v7  ;;  %p2180_p10 = scmp.lt.s32.totalorder (%p4482_p9), %s2179_s6, 32 }
  0x85   : > { %v352_v15 = vld [vmem:[#allocation5 + $0xa0] sm:$0xff]  ;;  %v353_v17 = vld [vmem:[#allocation5 + $0xa8] sm:$0xff]  ;;  %1143 = vmatpush1.bf16.msra.mxu0 %v2303_v5  ;;  %1336 = vmatpush1.bf16.msra.mxu1 %v2305_v9  ;;  %v2313_v19 = vcombine.low %v341_v11, %v345_v12 }
  0x86   : > { %1144 = vmatprep.subr.bf16.mxu0 %v2312_v10  ;;  %v2320_v20 = vcombine.high %v348_v13, %v352_v15  ;;  %1337 = vmatprep.subr.bf16.mxu1 %v2314_v14  ;;  %v2322_v21 = vcombine.high %v349_v16, %v353_v17  ;;  %v356_v22 = vld [vmem:[#allocation5 + $0xc0] sm:$0xff]  ;;  %v357_v24 = vld [vmem:[#allocation5 + $0xc8] sm:$0xff]  ;;  %v2319_v26 = vcombine.low %v348_v13, %v352_v15 }
  0x87   : > { %v360_v23 = vld [vmem:[#allocation5 + $0xe0] sm:$0xff]  ;;  %v361_v25 = vld [vmem:[#allocation5 + $0xe8] sm:$0xff]  ;;  %v2321_v27 = vcombine.low %v349_v16, %v353_v17 }
  0x88   : > { %v2328_v28 = vcombine.high %v356_v22, %v360_v23  ;;  %v2330_v29 = vcombine.high %v357_v24, %v361_v25  ;;  %v364_v30 = vld [vmem:[#allocation5 + $0x100] sm:$0xff]  ;;  %v365_v32 = vld [vmem:[#allocation5 + $0x108] sm:$0xff]  ;;  %v2327_v34 = vcombine.low %v356_v22, %v360_v23  ;;  %v2329_v35 = vcombine.low %v357_v24, %v361_v25 }
  0x89   : > { %1145 = vmatpush1.bf16.msra.mxu0 %v2311_v18  ;;  %1338 = vmatpush1.bf16.msra.mxu1 %v2313_v19  ;;  %v368_v31 = vld [vmem:[#allocation5 + $0x120] sm:$0xff]  ;;  %v369_v33 = vld [vmem:[#allocation5 + $0x128] sm:$0xff] }
  0x8a   : > { %1146 = vmatprep.subr.bf16.mxu0 %v2320_v20  ;;  %1339 = vmatprep.subr.bf16.mxu1 %v2322_v21  ;;  %v2336_v36 = vcombine.high %v364_v30, %v368_v31  ;;  %v2338_v37 = vcombine.high %v365_v32, %v369_v33  ;;  %v372_v38 = vld [vmem:[#allocation5 + $0x140] sm:$0xff]  ;;  %v373_v40 = vld [vmem:[#allocation5 + $0x148] sm:$0xff]  ;;  %v2335_v42 = vcombine.low %v364_v30, %v368_v31 }
  0x8b   : > { %v376_v39 = vld [vmem:[#allocation5 + $0x160] sm:$0xff]  ;;  %v377_v41 = vld [vmem:[#allocation5 + $0x168] sm:$0xff]  ;;  %v2337_v43 = vcombine.low %v365_v32, %v369_v33 }
  0x8c   : > { %v2344_v44 = vcombine.high %v372_v38, %v376_v39  ;;  %v2346_v45 = vcombine.high %v373_v40, %v377_v41  ;;  %v380_v46 = vld [vmem:[#allocation5 + $0x180] sm:$0xff]  ;;  %v381_v48 = vld [vmem:[#allocation5 + $0x188] sm:$0xff]  ;;  %v2343_v50 = vcombine.low %v372_v38, %v376_v39  ;;  %v2345_v51 = vcombine.low %v373_v40, %v377_v41 }
  0x8d   : > { %1147 = vmatpush1.bf16.msra.mxu0 %v2319_v26  ;;  %1340 = vmatpush1.bf16.msra.mxu1 %v2321_v27  ;;  %v384_v47 = vld [vmem:[#allocation5 + $0x1a0] sm:$0xff]  ;;  %v385_v49 = vld [vmem:[#allocation5 + $0x1a8] sm:$0xff] }
  0x8e   : > { %1148 = vmatprep.subr.bf16.mxu0 %v2328_v28  ;;  %1341 = vmatprep.subr.bf16.mxu1 %v2330_v29  ;;  %v2352_v52 = vcombine.high %v380_v46, %v384_v47  ;;  %v237_v53 = vld [vmem:[%s2877_s20 + $0x8] sm:$0xff]  ;;  %v2354_v55 = vcombine.high %v381_v48, %v385_v49  ;;  %v388_v56 = vld [vmem:[#allocation5 + $0x1c0] sm:$0xff]  ;;  %v2351_v61 = vcombine.low %v380_v46, %v384_v47 }
  0x8f   : > { %v392_v57 = vld [vmem:[#allocation5 + $0x1e0] sm:$0xff]  ;;  %v2889_v58 = vpack.c.bf16 %v239_v54, %v237_v53  ;;  %v389_v59 = vld [vmem:[#allocation5 + $0x1c8] sm:$0xff]  ;;  %v2353_v62 = vcombine.low %v381_v48, %v385_v49 }
  0x90   : > { %v393_v60 = vld [vmem:[#allocation5 + $0x1e8] sm:$0xff]  ;;  %v2360_v63 = vcombine.high %v388_v56, %v392_v57  ;;  %v396_v1 = vld [vmem:[#allocation5 + $0x200] sm:$0xff]  ;;  %v2359_v5 = vcombine.low %v388_v56, %v392_v57 }
  0x91   : > { %1149 = vmatpush1.bf16.msra.mxu0 %v2327_v34  ;;  %1342 = vmatpush1.bf16.msra.mxu1 %v2329_v35  ;;  %v2362_v0 = vcombine.high %v389_v59, %v393_v60  ;;  %v400_v2 = vld [vmem:[#allocation5 + $0x220] sm:$0xff]  ;;  %v397_v3 = vld [vmem:[#allocation5 + $0x208] sm:$0xff]  ;;  %v2361_v6 = vcombine.low %v389_v59, %v393_v60 }
  0x92   : > { %1150 = vmatprep.subr.bf16.mxu0 %v2336_v36  ;;  %1343 = vmatprep.subr.bf16.mxu1 %v2338_v37  ;;  %v401_v4 = vld [vmem:[#allocation5 + $0x228] sm:$0xff]  ;;  %v2368_v7 = vcombine.high %v396_v1, %v400_v2  ;;  %v404_v9 = vld [vmem:[#allocation5 + $0x240] sm:$0xff]  ;;  %v2367_v13 = vcombine.low %v396_v1, %v400_v2  ;;  %v334_v2 = vld [vmem:[#allocation5 + $0x10] sm:$0xff] }
  0x93   : > { %1174 = vmatprep.mubr.bf16.mxu0 %v2889_v58  ;;  %1367 = vmatprep.mubr.bf16.mxu1 %v2889_v58  ;;  %v2370_v8 = vcombine.high %v397_v3, %v401_v4  ;;  %v408_v10 = vld [vmem:[#allocation5 + $0x260] sm:$0xff]  ;;  %v405_v11 = vld [vmem:[#allocation5 + $0x248] sm:$0xff]  ;;  %v2369_v14 = vcombine.low %v397_v3, %v401_v4  ;;  %v338_v3 = vld [vmem:[#allocation5 + $0x30] sm:$0xff] }
  0x94   : > { %v409_v12 = vld [vmem:[#allocation5 + $0x268] sm:$0xff]  ;;  %v2376_v15 = vcombine.high %v404_v9, %v408_v10  ;;  %v412_v17 = vld [vmem:[#allocation5 + $0x280] sm:$0xff]  ;;  %v2375_v21 = vcombine.low %v404_v9, %v408_v10  ;;  %v335_v4 = vld [vmem:[#allocation5 + $0x18] sm:$0xff]  ;;  %v2308_v10 = vcombine.high %v334_v2, %v338_v3 }
  0x95   : > { %1151 = vmatpush1.bf16.msra.mxu0 %v2335_v42  ;;  %1344 = vmatpush1.bf16.msra.mxu1 %v2337_v43  ;;  %v2378_v16 = vcombine.high %v405_v11, %v409_v12  ;;  %v416_v18 = vld [vmem:[#allocation5 + $0x2a0] sm:$0xff]  ;;  %v413_v19 = vld [vmem:[#allocation5 + $0x288] sm:$0xff]  ;;  %v2377_v22 = vcombine.low %v405_v11, %v409_v12 }
  0x96   : > { %1152 = vmatprep.subr.bf16.mxu0 %v2344_v44  ;;  %1345 = vmatprep.subr.bf16.mxu1 %v2346_v45  ;;  %v417_v20 = vld [vmem:[#allocation5 + $0x2a8] sm:$0xff]  ;;  %v2384_v23 = vcombine.high %v412_v17, %v416_v18  ;;  %v420_v25 = vld [vmem:[#allocation5 + $0x2c0] sm:$0xff]  ;;  %v2383_v29 = vcombine.low %v412_v17, %v416_v18  ;;  %v2307_v17 = vcombine.low %v334_v2, %v338_v3  ;;  %v343_v18 = vld [vmem:[#allocation5 + $0x58] sm:$0xff] }
  0x97   : > { %v2386_v24 = vcombine.high %v413_v19, %v417_v20  ;;  %v424_v26 = vld [vmem:[#allocation5 + $0x2e0] sm:$0xff]  ;;  %v421_v27 = vld [vmem:[#allocation5 + $0x2c8] sm:$0xff]  ;;  %v2385_v30 = vcombine.low %v413_v19, %v417_v20  ;;  %v347_v19 = vld [vmem:[#allocation5 + $0x78] sm:$0xff] }
  0x98   : > { %v425_v28 = vld [vmem:[#allocation5 + $0x2e8] sm:$0xff]  ;;  %v2392_v31 = vcombine.high %v420_v25, %v424_v26  ;;  %v428_v33 = vld [vmem:[#allocation5 + $0x300] sm:$0xff]  ;;  %v2391_v37 = vcombine.low %v420_v25, %v424_v26  ;;  %v2318_v25 = vcombine.high %v343_v18, %v347_v19  ;;  %v351_v26 = vld [vmem:[#allocation5 + $0x98] sm:$0xff] }
  0x99   : > { %1153 = vmatpush1.bf16.msra.mxu0 %v2343_v50  ;;  %1346 = vmatpush1.bf16.msra.mxu1 %v2345_v51  ;;  %v2394_v32 = vcombine.high %v421_v27, %v425_v28  ;;  %v432_v34 = vld [vmem:[#allocation5 + $0x320] sm:$0xff]  ;;  %v429_v35 = vld [vmem:[#allocation5 + $0x308] sm:$0xff]  ;;  %v2393_v38 = vcombine.low %v421_v27, %v425_v28  ;;  %v355_v27 = vld [vmem:[#allocation5 + $0xb8] sm:$0xff] }
  0x9a   : > { %1154 = vmatprep.subr.bf16.mxu0 %v2352_v52  ;;  %1347 = vmatprep.subr.bf16.mxu1 %v2354_v55  ;;  %v433_v36 = vld [vmem:[#allocation5 + $0x328] sm:$0xff]  ;;  %v2400_v39 = vcombine.high %v428_v33, %v432_v34  ;;  %v436_v41 = vld [vmem:[#allocation5 + $0x340] sm:$0xff]  ;;  %v2399_v45 = vcombine.low %v428_v33, %v432_v34  ;;  %v247_v33 = vld [vmem:[%s2877_s20 + $0x58] sm:$0xff] }
  0x9b   : > { %v2402_v40 = vcombine.high %v429_v35, %v433_v36  ;;  %v440_v42 = vld [vmem:[#allocation5 + $0x360] sm:$0xff]  ;;  %v437_v43 = vld [vmem:[#allocation5 + $0x348] sm:$0xff]  ;;  %v2401_v46 = vcombine.low %v429_v35, %v433_v36  ;;  %v2326_v35 = vcombine.high %v351_v26, %v355_v27 }
  0x9c   : > { %v441_v44 = vld [vmem:[#allocation5 + $0x368] sm:$0xff]  ;;  %v2408_v47 = vcombine.high %v436_v41, %v440_v42  ;;  %v444_v49 = vld [vmem:[#allocation5 + $0x380] sm:$0xff]  ;;  %v2407_v53 = vcombine.low %v436_v41, %v440_v42  ;;  %v363_v41 = vld [vmem:[#allocation5 + $0xf8] sm:$0xff] }
  0x9d   : > { %1155 = vmatpush1.bf16.msra.mxu0 %v2351_v61  ;;  %1348 = vmatpush1.bf16.msra.mxu1 %v2353_v62  ;;  %v2410_v48 = vcombine.high %v437_v43, %v441_v44  ;;  %v448_v50 = vld [vmem:[#allocation5 + $0x3a0] sm:$0xff]  ;;  %v445_v51 = vld [vmem:[#allocation5 + $0x388] sm:$0xff]  ;;  %v2409_v54 = vcombine.low %v437_v43, %v441_v44  ;;  %v2325_v43 = vcombine.low %v351_v26, %v355_v27 }
  0x9e   : > { %1156 = vmatprep.subr.bf16.mxu0 %v2360_v63  ;;  %1349 = vmatprep.subr.bf16.mxu1 %v2362_v0  ;;  %v449_v52 = vld [vmem:[#allocation5 + $0x3a8] sm:$0xff]  ;;  %v2416_v55 = vcombine.high %v444_v49, %v448_v50  ;;  %v452_v57 = vld [vmem:[#allocation5 + $0x3c0] sm:$0xff]  ;;  %v2415_v62 = vcombine.low %v444_v49, %v448_v50  ;;  %v246_v49 = vld [vmem:[%s2877_s20 + $0x50] sm:$0xff] }
  0x9f   : > { %v2418_v56 = vcombine.high %v445_v51, %v449_v52  ;;  %v456_v59 = vld [vmem:[#allocation5 + $0x3e0] sm:$0xff]  ;;  %v453_v60 = vld [vmem:[#allocation5 + $0x3c8] sm:$0xff]  ;;  %v2417_v63 = vcombine.low %v445_v51, %v449_v52  ;;  %v367_v50 = vld [vmem:[#allocation5 + $0x118] sm:$0xff] }
  0xa0   : > { %v457_v61 = vld [vmem:[#allocation5 + $0x3e8] sm:$0xff]  ;;  %v2424_v0 = vcombine.high %v452_v57, %v456_v59  ;;  %v240_v28 = vld [vmem:[%s2877_s20 + $0x20] sm:$0xff]  ;;  %v371_v51 = vld [vmem:[#allocation5 + $0x138] sm:$0xff] }
  0xa1   : > { %1157 = vmatpush1.bf16.msra.mxu0 %v2359_v5  ;;  %1350 = vmatpush1.bf16.msra.mxu1 %v2361_v6  ;;  %v2426_v1 = vcombine.high %v453_v60, %v457_v61  ;;  %v339_v5 = vld [vmem:[#allocation5 + $0x38] sm:$0xff]  ;;  %v2423_v6 = vcombine.low %v452_v57, %v456_v59  ;;  %v2425_v9 = vcombine.low %v453_v60, %v457_v61  ;;  %v241_v12 = vld [vmem:[%s2877_s20 + $0x28] sm:$0xff]  ;;  %v374_v60 = vld [vmem:[#allocation5 + $0x150] sm:$0xff] }
  0xa2   : > { %1158 = vmatprep.subr.bf16.mxu0 %v2368_v7  ;;  %1351 = vmatprep.subr.bf16.mxu1 %v2370_v8  ;;  %v236_v7 = vld [vmem:[%s2877_s20] sm:$0xff]  ;;  %v238_v8 = vld [vmem:[%s2877_s20 + $0x10] sm:$0xff]  ;;  %v2310_v11 = vcombine.high %v335_v4, %v339_v5  ;;  %v2309_v20 = vcombine.low %v335_v4, %v339_v5  ;;  %v249_v52 = vld [vmem:[%s2877_s20 + $0x68] sm:$0xff]  ;;  %v2342_v59 = vcombine.high %v367_v50, %v371_v51 }
  0xa3   : > { %v378_v61 = vld [vmem:[#allocation5 + $0x170] sm:$0xff]  ;;  %v2341_v2 = vcombine.low %v367_v50, %v371_v51  ;;  %v248_v4 = vld [vmem:[%s2877_s20 + $0x60] sm:$0xff] }
  0xa4   : > { %v2348_v3 = vcombine.high %v374_v60, %v378_v61 }
  0xa5   : > { %1159 = vmatpush1.bf16.msra.mxu0 %v2367_v13  ;;  %1352 = vmatpush1.bf16.msra.mxu1 %v2369_v14  ;;  %v243_v13 = vld [vmem:[%s2877_s20 + $0x38] sm:$0xff]  ;;  %v2897_v14 = vpack.c.bf16 %v238_v8, %v236_v7  ;;  %v386_v7 = vld [vmem:[#allocation5 + $0x1b0] sm:$0xff] }
  0xa6   : > { %1160 = vmatprep.subr.bf16.mxu0 %v2376_v15  ;;  %1353 = vmatprep.subr.bf16.mxu1 %v2378_v16  ;;  %v342_v15 = vld [vmem:[#allocation5 + $0x50] sm:$0xff] }
  0xa7   : > { %v346_v16 = vld [vmem:[#allocation5 + $0x70] sm:$0xff] }
  0xa8   : > { %v250_v8 = vld [vmem:[%s2877_s20 + $0x70] sm:$0xff] }
  0xa9   : > { %1161 = vmatpush1.bf16.msra.mxu0 %v2375_v21  ;;  %1354 = vmatpush1.bf16.msra.mxu1 %v2377_v22  ;;  %v2899_v21 = vpack.c.bf16 %v243_v13, %v241_v12  ;;  %v2316_v22 = vcombine.high %v342_v15, %v346_v16  ;;  %v255_v12 = vld [vmem:[%s2877_s20 + $0x98] sm:$0xff]  ;;  %v2347_v13 = vcombine.low %v374_v60, %v378_v61  ;;  %v261_v61 = vld [vmem:[%s2877_s20 + $0xc8] sm:$0xff] }
  0xaa   : > { %1162 = vmatprep.subr.bf16.mxu0 %v2384_v23  ;;  %1355 = vmatprep.subr.bf16.mxu1 %v2386_v24  ;;  %v350_v23 = vld [vmem:[#allocation5 + $0x90] sm:$0xff]  ;;  %v419_v60 = vld [vmem:[#allocation5 + $0x2b8] sm:$0xff] }
  0xab   : > { %v354_v24 = vld [vmem:[#allocation5 + $0xb0] sm:$0xff] }
  0xac   : > { %v2324_v34 = vcombine.high %v350_v23, %v354_v24  ;;  %v2323_v42 = vcombine.low %v350_v23, %v354_v24  ;;  %v391_v23 = vld [vmem:[#allocation5 + $0x1d8] sm:$0xff] }
  0xad   : > { %1163 = vmatpush1.bf16.msra.mxu0 %v2383_v29  ;;  %1356 = vmatpush1.bf16.msra.mxu1 %v2385_v30  ;;  %v242_v29 = vld [vmem:[%s2877_s20 + $0x30] sm:$0xff]  ;;  %v2315_v30 = vcombine.low %v342_v15, %v346_v16  ;;  %v395_v24 = vld [vmem:[#allocation5 + $0x1f8] sm:$0xff] }
  0xae   : > { %1164 = vmatprep.subr.bf16.mxu0 %v2392_v31  ;;  %1357 = vmatprep.subr.bf16.mxu1 %v2394_v32  ;;  %v2317_v31 = vcombine.low %v343_v18, %v347_v19  ;;  %v245_v32 = vld [vmem:[%s2877_s20 + $0x48] sm:$0xff]  ;;  %v2909_v36 = vpack.c.bf16 %v242_v29, %v240_v28  ;;  %v390_v19 = vld [vmem:[#allocation5 + $0x1d0] sm:$0xff]  ;;  %v252_v28 = vld [vmem:[%s2877_s20 + $0x80] sm:$0xff]  ;;  %v2366_v29 = vcombine.high %v391_v23, %v395_v24 }
  0xb1   : > { %1165 = vmatpush1.bf16.msra.mxu0 %v2391_v37  ;;  %1358 = vmatpush1.bf16.msra.mxu1 %v2393_v38  ;;  %v358_v37 = vld [vmem:[#allocation5 + $0xd0] sm:$0xff] }
  0xb2   : > { %1166 = vmatprep.subr.bf16.mxu0 %v2400_v39  ;;  %1359 = vmatprep.subr.bf16.mxu1 %v2402_v40  ;;  %v362_v38 = vld [vmem:[#allocation5 + $0xf0] sm:$0xff]  ;;  %v2911_v39 = vpack.c.bf16 %v247_v33, %v245_v32  ;;  %v359_v40 = vld [vmem:[#allocation5 + $0xd8] sm:$0xff] }
  0xb3   : > { %v2332_v44 = vcombine.high %v358_v37, %v362_v38  ;;  %v254_v32 = vld [vmem:[%s2877_s20 + $0x90] sm:$0xff]  ;;  %v399_v33 = vld [vmem:[#allocation5 + $0x218] sm:$0xff] }
  0xb5   : > { %1167 = vmatpush1.bf16.msra.mxu0 %v2399_v45  ;;  %1360 = vmatpush1.bf16.msra.mxu1 %v2401_v46  ;;  %v244_v45 = vld [vmem:[%s2877_s20 + $0x40] sm:$0xff]  ;;  %v2334_v46 = vcombine.high %v359_v40, %v363_v41 }
  0xb6   : > { %1168 = vmatprep.subr.bf16.mxu0 %v2408_v47  ;;  %1361 = vmatprep.subr.bf16.mxu1 %v2410_v48  ;;  %v366_v47 = vld [vmem:[#allocation5 + $0x110] sm:$0xff]  ;;  %v2921_v57 = vpack.c.bf16 %v246_v49, %v244_v45 }
  0xb7   : > { %v370_v48 = vld [vmem:[#allocation5 + $0x130] sm:$0xff] }
  0xb8   : > { %v410_v45 = vld [vmem:[#allocation5 + $0x270] sm:$0xff] }
  0xb9   : > { %1169 = vmatpush1.bf16.msra.mxu0 %v2407_v53  ;;  %1362 = vmatpush1.bf16.msra.mxu1 %v2409_v54  ;;  %v251_v53 = vld [vmem:[%s2877_s20 + $0x78] sm:$0xff]  ;;  %v2331_v54 = vcombine.low %v358_v37, %v362_v38 }
  0xba   : > { %1170 = vmatprep.subr.bf16.mxu0 %v2416_v55  ;;  %1363 = vmatprep.subr.bf16.mxu1 %v2418_v56  ;;  %v2333_v55 = vcombine.low %v359_v40, %v363_v41  ;;  %v2340_v56 = vcombine.high %v366_v47, %v370_v48  ;;  %v259_v37 = vld [vmem:[%s2877_s20 + $0xb8] sm:$0xff]  ;;  %v2365_v40 = vcombine.low %v391_v23, %v395_v24  ;;  %v265_v24 = vld [vmem:[%s2877_s20 + $0xe8] sm:$0xff] }
  0xbb   : > { %v435_v23 = vld [vmem:[#allocation5 + $0x338] sm:$0xff] }
  0xbd   : > { %1171 = vmatpush1.bf16.msra.mxu0 %v2415_v62  ;;  %1364 = vmatpush1.bf16.msra.mxu1 %v2417_v63  ;;  %v2923_v62 = vpack.c.bf16 %v251_v53, %v249_v52  ;;  %v375_v63 = vld [vmem:[#allocation5 + $0x158] sm:$0xff]  ;;  %v256_v52 = vld [vmem:[%s2877_s20 + $0xa0] sm:$0xff] }
  0xbe   : > { %1172 = vmatprep.subr.bf16.mxu0 %v2424_v0  ;;  %1365 = vmatprep.subr.bf16.mxu1 %v2426_v1  ;;  %v379_v0 = vld [vmem:[#allocation5 + $0x178] sm:$0xff]  ;;  %v2339_v1 = vcombine.low %v366_v47, %v370_v48 }
  0xbf   : > { %v2350_v5 = vcombine.high %v375_v63, %v379_v0  ;;  %v2349_v15 = vcombine.low %v375_v63, %v379_v0  ;;  %v407_v47 = vld [vmem:[#allocation5 + $0x258] sm:$0xff] }
  0xc0   : > { %v411_v48 = vld [vmem:[#allocation5 + $0x278] sm:$0xff] }
  0xc1   : > { %1173 = vmatpush1.bf16.msra.mxu0 %v2423_v6  ;;  %1366 = vmatpush1.bf16.msra.mxu1 %v2425_v9  ;;  %v382_v6 = vld [vmem:[#allocation5 + $0x190] sm:$0xff]  ;;  %v383_v9 = vld [vmem:[#allocation5 + $0x198] sm:$0xff]  ;;  %v2382_v53 = vcombine.high %v407_v47, %v411_v48 }
  0xc2   : > { %1528 = vmatprep.subr.bf16.mxu0 %v2308_v10  ;;  %1721 = vmatprep.subr.bf16.mxu1 %v2310_v11  ;;  %v387_v10 = vld [vmem:[#allocation5 + $0x1b8] sm:$0xff]  ;;  %v253_v11 = vld [vmem:[%s2877_s20 + $0x88] sm:$0xff]  ;;  %v2356_v16 = vcombine.high %v382_v6, %v386_v7 }
  0xc3   : > { %v2358_v18 = vcombine.high %v383_v9, %v387_v10  ;;  %v2357_v26 = vcombine.low %v383_v9, %v387_v10  ;;  %v263_v63 = vld [vmem:[%s2877_s20 + $0xd8] sm:$0xff] }
  0xc4   : > { %1175 = vmatmul.mubr.bf16.vlgmr.msra.gmra.mrb[0].mxu0 %v2897_v14  ;;  %1368 = vmatmul.mubr.bf16.vlgmr.msra.gmra.mrb[0].mxu1 %v2897_v14  ;;  %v427_v9 = vld [vmem:[#allocation5 + $0x2f8] sm:$0xff] }
  0xc5   : > { %1529 = vmatpush1.bf16.msra.mxu0 %v2307_v17  ;;  %1722 = vmatpush1.bf16.msra.mxu1 %v2309_v20  ;;  %v2933_v17 = vpack.c.bf16 %v250_v8, %v248_v4  ;;  %v394_v20 = vld [vmem:[#allocation5 + $0x1f0] sm:$0xff]  ;;  %v423_v8 = vld [vmem:[#allocation5 + $0x2d8] sm:$0xff] }
  0xc6   : > { %1184 = vmatprep.mubr.bf16.mxu0 %v2899_v21  ;;  %1377 = vmatprep.mubr.bf16.mxu1 %v2899_v21  ;;  %v2364_v27 = vcombine.high %v390_v19, %v394_v20  ;;  %v2363_v38 = vcombine.low %v390_v19, %v394_v20  ;;  %v262_v19 = vld [vmem:[%s2877_s20 + $0xd0] sm:$0xff]  ;;  %v431_v20 = vld [vmem:[#allocation5 + $0x318] sm:$0xff] }
  0xc7   : > { %1530 = vmatprep.subr.bf16.mxu0 %v2316_v22  ;;  %1723 = vmatprep.subr.bf16.mxu1 %v2318_v25  ;;  %v2935_v22 = vpack.c.bf16 %v255_v12, %v253_v11  ;;  %v2355_v25 = vcombine.low %v382_v6, %v386_v7  ;;  %v426_v6 = vld [vmem:[#allocation5 + $0x2f0] sm:$0xff]  ;;  %v2959_v7 = vpack.c.bf16 %v263_v63, %v261_v61  ;;  %v455_v63 = vld [vmem:[#allocation5 + $0x3d8] sm:$0xff] }
  0xc9   : > { %1531 = vmatpush1.bf16.msra.mxu0 %v2315_v30  ;;  %1724 = vmatpush1.bf16.msra.mxu1 %v2317_v31  ;;  %v398_v30 = vld [vmem:[#allocation5 + $0x210] sm:$0xff] }
  0xca   : > { %1532 = vmatprep.subr.bf16.mxu0 %v2324_v34  ;;  %1725 = vmatprep.subr.bf16.mxu1 %v2326_v35  ;;  %v402_v31 = vld [vmem:[#allocation5 + $0x230] sm:$0xff]  ;;  %v403_v34 = vld [vmem:[#allocation5 + $0x238] sm:$0xff]  ;;  %v257_v35 = vld [vmem:[%s2877_s20 + $0xa8] sm:$0xff] }
  0xcb   : > { %v2372_v41 = vcombine.high %v398_v30, %v402_v31  ;;  %v2371_v49 = vcombine.low %v398_v30, %v402_v31  ;;  %v2373_v50 = vcombine.low %v399_v33, %v403_v34  ;;  %v2406_v30 = vcombine.high %v431_v20, %v435_v23  ;;  %v438_v31 = vld [vmem:[#allocation5 + $0x350] sm:$0xff] }
  0xcc   : > { %1185 = vmatmul.mubr.bf16.gmra.mrb[4].mxu0 %v2909_v36  ;;  %1378 = vmatmul.mubr.bf16.gmra.mrb[4].mxu1 %v2909_v36 }
  0xcd   : > { %1194 = vmatprep.mubr.bf16.mxu0 %v2911_v39  ;;  %1387 = vmatprep.mubr.bf16.mxu1 %v2911_v39 }
  0xce   : > { %1533 = vmatpush1.bf16.msra.mxu0 %v2323_v42  ;;  %1726 = vmatpush1.bf16.msra.mxu1 %v2325_v43  ;;  %v2945_v42 = vpack.c.bf16 %v254_v32, %v252_v28  ;;  %v2374_v43 = vcombine.high %v399_v33, %v403_v34  ;;  %v442_v32 = vld [vmem:[#allocation5 + $0x370] sm:$0xff]  ;;  %v439_v34 = vld [vmem:[#allocation5 + $0x358] sm:$0xff] }
  0xcf   : > { %1534 = vmatprep.subr.bf16.mxu0 %v2332_v44  ;;  %1727 = vmatprep.subr.bf16.mxu1 %v2334_v46  ;;  %v406_v44 = vld [vmem:[#allocation5 + $0x250] sm:$0xff]  ;;  %v2947_v46 = vpack.c.bf16 %v259_v37, %v257_v35  ;;  %v443_v35 = vld [vmem:[#allocation5 + $0x378] sm:$0xff] }
  0xd0   : > { %v2380_v51 = vcombine.high %v406_v44, %v410_v45  ;;  %v2379_v0 = vcombine.low %v406_v44, %v410_v45  ;;  %v446_v44 = vld [vmem:[#allocation5 + $0x390] sm:$0xff] }
  0xd1   : > { %v450_v45 = vld [vmem:[#allocation5 + $0x3b0] sm:$0xff] }
  0xd2   : > { %1535 = vmatpush1.bf16.msra.mxu0 %v2331_v54  ;;  %1728 = vmatpush1.bf16.msra.mxu1 %v2333_v55  ;;  %v414_v54 = vld [vmem:[#allocation5 + $0x290] sm:$0xff] }
  0xd3   : > { %1536 = vmatprep.subr.bf16.mxu0 %v2340_v56  ;;  %1729 = vmatprep.subr.bf16.mxu1 %v2342_v59  ;;  %v418_v55 = vld [vmem:[#allocation5 + $0x2b0] sm:$0xff]  ;;  %v415_v59 = vld [vmem:[#allocation5 + $0x298] sm:$0xff] }
  0xd4   : > { %1195 = vmatmul.mubr.bf16.gmra.mrb[8].mxu0 %v2921_v57  ;;  %1388 = vmatmul.mubr.bf16.gmra.mrb[8].mxu1 %v2921_v57  ;;  %v258_v56 = vld [vmem:[%s2877_s20 + $0xb0] sm:$0xff]  ;;  %v2390_v4 = vcombine.high %v415_v59, %v419_v60  ;;  %v2387_v10 = vcombine.low %v414_v54, %v418_v55  ;;  %v2389_v11 = vcombine.low %v415_v59, %v419_v60 }
  0xd5   : > { %1204 = vmatprep.mubr.bf16.mxu0 %v2923_v62  ;;  %1397 = vmatprep.mubr.bf16.mxu1 %v2923_v62  ;;  %v454_v59 = vld [vmem:[#allocation5 + $0x3d0] sm:$0xff] }
  0xd6   : > { %1537 = vmatpush1.bf16.msra.mxu0 %v2339_v1  ;;  %1730 = vmatpush1.bf16.msra.mxu1 %v2341_v2  ;;  %v2381_v1 = vcombine.low %v407_v47, %v411_v48  ;;  %v2388_v2 = vcombine.high %v414_v54, %v418_v55  ;;  %v266_v47 = vld [vmem:[%s2877_s20 + $0xf0] sm:$0xff]  ;;  %v447_v48 = vld [vmem:[#allocation5 + $0x398] sm:$0xff]  ;;  %v2420_v54 = vcombine.high %v446_v44, %v450_v45 }
  0xd7   : > { %1538 = vmatprep.subr.bf16.mxu0 %v2348_v3  ;;  %1731 = vmatprep.subr.bf16.mxu1 %v2350_v5  ;;  %v2957_v3 = vpack.c.bf16 %v258_v56, %v256_v52  ;;  %v422_v5 = vld [vmem:[#allocation5 + $0x2d0] sm:$0xff]  ;;  %v2411_v52 = vcombine.low %v438_v31, %v442_v32 }
  0xd8   : > { %v2396_v12 = vcombine.high %v422_v5, %v426_v6  ;;  %v458_v60 = vld [vmem:[#allocation5 + $0x3f0] sm:$0xff] }
  0xda   : > { %1539 = vmatpush1.bf16.msra.mxu0 %v2347_v13  ;;  %1732 = vmatpush1.bf16.msra.mxu1 %v2349_v15  ;;  %v260_v13 = vld [vmem:[%s2877_s20 + $0xc0] sm:$0xff]  ;;  %v2398_v15 = vcombine.high %v423_v8, %v427_v9 }
  0xdb   : > { %1540 = vmatprep.subr.bf16.mxu0 %v2356_v16  ;;  %1733 = vmatprep.subr.bf16.mxu1 %v2358_v18  ;;  %v430_v16 = vld [vmem:[#allocation5 + $0x310] sm:$0xff] }
  0xdc   : > { %1205 = vmatmul.mubr.bf16.gmra.mrb[12].mxu0 %v2933_v17  ;;  %1398 = vmatmul.mubr.bf16.gmra.mrb[12].mxu1 %v2933_v17  ;;  %v434_v18 = vld [vmem:[#allocation5 + $0x330] sm:$0xff] }
  0xdd   : > { %1214 = vmatprep.mubr.bf16.mxu0 %v2935_v22  ;;  %1407 = vmatprep.mubr.bf16.mxu1 %v2935_v22  ;;  %v2404_v28 = vcombine.high %v430_v16, %v434_v18  ;;  %v2403_v37 = vcombine.low %v430_v16, %v434_v18  ;;  %v272_v16 = vld [vmem:[%s2877_s20 + $0x120] sm:$0xff]  ;;  %v274_v18 = vld [vmem:[%s2877_s20 + $0x130] sm:$0xff] }
  0xde   : > { %1541 = vmatpush1.bf16.msra.mxu0 %v2355_v25  ;;  %1734 = vmatpush1.bf16.msra.mxu1 %v2357_v26  ;;  %v267_v25 = vld [vmem:[%s2877_s20 + $0xf8] sm:$0xff]  ;;  %v2395_v26 = vcombine.low %v422_v5, %v426_v6  ;;  %v268_v6 = vld [vmem:[%s2877_s20 + $0x100] sm:$0xff] }
  0xdf   : > { %1542 = vmatprep.subr.bf16.mxu0 %v2364_v27  ;;  %1735 = vmatprep.subr.bf16.mxu1 %v2366_v29  ;;  %v2397_v27 = vcombine.low %v423_v8, %v427_v9  ;;  %v2969_v29 = vpack.c.bf16 %v262_v19, %v260_v13  ;;  %v2971_v33 = vpack.c.bf16 %v267_v25, %v265_v24  ;;  %v270_v8 = vld [vmem:[%s2877_s20 + $0x110] sm:$0xff]  ;;  %v273_v9 = vld [vmem:[%s2877_s20 + $0x128] sm:$0xff]  ;;  %v276_v25 = vld [vmem:[%s2877_s20 + $0x140] sm:$0xff] }
  0xe0   : > { %v2993_v13 = vpack.c.bf16 %v270_v8, %v268_v6  ;;  %v277_v19 = vld [vmem:[%s2877_s20 + $0x148] sm:$0xff] }
  0xe2   : > { %1543 = vmatpush1.bf16.msra.mxu0 %v2363_v38  ;;  %1736 = vmatpush1.bf16.msra.mxu1 %v2365_v40  ;;  %v2405_v38 = vcombine.low %v431_v20, %v435_v23  ;;  %v2412_v40 = vcombine.high %v438_v31, %v442_v32  ;;  %v279_v20 = vld [vmem:[%s2877_s20 + $0x158] sm:$0xff]  ;;  %v3005_v23 = vpack.c.bf16 %v274_v18, %v272_v16  ;;  %v280_v32 = vld [vmem:[%s2877_s20 + $0x160] sm:$0xff] }
  0xe3   : > { %1544 = vmatprep.subr.bf16.mxu0 %v2372_v41  ;;  %1737 = vmatprep.subr.bf16.mxu1 %v2374_v43  ;;  %v264_v41 = vld [vmem:[%s2877_s20 + $0xe0] sm:$0xff]  ;;  %v2414_v43 = vcombine.high %v439_v34, %v443_v35  ;;  %v3007_v24 = vpack.c.bf16 %v279_v20, %v277_v19 }
  0xe4   : > { %1215 = vmatmul.mubr.bf16.gmra.mrb[16].mxu0 %v2945_v42  ;;  %1408 = vmatmul.mubr.bf16.gmra.mrb[16].mxu1 %v2945_v42  ;;  %v2981_v55 = vpack.c.bf16 %v266_v47, %v264_v41  ;;  %v284_v41 = vld [vmem:[%s2877_s20 + $0x180] sm:$0xff] }
  0xe5   : > { %1224 = vmatprep.mubr.bf16.mxu0 %v2947_v46  ;;  %1417 = vmatprep.mubr.bf16.mxu1 %v2947_v46 }
  0xe6   : > { %1545 = vmatpush1.bf16.msra.mxu0 %v2371_v49  ;;  %1738 = vmatpush1.bf16.msra.mxu1 %v2373_v50  ;;  %v451_v49 = vld [vmem:[#allocation5 + $0x3b8] sm:$0xff]  ;;  %v269_v50 = vld [vmem:[%s2877_s20 + $0x108] sm:$0xff] }
  0xe7   : > { %1546 = vmatprep.subr.bf16.mxu0 %v2380_v51  ;;  %1739 = vmatprep.subr.bf16.mxu1 %v2382_v53  ;;  %v271_v51 = vld [vmem:[%s2877_s20 + $0x118] sm:$0xff]  ;;  %v2413_v53 = vcombine.low %v439_v34, %v443_v35  ;;  %v2422_v56 = vcombine.high %v447_v48, %v451_v49  ;;  %v282_v34 = vld [vmem:[%s2877_s20 + $0x170] sm:$0xff]  ;;  %v285_v35 = vld [vmem:[%s2877_s20 + $0x188] sm:$0xff] }
  0xe8   : > { %v2983_v61 = vpack.c.bf16 %v271_v51, %v269_v50  ;;  %v290_v50 = vld [vmem:[%s2877_s20 + $0x1b0] sm:$0xff]  ;;  %v293_v51 = vld [vmem:[%s2877_s20 + $0x1c8] sm:$0xff] }
  0xea   : > { %1547 = vmatpush1.bf16.msra.mxu0 %v2379_v0  ;;  %1740 = vmatpush1.bf16.msra.mxu1 %v2381_v1  ;;  %v459_v0 = vld [vmem:[#allocation5 + $0x3f8] sm:$0xff]  ;;  %v2419_v1 = vcombine.low %v446_v44, %v450_v45  ;;  %v289_v44 = vld [vmem:[%s2877_s20 + $0x1a8] sm:$0xff] }
  0xeb   : > { %1548 = vmatprep.subr.bf16.mxu0 %v2388_v2  ;;  %1741 = vmatprep.subr.bf16.mxu1 %v2390_v4  ;;  %v2421_v2 = vcombine.low %v447_v48, %v451_v49  ;;  %v2428_v4 = vcombine.high %v454_v59, %v458_v60  ;;  %v2430_v5 = vcombine.high %v455_v63, %v459_v0  ;;  %v291_v45 = vld [vmem:[%s2877_s20 + $0x1b8] sm:$0xff]  ;;  %v288_v49 = vld [vmem:[%s2877_s20 + $0x1a0] sm:$0xff] }
  0xec   : > { %1225 = vmatmul.mubr.bf16.gmra.mrb[20].mxu0 %v2957_v3  ;;  %1418 = vmatmul.mubr.bf16.gmra.mrb[20].mxu1 %v2957_v3  ;;  %v3043_v48 = vpack.c.bf16 %v291_v45, %v289_v44 }
  0xed   : > { %1234 = vmatprep.mubr.bf16.mxu0 %v2959_v7  ;;  %1427 = vmatprep.mubr.bf16.mxu1 %v2959_v7 }
  0xee   : > { %1549 = vmatpush1.bf16.msra.mxu0 %v2387_v10  ;;  %1742 = vmatpush1.bf16.msra.mxu1 %v2389_v11  ;;  %v275_v10 = vld [vmem:[%s2877_s20 + $0x138] sm:$0xff]  ;;  %v2427_v11 = vcombine.low %v454_v59, %v458_v60  ;;  %v294_v59 = vld [vmem:[%s2877_s20 + $0x1d0] sm:$0xff]  ;;  %v297_v60 = vld [vmem:[%s2877_s20 + $0x1e8] sm:$0xff] }
  0xef   : > { %1550 = vmatprep.subr.bf16.mxu0 %v2396_v12  ;;  %1743 = vmatprep.subr.bf16.mxu1 %v2398_v15  ;;  %v2429_v12 = vcombine.low %v455_v63, %v459_v0  ;;  %v2995_v15 = vpack.c.bf16 %v275_v10, %v273_v9  ;;  %v299_v63 = vld [vmem:[%s2877_s20 + $0x1f8] sm:$0xff] }
  0xf2   : > { %1551 = vmatpush1.bf16.msra.mxu0 %v2395_v26  ;;  %1744 = vmatpush1.bf16.msra.mxu1 %v2397_v27  ;;  %v278_v26 = vld [vmem:[%s2877_s20 + $0x150] sm:$0xff]  ;;  %v281_v27 = vld [vmem:[%s2877_s20 + $0x168] sm:$0xff] }
  0xf3   : > { %1552 = vmatprep.subr.bf16.mxu0 %v2404_v28  ;;  %1745 = vmatprep.subr.bf16.mxu1 %v2406_v30  ;;  %v283_v28 = vld [vmem:[%s2877_s20 + $0x178] sm:$0xff]  ;;  %v3017_v30 = vpack.c.bf16 %v278_v26, %v276_v25 }
  0xf4   : > { %1235 = vmatmul.mubr.bf16.gmra.mrb[24].mxu0 %v2969_v29  ;;  %1428 = vmatmul.mubr.bf16.gmra.mrb[24].mxu1 %v2969_v29  ;;  %v3019_v31 = vpack.c.bf16 %v283_v28, %v281_v27 }
  0xf5   : > { %1244 = vmatprep.mubr.bf16.mxu0 %v2971_v33  ;;  %1437 = vmatprep.mubr.bf16.mxu1 %v2971_v33 }
  0xf6   : > { %1553 = vmatpush1.bf16.msra.mxu0 %v2403_v37  ;;  %1746 = vmatpush1.bf16.msra.mxu1 %v2405_v38  ;;  %v287_v37 = vld [vmem:[%s2877_s20 + $0x198] sm:$0xff]  ;;  %v3029_v38 = vpack.c.bf16 %v282_v34, %v280_v32 }
  0xf7   : > { %1554 = vmatprep.subr.bf16.mxu0 %v2412_v40  ;;  %1747 = vmatprep.subr.bf16.mxu1 %v2414_v43  ;;  %v3031_v40 = vpack.c.bf16 %v287_v37, %v285_v35  ;;  %v286_v43 = vld [vmem:[%s2877_s20 + $0x190] sm:$0xff] }
  0xf8   : > { %v3041_v47 = vpack.c.bf16 %v286_v43, %v284_v41 }
  0xfa   : > { %1555 = vmatpush1.bf16.msra.mxu0 %v2411_v52  ;;  %1748 = vmatpush1.bf16.msra.mxu1 %v2413_v53  ;;  %v295_v52 = vld [vmem:[%s2877_s20 + $0x1d8] sm:$0xff]  ;;  %v3053_v53 = vpack.c.bf16 %v290_v50, %v288_v49 }
  0xfb   : > { %1556 = vmatprep.subr.bf16.mxu0 %v2420_v54  ;;  %1749 = vmatprep.subr.bf16.mxu1 %v2422_v56  ;;  %v3055_v54 = vpack.c.bf16 %v295_v52, %v293_v51  ;;  %v292_v56 = vld [vmem:[%s2877_s20 + $0x1c0] sm:$0xff] }
  0xfc   : > { %1245 = vmatmul.mubr.bf16.gmra.mrb[28].mxu0 %v2981_v55  ;;  %1438 = vmatmul.mubr.bf16.gmra.mrb[28].mxu1 %v2981_v55  ;;  %v3065_v0 = vpack.c.bf16 %v294_v59, %v292_v56 }
  0xfd   : > { %1254 = vmatprep.mubr.bf16.mxu0 %v2983_v61  ;;  %1447 = vmatprep.mubr.bf16.mxu1 %v2983_v61 }
  0xfe   : > { %1557 = vmatpush1.bf16.msra.mxu0 %v2419_v1  ;;  %1750 = vmatpush1.bf16.msra.mxu1 %v2421_v2  ;;  %v3067_v1 = vpack.c.bf16 %v299_v63, %v297_v60  ;;  %v296_v2 = vld [vmem:[%s2877_s20 + $0x1e0] sm:$0xff] }
  0xff   : > { %1558 = vmatprep.subr.bf16.mxu0 %v2428_v4  ;;  %1751 = vmatprep.subr.bf16.mxu1 %v2430_v5  ;;  %v298_v4 = vld [vmem:[%s2877_s20 + $0x1f0] sm:$0xff] }
 0x100   : > { %v3075_v5 = vpack.c.bf16 %v298_v4, %v296_v2 }
 0x102   : > { %1559 = vmatpush1.bf16.msra.mxu0 %v2427_v11  ;;  %1752 = vmatpush1.bf16.msra.mxu1 %v2429_v12 }
 0x104   : > { %1255 = vmatmul.mubr.bf16.gmra.mrb[32].mxu0 %v2993_v13  ;;  %1448 = vmatmul.mubr.bf16.gmra.mrb[32].mxu1 %v2993_v13 }
 0x105   : > { %1264 = vmatprep.mubr.bf16.mxu0 %v2995_v15  ;;  %1457 = vmatprep.mubr.bf16.mxu1 %v2995_v15 }
 0x10c   : > { %1265 = vmatmul.mubr.bf16.gmra.mrb[36].mxu0 %v3005_v23  ;;  %1458 = vmatmul.mubr.bf16.gmra.mrb[36].mxu1 %v3005_v23 }
 0x10d   : > { %1274 = vmatprep.mubr.bf16.mxu0 %v3007_v24  ;;  %1467 = vmatprep.mubr.bf16.mxu1 %v3007_v24 }
 0x114   : > { %1275 = vmatmul.mubr.bf16.gmra.mrb[40].mxu0 %v3017_v30  ;;  %1468 = vmatmul.mubr.bf16.gmra.mrb[40].mxu1 %v3017_v30 }
 0x115   : > { %1284 = vmatprep.mubr.bf16.mxu0 %v3019_v31  ;;  %1477 = vmatprep.mubr.bf16.mxu1 %v3019_v31 }
 0x11c   : > { %1285 = vmatmul.mubr.bf16.gmra.mrb[44].mxu0 %v3029_v38  ;;  %1478 = vmatmul.mubr.bf16.gmra.mrb[44].mxu1 %v3029_v38 }
 0x11d   : > { %1294 = vmatprep.mubr.bf16.mxu0 %v3031_v40  ;;  %1487 = vmatprep.mubr.bf16.mxu1 %v3031_v40 }
 0x124   : > { %1295 = vmatmul.mubr.bf16.gmra.mrb[48].mxu0 %v3041_v47  ;;  %1488 = vmatmul.mubr.bf16.gmra.mrb[48].mxu1 %v3041_v47 }
 0x125   : > { %1304 = vmatprep.mubr.bf16.mxu0 %v3043_v48  ;;  %1497 = vmatprep.mubr.bf16.mxu1 %v3043_v48 }
 0x12c   : > { %1305 = vmatmul.mubr.bf16.gmra.mrb[52].mxu0 %v3053_v53  ;;  %1498 = vmatmul.mubr.bf16.gmra.mrb[52].mxu1 %v3053_v53 }
 0x12d   : > { %1314 = vmatprep.mubr.bf16.mxu0 %v3055_v54  ;;  %1507 = vmatprep.mubr.bf16.mxu1 %v3055_v54 }
 0x134   : > { %1315 = vmatmul.mubr.bf16.gmra.mrb[56].mxu0 %v3065_v0  ;;  %1508 = vmatmul.mubr.bf16.gmra.mrb[56].mxu1 %v3065_v0 }
 0x135   : > { %1324 = vmatprep.mubr.bf16.mxu0 %v3067_v1  ;;  %1517 = vmatprep.mubr.bf16.mxu1 %v3067_v1 }
 0x13c   : > { %1325 = vmatmul.mubr.bf16.gmra.mrb[60].mxu0 %v3075_v5  ;;  %1518 = vmatmul.mubr.bf16.gmra.mrb[60].mxu1 %v3075_v5 }
 0x13d   : > { %1560 = vmatprep.mubr.bf16.mxu0 %v2889_v58  ;;  %1753 = vmatprep.mubr.bf16.mxu1 %v2889_v58  ;;  %v462_v58 = vlaneseq }
 0x144   : > { %1561 = vmatmul.mubr.bf16.vlgmr.msra.gmra.mrb[64].mxu0 %v2897_v14  ;;  %1754 = vmatmul.mubr.bf16.vlgmr.msra.gmra.mrb[64].mxu1 %v2897_v14  ;;  %v3118_v14 = vshrl.u32 %v462_v58, 7 }
 0x145   : > { %1570 = vmatprep.mubr.bf16.mxu0 %v2899_v21  ;;  %1763 = vmatprep.mubr.bf16.mxu1 %v2899_v21 }
 0x146   : > { %v464_v21 = vsub.s32 0, %v3118_v14 }
 0x14c   : > { %1571 = vmatmul.mubr.bf16.gmra.mrb[68].mxu0 %v2909_v36  ;;  %1764 = vmatmul.mubr.bf16.gmra.mrb[68].mxu1 %v2909_v36  ;;  %v3124_v36 = vld [vmem:[#allocation7] sm:$0xff] }
 0x14d   : > { %1580 = vmatprep.mubr.bf16.mxu0 %v2911_v39  ;;  %1773 = vmatprep.mubr.bf16.mxu1 %v2911_v39  ;;  %v472_v39 = vsub.s32 2, %v3118_v14 }
 0x154   : > { %1581 = vmatmul.mubr.bf16.gmra.mrb[72].mxu0 %v2921_v57  ;;  %1774 = vmatmul.mubr.bf16.gmra.mrb[72].mxu1 %v2921_v57  ;;  %v468_v57 = vsub.s32 1, %v3118_v14 }
 0x155   : > { %1590 = vmatprep.mubr.bf16.mxu0 %v2923_v62  ;;  %1783 = vmatprep.mubr.bf16.mxu1 %v2923_v62  ;;  %v476_v62 = vsub.s32 3, %v3118_v14 }
 0x15c   : > { %1591 = vmatmul.mubr.bf16.gmra.mrb[76].mxu0 %v2933_v17  ;;  %1784 = vmatmul.mubr.bf16.gmra.mrb[76].mxu1 %v2933_v17  ;;  %v3131_v17 = vrot.slane %v3124_v36, %v464_v21 }
 0x15d   : > { %1600 = vmatprep.mubr.bf16.mxu0 %v2935_v22  ;;  %1793 = vmatprep.mubr.bf16.mxu1 %v2935_v22  ;;  %v3135_v22 = vrot.slane %v3124_v36, %v472_v39 }
 0x164   : > { %1601 = vmatmul.mubr.bf16.gmra.mrb[80].mxu0 %v2945_v42  ;;  %1794 = vmatmul.mubr.bf16.gmra.mrb[80].mxu1 %v2945_v42  ;;  %v3138_v42 = vrot.slane %v3124_v36, %v468_v57 }
 0x165   : > { %1610 = vmatprep.mubr.bf16.mxu0 %v2947_v46  ;;  %1803 = vmatprep.mubr.bf16.mxu1 %v2947_v46  ;;  %v3142_v46 = vrot.slane %v3124_v36, %v476_v62 }
 0x16c   : > { %1611 = vmatmul.mubr.bf16.gmra.mrb[84].mxu0 %v2957_v3  ;;  %1804 = vmatmul.mubr.bf16.gmra.mrb[84].mxu1 %v2957_v3 }
 0x16d   : > { %1620 = vmatprep.mubr.bf16.mxu0 %v2959_v7  ;;  %1813 = vmatprep.mubr.bf16.mxu1 %v2959_v7 }
 0x174   : > { %1621 = vmatmul.mubr.bf16.gmra.mrb[88].mxu0 %v2969_v29  ;;  %1814 = vmatmul.mubr.bf16.gmra.mrb[88].mxu1 %v2969_v29 }
 0x175   : > { %1630 = vmatprep.mubr.bf16.mxu0 %v2971_v33  ;;  %1823 = vmatprep.mubr.bf16.mxu1 %v2971_v33 }
 0x17c   : > { %1631 = vmatmul.mubr.bf16.gmra.mrb[92].mxu0 %v2981_v55  ;;  %1824 = vmatmul.mubr.bf16.gmra.mrb[92].mxu1 %v2981_v55 }
 0x17d   : > { %1640 = vmatprep.mubr.bf16.mxu0 %v2983_v61  ;;  %1833 = vmatprep.mubr.bf16.mxu1 %v2983_v61 }
 0x184   : > { %1641 = vmatmul.mubr.bf16.gmra.mrb[96].mxu0 %v2993_v13  ;;  %1834 = vmatmul.mubr.bf16.gmra.mrb[96].mxu1 %v2993_v13 }
 0x185   : > { %1650 = vmatprep.mubr.bf16.mxu0 %v2995_v15  ;;  %1843 = vmatprep.mubr.bf16.mxu1 %v2995_v15 }
 0x18c   : > { %1651 = vmatmul.mubr.bf16.gmra.mrb[100].mxu0 %v3005_v23  ;;  %1844 = vmatmul.mubr.bf16.gmra.mrb[100].mxu1 %v3005_v23 }
 0x18d   : > { %1660 = vmatprep.mubr.bf16.mxu0 %v3007_v24  ;;  %1853 = vmatprep.mubr.bf16.mxu1 %v3007_v24 }
 0x194   : > { %1661 = vmatmul.mubr.bf16.gmra.mrb[104].mxu0 %v3017_v30  ;;  %1854 = vmatmul.mubr.bf16.gmra.mrb[104].mxu1 %v3017_v30 }
 0x195   : > { %1670 = vmatprep.mubr.bf16.mxu0 %v3019_v31  ;;  %1863 = vmatprep.mubr.bf16.mxu1 %v3019_v31 }
 0x197   : > { %v1176_v3 = vpop.f32.mrb[0].mxu0  ;;  %v1369_v29 = vpop.f32.mrb[0].mxu1 }
 0x198   : > { %v3146_v7 = vadd.f32 %v1176_v3, %v3131_v17  ;;  %v1178_v33 = vpop.f32.mrb[1].mxu0  ;;  %v3149_v55 = vadd.f32 %v1369_v29, %v3135_v22  ;;  %v1371_v6 = vpop.f32.mrb[1].mxu1 }
 0x199   : > { %v3152_v61 = vadd.f32 %v1178_v33, %v3138_v42  ;;  %v1180_v8 = vpop.f32.mrb[2].mxu0  ;;  %v3155_v9 = vadd.f32 %v1371_v6, %v3142_v46  ;;  %v1373_v11 = vpop.f32.mrb[2].mxu1 }
 0x19a   : > { %v3158_v10 = vadd.f32 %v1180_v8, %v3131_v17  ;;  %v1182_v12 = vpop.f32.mrb[3].mxu0  ;;  %v3163_v15 = vadd.f32 %v1373_v11, %v3135_v22  ;;  %v1375_v18 = vpop.f32.mrb[3].mxu1 }
 0x19b   : > { %v3166_v16 = vadd.f32 %v1182_v12, %v3138_v42  ;;  %v3171_v20 = vadd.f32 %v1375_v18, %v3142_v46 }
 0x19c   : > { %1671 = vmatmul.mubr.bf16.gmra.mrb[108].mxu0 %v3029_v38  ;;  %1864 = vmatmul.mubr.bf16.gmra.mrb[108].mxu1 %v3029_v38 }
 0x19d   : > { %1680 = vmatprep.mubr.bf16.mxu0 %v3031_v40  ;;  %1873 = vmatprep.mubr.bf16.mxu1 %v3031_v40 }
 0x19f   : > { %v1186_v25 = vpop.f32.mrb[4].mxu0  ;;  %v1379_v27 = vpop.f32.mrb[4].mxu1 }
 0x1a0   : > { %v3182_v26 = vadd.f32 %v1186_v25, %v3131_v17  ;;  %v1188_v28 = vpop.f32.mrb[5].mxu0  ;;  %v3185_v30 = vadd.f32 %v1379_v27, %v3135_v22  ;;  %v1381_v32 = vpop.f32.mrb[5].mxu1 }
 0x1a1   : > { %v3188_v31 = vadd.f32 %v1188_v28, %v3138_v42  ;;  %v1190_v34 = vpop.f32.mrb[6].mxu0  ;;  %v3191_v35 = vadd.f32 %v1381_v32, %v3142_v46  ;;  %v1383_v38 = vpop.f32.mrb[6].mxu1 }
 0x1a2   : > { %v3194_v37 = vadd.f32 %v1190_v34, %v3131_v17  ;;  %v1192_v40 = vpop.f32.mrb[7].mxu0  ;;  %v3199_v43 = vadd.f32 %v1383_v38, %v3135_v22  ;;  %v1385_v45 = vpop.f32.mrb[7].mxu1 }
 0x1a3   : > { %v3202_v44 = vadd.f32 %v1192_v40, %v3138_v42  ;;  %v3207_v50 = vadd.f32 %v1385_v45, %v3142_v46 }
 0x1a4   : > { %1681 = vmatmul.mubr.bf16.gmra.mrb[112].mxu0 %v3041_v47  ;;  %1874 = vmatmul.mubr.bf16.gmra.mrb[112].mxu1 %v3041_v47 }
 0x1a5   : > { %1690 = vmatprep.mubr.bf16.mxu0 %v3043_v48  ;;  %1883 = vmatprep.mubr.bf16.mxu1 %v3043_v48 }
 0x1a7   : > { %v1196_v56 = vpop.f32.mrb[8].mxu0  ;;  %v1389_v60 = vpop.f32.mrb[8].mxu1 }
 0x1a8   : > { %v3218_v59 = vadd.f32 %v1196_v56, %v3131_v17  ;;  %v1198_v63 = vpop.f32.mrb[9].mxu0  ;;  %v3221_v2 = vadd.f32 %v1389_v60, %v3135_v22  ;;  %v1391_v47 = vpop.f32.mrb[9].mxu1 }
 0x1a9   : > { %v3224_v4 = vadd.f32 %v1198_v63, %v3138_v42  ;;  %v1200_v58 = vpop.f32.mrb[10].mxu0  ;;  %v3227_v21 = vadd.f32 %v1391_v47, %v3142_v46  ;;  %v1393_v48 = vpop.f32.mrb[10].mxu1 }
 0x1aa   : > { %v3230_v39 = vadd.f32 %v1200_v58, %v3131_v17  ;;  %v1202_v57 = vpop.f32.mrb[11].mxu0  ;;  %v3235_v3 = vadd.f32 %v1393_v48, %v3135_v22  ;;  %v1395_v33 = vpop.f32.mrb[11].mxu1 }
 0x1ab   : > { %v3238_v29 = vadd.f32 %v1202_v57, %v3138_v42  ;;  %v3243_v8 = vadd.f32 %v1395_v33, %v3142_v46 }
 0x1ac   : > { %1691 = vmatmul.mubr.bf16.gmra.mrb[116].mxu0 %v3053_v53  ;;  %1884 = vmatmul.mubr.bf16.gmra.mrb[116].mxu1 %v3053_v53 }
 0x1ad   : > { %1700 = vmatprep.mubr.bf16.mxu0 %v3055_v54  ;;  %1893 = vmatprep.mubr.bf16.mxu1 %v3055_v54 }
 0x1af   : > { %v1206_v18 = vpop.f32.mrb[12].mxu0  ;;  %v1399_v27 = vpop.f32.mrb[12].mxu1 }
 0x1b0   : > { %v3254_v25 = vadd.f32 %v1206_v18, %v3131_v17  ;;  %v1208_v28 = vpop.f32.mrb[13].mxu0  ;;  %v3257_v32 = vadd.f32 %v1399_v27, %v3135_v22  ;;  %v1401_v53 = vpop.f32.mrb[13].mxu1 }
 0x1b1   : > { %v3260_v34 = vadd.f32 %v1208_v28, %v3138_v42  ;;  %v1210_v38 = vpop.f32.mrb[14].mxu0  ;;  %v3263_v40 = vadd.f32 %v1401_v53, %v3142_v46  ;;  %v1403_v54 = vpop.f32.mrb[14].mxu1 }
 0x1b2   : > { %v3266_v45 = vadd.f32 %v1210_v38, %v3131_v17  ;;  %v1212_v56 = vpop.f32.mrb[15].mxu0  ;;  %v3271_v63 = vadd.f32 %v1403_v54, %v3135_v22  ;;  %v1405_v58 = vpop.f32.mrb[15].mxu1 }
 0x1b3   : > { %v3274_v47 = vadd.f32 %v1212_v56, %v3138_v42  ;;  %v3279_v57 = vadd.f32 %v1405_v58, %v3142_v46 }
 0x1b4   : > { %1701 = vmatmul.mubr.bf16.gmra.mrb[120].mxu0 %v3065_v0  ;;  %1894 = vmatmul.mubr.bf16.gmra.mrb[120].mxu1 %v3065_v0 }
 0x1b5   : > { %1710 = vmatprep.mubr.bf16.mxu0 %v3067_v1  ;;  %1903 = vmatprep.mubr.bf16.mxu1 %v3067_v1 }
 0x1b7   : > { %v1216_v27 = vpop.f32.mrb[16].mxu0  ;;  %v1409_v53 = vpop.f32.mrb[16].mxu1 }
 0x1b8   : > { %v3290_v28 = vadd.f32 %v1216_v27, %v3131_v17  ;;  %v1218_v38 = vpop.f32.mrb[17].mxu0  ;;  %v3293_v54 = vadd.f32 %v1409_v53, %v3135_v22  ;;  %v1411_v0 = vpop.f32.mrb[17].mxu1 }
 0x1b9   : > { %v3296_v56 = vadd.f32 %v1218_v38, %v3138_v42  ;;  %v1220_v58 = vpop.f32.mrb[18].mxu0  ;;  %v3299_v33 = vadd.f32 %v1411_v0, %v3142_v46  ;;  %v1413_v1 = vpop.f32.mrb[18].mxu1 }
 0x1ba   : > { %v3302_v18 = vadd.f32 %v1220_v58, %v3131_v17  ;;  %v1222_v48 = vpop.f32.mrb[19].mxu0  ;;  %v3307_v60 = vadd.f32 %v1413_v1, %v3135_v22  ;;  %v1415_v38 = vpop.f32.mrb[19].mxu1 }
 0x1bb   : > { %v3310_v53 = vadd.f32 %v1222_v48, %v3138_v42  ;;  %v3315_v0 = vadd.f32 %v1415_v38, %v3142_v46 }
 0x1bc   : > { %1711 = vmatmul.mubr.bf16.gmra.mrb[124].mxu0 %v3075_v5  ;;  %1904 = vmatmul.mubr.bf16.gmra.mrb[124].mxu1 %v3075_v5 }
 0x1bf   : > { %v1226_v27 = vpop.f32.mrb[20].mxu0  ;;  %v1419_v11 = vpop.f32.mrb[20].mxu1 }
 0x1c0   : > { %v3324_v48 = vadd.f32 %v1226_v27, %v3131_v17  ;;  %v1228_v6 = vpop.f32.mrb[21].mxu0  ;;  %v3327_v12 = vadd.f32 %v1419_v11, %v3135_v22  ;;  %v1421_v62 = vpop.f32.mrb[21].mxu1 }
 0x1c1   : > { %v3330_v38 = vadd.f32 %v1228_v6, %v3138_v42  ;;  %v1230_v52 = vpop.f32.mrb[22].mxu0  ;;  %v3333_v58 = vadd.f32 %v1421_v62, %v3142_v46  ;;  %v1423_v1 = vpop.f32.mrb[22].mxu1 }
 0x1c2   : > { %4246 = vst [vmem:[#allocation12_spill] sm:$0xff] %v3327_v12  ;;  %v3336_v5 = vadd.f32 %v1230_v52, %v3131_v17  ;;  %v1232_v51 = vpop.f32.mrb[23].mxu0  ;;  %v3341_v49 = vadd.f32 %v1423_v1, %v3135_v22  ;;  %v1425_v6 = vpop.f32.mrb[23].mxu1 }
 0x1c3   : > { %4247 = vst [vmem:[#allocation13_spill] sm:$0xff] %v3330_v38  ;;  %4248 = vst [vmem:[#allocation14_spill] sm:$0xff] %v3333_v58  ;;  %v3344_v11 = vadd.f32 %v1232_v51, %v3138_v42  ;;  %v3349_v62 = vadd.f32 %v1425_v6, %v3142_v46 }
 0x1c4   : > { %4249 = vst [vmem:[#allocation15_spill] sm:$0xff] %v3336_v5  ;;  %4250 = vst [vmem:[#allocation16_spill] sm:$0xff] %v3341_v49 }
 0x1c5   : > { %4251 = vst [vmem:[#allocation17_spill] sm:$0xff] %v3344_v11  ;;  %4252 = vst [vmem:[#allocation18_spill] sm:$0xff] %v3349_v62 }
 0x1c7   : > { %v1236_v27 = vpop.f32.mrb[24].mxu0  ;;  %v1429_v23 = vpop.f32.mrb[24].mxu1 }
 0x1c8   : > { %v3356_v1 = vadd.f32 %v1236_v27, %v3131_v17  ;;  %v1238_v51 = vpop.f32.mrb[25].mxu0  ;;  %v3359_v19 = vadd.f32 %v1429_v23, %v3135_v22  ;;  %v1431_v6 = vpop.f32.mrb[25].mxu1 }
 0x1c9   : > { %v3362_v41 = vadd.f32 %v1238_v51, %v3138_v42  ;;  %v1240_v13 = vpop.f32.mrb[26].mxu0  ;;  %v3365_v58 = vadd.f32 %v1431_v6, %v3142_v46  ;;  %v1433_v24 = vpop.f32.mrb[26].mxu1 }
 0x1ca   : > { %4253 = vst [vmem:[#allocation19_spill] sm:$0xff] %v3356_v1  ;;  %4254 = vst [vmem:[#allocation20_spill] sm:$0xff] %v3359_v19  ;;  %v3368_v52 = vadd.f32 %v1240_v13, %v3131_v17  ;;  %v1242_v62 = vpop.f32.mrb[27].mxu0  ;;  %v3373_v11 = vadd.f32 %v1433_v24, %v3135_v22  ;;  %v1435_v51 = vpop.f32.mrb[27].mxu1 }
 0x1cb   : > { %4255 = vst [vmem:[#allocation21_spill] sm:$0xff] %v3362_v41  ;;  %4256 = vst [vmem:[#allocation22_spill] sm:$0xff] %v3365_v58  ;;  %v3376_v23 = vadd.f32 %v1242_v62, %v3138_v42  ;;  %v3381_v6 = vadd.f32 %v1435_v51, %v3142_v46 }
 0x1cc   : > { %4257 = vst [vmem:[#allocation23_spill] sm:$0xff] %v3368_v52  ;;  %4258 = vst [vmem:[#allocation24_spill] sm:$0xff] %v3373_v11 }
 0x1cd   : > { %4259 = vst [vmem:[#allocation25_spill] sm:$0xff] %v3376_v23  ;;  %4260 = vst [vmem:[#allocation26_spill] sm:$0xff] %v3381_v6 }
 0x1cf   : > { %v1246_v27 = vpop.f32.mrb[28].mxu0  ;;  %v1439_v19 = vpop.f32.mrb[28].mxu1 }
 0x1d0   : > { %v3388_v24 = vadd.f32 %v1246_v27, %v3131_v17  ;;  %v1248_v62 = vpop.f32.mrb[29].mxu0  ;;  %v3391_v1 = vadd.f32 %v1439_v19, %v3135_v22  ;;  %v1441_v51 = vpop.f32.mrb[29].mxu1 }
 0x1d1   : > { %v3394_v49 = vadd.f32 %v1248_v62, %v3138_v42  ;;  %v1250_v58 = vpop.f32.mrb[30].mxu0  ;;  %v3397_v41 = vadd.f32 %v1441_v51, %v3142_v46  ;;  %v1443_v5 = vpop.f32.mrb[30].mxu1 }
 0x1d2   : > { %4261 = vst [vmem:[#allocation27_spill] sm:$0xff] %v3388_v24  ;;  %4262 = vst [vmem:[#allocation28_spill] sm:$0xff] %v3391_v1  ;;  %v3400_v13 = vadd.f32 %v1250_v58, %v3131_v17  ;;  %v1252_v6 = vpop.f32.mrb[31].mxu0  ;;  %v3405_v23 = vadd.f32 %v1443_v5, %v3135_v22  ;;  %v1445_v62 = vpop.f32.mrb[31].mxu1 }
 0x1d3   : > { %4263 = vst [vmem:[#allocation29_spill] sm:$0xff] %v3394_v49  ;;  %4264 = vst [vmem:[#allocation30_spill] sm:$0xff] %v3397_v41  ;;  %v3408_v19 = vadd.f32 %v1252_v6, %v3138_v42  ;;  %v3413_v51 = vadd.f32 %v1445_v62, %v3142_v46 }
 0x1d4   : > { %4265 = vst [vmem:[#allocation31_spill] sm:$0xff] %v3400_v13  ;;  %4266 = vst [vmem:[#allocation32_spill] sm:$0xff] %v3405_v23 }
 0x1d5   : > { %4267 = vst [vmem:[#allocation33_spill] sm:$0xff] %v3408_v19  ;;  %4268 = vst [vmem:[#allocation34_spill] sm:$0xff] %v3413_v51 }
 0x1d7   : > { %v1256_v27 = vpop.f32.mrb[32].mxu0  ;;  %v1449_v1 = vpop.f32.mrb[32].mxu1 }
 0x1d8   : > { %v3420_v5 = vadd.f32 %v1256_v27, %v3131_v17  ;;  %v1258_v6 = vpop.f32.mrb[33].mxu0  ;;  %v3423_v24 = vadd.f32 %v1449_v1, %v3135_v22  ;;  %v1451_v62 = vpop.f32.mrb[33].mxu1 }
 0x1d9   : > { %v3426_v11 = vadd.f32 %v1258_v6, %v3138_v42  ;;  %v1260_v41 = vpop.f32.mrb[34].mxu0  ;;  %v3429_v49 = vadd.f32 %v1451_v62, %v3142_v46  ;;  %v1453_v52 = vpop.f32.mrb[34].mxu1 }
 0x1da   : > { %4269 = vst [vmem:[#allocation35_spill] sm:$0xff] %v3420_v5  ;;  %4270 = vst [vmem:[#allocation36_spill] sm:$0xff] %v3423_v24  ;;  %v3432_v58 = vadd.f32 %v1260_v41, %v3131_v17  ;;  %v1262_v51 = vpop.f32.mrb[35].mxu0  ;;  %v3437_v19 = vadd.f32 %v1453_v52, %v3135_v22  ;;  %v1455_v6 = vpop.f32.mrb[35].mxu1 }
 0x1db   : > { %4271 = vst [vmem:[#allocation37_spill] sm:$0xff] %v3426_v11  ;;  %4272 = vst [vmem:[#allocation38_spill] sm:$0xff] %v3429_v49  ;;  %v3440_v1 = vadd.f32 %v1262_v51, %v3138_v42  ;;  %v3445_v62 = vadd.f32 %v1455_v6, %v3142_v46 }
 0x1dc   : > { %4273 = vst [vmem:[#allocation39_spill] sm:$0xff] %v3432_v58  ;;  %4274 = vst [vmem:[#allocation40_spill] sm:$0xff] %v3437_v19 }
 0x1dd   : > { %4275 = vst [vmem:[#allocation41_spill] sm:$0xff] %v3440_v1  ;;  %4276 = vst [vmem:[#allocation42_spill] sm:$0xff] %v3445_v62 }
 0x1df   : > { %v1266_v27 = vpop.f32.mrb[36].mxu0  ;;  %v1459_v24 = vpop.f32.mrb[36].mxu1 }
 0x1e0   : > { %v3452_v52 = vadd.f32 %v1266_v27, %v3131_v17  ;;  %v1268_v51 = vpop.f32.mrb[37].mxu0  ;;  %v3455_v5 = vadd.f32 %v1459_v24, %v3135_v22  ;;  %v1461_v6 = vpop.f32.mrb[37].mxu1 }
 0x1e1   : > { %v3458_v23 = vadd.f32 %v1268_v51, %v3138_v42  ;;  %v1270_v49 = vpop.f32.mrb[38].mxu0  ;;  %v3461_v11 = vadd.f32 %v1461_v6, %v3142_v46  ;;  %v1463_v13 = vpop.f32.mrb[38].mxu1 }
 0x1e2   : > { %4277 = vst [vmem:[#allocation43_spill] sm:$0xff] %v3452_v52  ;;  %4278 = vst [vmem:[#allocation44_spill] sm:$0xff] %v3455_v5  ;;  %v3464_v41 = vadd.f32 %v1270_v49, %v3131_v17  ;;  %v1272_v62 = vpop.f32.mrb[39].mxu0  ;;  %v3469_v1 = vadd.f32 %v1463_v13, %v3135_v22  ;;  %v1465_v51 = vpop.f32.mrb[39].mxu1 }
 0x1e3   : > { %4279 = vst [vmem:[#allocation45_spill] sm:$0xff] %v3458_v23  ;;  %4280 = vst [vmem:[#allocation46_spill] sm:$0xff] %v3461_v11  ;;  %v3472_v24 = vadd.f32 %v1272_v62, %v3138_v42  ;;  %v3477_v6 = vadd.f32 %v1465_v51, %v3142_v46 }
 0x1e4   : > { %4281 = vst [vmem:[#allocation47_spill] sm:$0xff] %v3464_v41  ;;  %4282 = vst [vmem:[#allocation48_spill] sm:$0xff] %v3469_v1 }
 0x1e5   : > { %4283 = vst [vmem:[#allocation49_spill] sm:$0xff] %v3472_v24  ;;  %4284 = vst [vmem:[#allocation50_spill] sm:$0xff] %v3477_v6 }
 0x1e7   : > { %v1276_v27 = vpop.f32.mrb[40].mxu0  ;;  %v1469_v5 = vpop.f32.mrb[40].mxu1 }
 0x1e8   : > { %v3484_v13 = vadd.f32 %v1276_v27, %v3131_v17  ;;  %v1278_v62 = vpop.f32.mrb[41].mxu0  ;;  %v3487_v52 = vadd.f32 %v1469_v5, %v3135_v22  ;;  %v1471_v51 = vpop.f32.mrb[41].mxu1 }
 0x1e9   : > { %v3490_v19 = vadd.f32 %v1278_v62, %v3138_v42  ;;  %v1280_v11 = vpop.f32.mrb[42].mxu0  ;;  %v3493_v23 = vadd.f32 %v1471_v51, %v3142_v46  ;;  %v1473_v58 = vpop.f32.mrb[42].mxu1 }
 0x1ea   : > { %4285 = vst [vmem:[#allocation51_spill] sm:$0xff] %v3484_v13  ;;  %4286 = vst [vmem:[#allocation52_spill] sm:$0xff] %v3487_v52  ;;  %v3496_v49 = vadd.f32 %v1280_v11, %v3131_v17  ;;  %v1282_v6 = vpop.f32.mrb[43].mxu0  ;;  %v3501_v24 = vadd.f32 %v1473_v58, %v3135_v22  ;;  %v1475_v62 = vpop.f32.mrb[43].mxu1 }
 0x1eb   : > { %4287 = vst [vmem:[#allocation53_spill] sm:$0xff] %v3490_v19  ;;  %4288 = vst [vmem:[#allocation54_spill] sm:$0xff] %v3493_v23  ;;  %v3504_v5 = vadd.f32 %v1282_v6, %v3138_v42  ;;  %v3509_v51 = vadd.f32 %v1475_v62, %v3142_v46 }
 0x1ec   : > { %4289 = vst [vmem:[#allocation55_spill] sm:$0xff] %v3496_v49  ;;  %4290 = vst [vmem:[#allocation56_spill] sm:$0xff] %v3501_v24 }
 0x1ed   : > { %4291 = vst [vmem:[#allocation57_spill] sm:$0xff] %v3504_v5  ;;  %4292 = vst [vmem:[#allocation58_spill] sm:$0xff] %v3509_v51 }
 0x1ef   : > { %v1286_v27 = vpop.f32.mrb[44].mxu0  ;;  %v1479_v52 = vpop.f32.mrb[44].mxu1 }
 0x1f0   : > { %v3516_v58 = vadd.f32 %v1286_v27, %v3131_v17  ;;  %v1288_v6 = vpop.f32.mrb[45].mxu0  ;;  %v3519_v13 = vadd.f32 %v1479_v52, %v3135_v22  ;;  %v1481_v62 = vpop.f32.mrb[45].mxu1 }
 0x1f1   : > { %v3522_v1 = vadd.f32 %v1288_v6, %v3138_v42  ;;  %v1290_v23 = vpop.f32.mrb[46].mxu0  ;;  %v3525_v19 = vadd.f32 %v1481_v62, %v3142_v46  ;;  %v1483_v41 = vpop.f32.mrb[46].mxu1 }
 0x1f2   : > { %4293 = vst [vmem:[#allocation59_spill] sm:$0xff] %v3516_v58  ;;  %4294 = vst [vmem:[#allocation60_spill] sm:$0xff] %v3519_v13  ;;  %v3528_v11 = vadd.f32 %v1290_v23, %v3131_v17  ;;  %v1292_v51 = vpop.f32.mrb[47].mxu0  ;;  %v3533_v5 = vadd.f32 %v1483_v41, %v3135_v22  ;;  %v1485_v6 = vpop.f32.mrb[47].mxu1 }
 0x1f3   : > { %4295 = vst [vmem:[#allocation61_spill] sm:$0xff] %v3522_v1  ;;  %4296 = vst [vmem:[#allocation62_spill] sm:$0xff] %v3525_v19  ;;  %v3536_v52 = vadd.f32 %v1292_v51, %v3138_v42  ;;  %v3541_v62 = vadd.f32 %v1485_v6, %v3142_v46 }
 0x1f4   : > { %4297 = vst [vmem:[#allocation63_spill] sm:$0xff] %v3528_v11  ;;  %4298 = vst [vmem:[#allocation64_spill] sm:$0xff] %v3533_v5 }
 0x1f5   : > { %4299 = vst [vmem:[#allocation65_spill] sm:$0xff] %v3536_v52  ;;  %4300 = vst [vmem:[#allocation66_spill] sm:$0xff] %v3541_v62 }
 0x1f7   : > { %v1296_v27 = vpop.f32.mrb[48].mxu0  ;;  %v1489_v13 = vpop.f32.mrb[48].mxu1 }
 0x1f8   : > { %v3548_v41 = vadd.f32 %v1296_v27, %v3131_v17  ;;  %v1298_v51 = vpop.f32.mrb[49].mxu0  ;;  %v3551_v58 = vadd.f32 %v1489_v13, %v3135_v22  ;;  %v1491_v6 = vpop.f32.mrb[49].mxu1 }
 0x1f9   : > { %v3554_v24 = vadd.f32 %v1298_v51, %v3138_v42  ;;  %v1300_v19 = vpop.f32.mrb[50].mxu0  ;;  %v3557_v1 = vadd.f32 %v1491_v6, %v3142_v46  ;;  %v1493_v49 = vpop.f32.mrb[50].mxu1 }
 0x1fa   : > { %4301 = vst [vmem:[#allocation67_spill] sm:$0xff] %v3548_v41  ;;  %4302 = vst [vmem:[#allocation68_spill] sm:$0xff] %v3551_v58  ;;  %v3560_v23 = vadd.f32 %v1300_v19, %v3131_v17  ;;  %v1302_v62 = vpop.f32.mrb[51].mxu0  ;;  %v3565_v52 = vadd.f32 %v1493_v49, %v3135_v22  ;;  %v1495_v51 = vpop.f32.mrb[51].mxu1 }
 0x1fb   : > { %4303 = vst [vmem:[#allocation69_spill] sm:$0xff] %v3554_v24  ;;  %4304 = vst [vmem:[#allocation70_spill] sm:$0xff] %v3557_v1  ;;  %v3568_v13 = vadd.f32 %v1302_v62, %v3138_v42  ;;  %v3573_v6 = vadd.f32 %v1495_v51, %v3142_v46 }
 0x1fc   : > { %4305 = vst [vmem:[#allocation71_spill] sm:$0xff] %v3560_v23  ;;  %4306 = vst [vmem:[#allocation72_spill] sm:$0xff] %v3565_v52 }
 0x1fd   : > { %4307 = vst [vmem:[#allocation73_spill] sm:$0xff] %v3568_v13  ;;  %4308 = vst [vmem:[#allocation74_spill] sm:$0xff] %v3573_v6 }
 0x1ff   : > { %v1306_v27 = vpop.f32.mrb[52].mxu0  ;;  %v1499_v58 = vpop.f32.mrb[52].mxu1 }
 0x200   : > { %v3580_v49 = vadd.f32 %v1306_v27, %v3131_v17  ;;  %v1308_v62 = vpop.f32.mrb[53].mxu0  ;;  %v3583_v41 = vadd.f32 %v1499_v58, %v3135_v22  ;;  %v1501_v51 = vpop.f32.mrb[53].mxu1 }
 0x201   : > { %v3586_v5 = vadd.f32 %v1308_v62, %v3138_v42  ;;  %v1310_v1 = vpop.f32.mrb[54].mxu0  ;;  %v3589_v24 = vadd.f32 %v1501_v51, %v3142_v46  ;;  %v1503_v11 = vpop.f32.mrb[54].mxu1 }
 0x202   : > { %4309 = vst [vmem:[#allocation75_spill] sm:$0xff] %v3580_v49  ;;  %4310 = vst [vmem:[#allocation76_spill] sm:$0xff] %v3583_v41  ;;  %v3592_v19 = vadd.f32 %v1310_v1, %v3131_v17  ;;  %v1312_v6 = vpop.f32.mrb[55].mxu0  ;;  %v3597_v13 = vadd.f32 %v1503_v11, %v3135_v22  ;;  %v1505_v62 = vpop.f32.mrb[55].mxu1 }
 0x203   : > { %4311 = vst [vmem:[#allocation77_spill] sm:$0xff] %v3586_v5  ;;  %4312 = vst [vmem:[#allocation78_spill] sm:$0xff] %v3589_v24  ;;  %v3600_v58 = vadd.f32 %v1312_v6, %v3138_v42  ;;  %v3605_v51 = vadd.f32 %v1505_v62, %v3142_v46 }
 0x204   : > { %4313 = vst [vmem:[#allocation79_spill] sm:$0xff] %v3592_v19  ;;  %4314 = vst [vmem:[#allocation80_spill] sm:$0xff] %v3597_v13  ;;  %v484_v19 = vsub.s32 5, %v3118_v14 }
 0x205   : > { %4315 = vst [vmem:[#allocation81_spill] sm:$0xff] %v3600_v58  ;;  %4316 = vst [vmem:[#allocation82_spill] sm:$0xff] %v3605_v51 }
 0x207   : > { %v1316_v27 = vpop.f32.mrb[56].mxu0  ;;  %v1509_v41 = vpop.f32.mrb[56].mxu1 }
 0x208   : > { %v3612_v11 = vadd.f32 %v1316_v27, %v3131_v17  ;;  %v1318_v6 = vpop.f32.mrb[57].mxu0  ;;  %v3615_v49 = vadd.f32 %v1509_v41, %v3135_v22  ;;  %v1511_v62 = vpop.f32.mrb[57].mxu1 }
 0x209   : > { %v3618_v52 = vadd.f32 %v1318_v6, %v3138_v42  ;;  %v1320_v24 = vpop.f32.mrb[58].mxu0  ;;  %v3621_v5 = vadd.f32 %v1511_v62, %v3142_v46  ;;  %v1513_v23 = vpop.f32.mrb[58].mxu1 }
 0x20a   : > { %4317 = vst [vmem:[#allocation83_spill] sm:$0xff] %v3612_v11  ;;  %4318 = vst [vmem:[#allocation84_spill] sm:$0xff] %v3615_v49  ;;  %v3624_v1 = vadd.f32 %v1320_v24, %v3131_v17  ;;  %v1322_v51 = vpop.f32.mrb[59].mxu0  ;;  %v3629_v58 = vadd.f32 %v1513_v23, %v3135_v22  ;;  %v1515_v6 = vpop.f32.mrb[59].mxu1  ;;  %v480_v11 = vsub.s32 4, %v3118_v14  ;;  %v488_v24 = vsub.s32 6, %v3118_v14 }
 0x20b   : > { %4319 = vst [vmem:[#allocation85_spill] sm:$0xff] %v3618_v52  ;;  %4320 = vst [vmem:[#allocation86_spill] sm:$0xff] %v3621_v5  ;;  %v3632_v41 = vadd.f32 %v1322_v51, %v3138_v42  ;;  %v3637_v62 = vadd.f32 %v1515_v6, %v3142_v46 }
 0x20c   : > { %4321 = vst [vmem:[#allocation87_spill] sm:$0xff] %v3624_v1  ;;  %4322 = vst [vmem:[#allocation88_spill] sm:$0xff] %v3629_v58 }
 0x20d   : > { %4323 = vst [vmem:[#allocation89_spill] sm:$0xff] %v3632_v41  ;;  %4324 = vst [vmem:[#allocation90_spill] sm:$0xff] %v3637_v62 }
 0x20f   : > { %v1326_v27 = vpop.f32.mrb[60].mxu0  ;;  %v1519_v49 = vpop.f32.mrb[60].mxu1 }
 0x210   : > { %v3644_v23 = vadd.f32 %v1326_v27, %v3131_v17  ;;  %v1328_v51 = vpop.f32.mrb[61].mxu0  ;;  %v3648_v38 = vadd.f32 %v1519_v49, %v3135_v22  ;;  %v1521_v13 = vpop.f32.mrb[61].mxu1  ;;  %v492_v49 = vsub.s32 7, %v3118_v14 }
 0x211   : > { %v3651_v6 = vadd.f32 %v1328_v51, %v3138_v42  ;;  %v1330_v5 = vpop.f32.mrb[62].mxu0  ;;  %v3656_v62 = vadd.f32 %v1521_v13, %v3142_v46  ;;  %v1523_v41 = vpop.f32.mrb[62].mxu1  ;;  %v3681_v51 = vrot.slane %v3124_v36, %v488_v24 }
 0x212   : > { %4325 = vst [vmem:[#allocation91_spill] sm:$0xff] %v3648_v38  ;;  %v3659_v27 = vadd.f32 %v1330_v5, %v3131_v17  ;;  %v1332_v58 = vpop.f32.mrb[63].mxu0  ;;  %v3665_v1 = vadd.f32 %v1523_v41, %v3135_v22  ;;  %v1525_v12 = vpop.f32.mrb[63].mxu1  ;;  %v3676_v5 = vrot.slane %v3124_v36, %v480_v11  ;;  %v3684_v22 = vrot.slane %v3124_v36, %v484_v19 }
 0x213   : > { %4326 = vst [vmem:[#allocation92_spill] sm:$0xff] %v3651_v6  ;;  %4327 = vst [vmem:[#allocation93_spill] sm:$0xff] %v3656_v62  ;;  %v3668_v52 = vadd.f32 %v1332_v58, %v3138_v42  ;;  %v3673_v17 = vadd.f32 %v1525_v12, %v3142_v46  ;;  %v3689_v58 = vrot.slane %v3124_v36, %v492_v49 }
 0x214   : > { %4328 = vst [vmem:[#allocation94_spill] sm:$0xff] %v3659_v27  ;;  %4329 = vst [vmem:[#allocation95_spill] sm:$0xff] %v3665_v1  ;;  %v4332_v19 = vmax.f32 %v3146_v7, %v3149_v55  ;;  %v4334_v6 = vmax.f32 %v3158_v10, %v3163_v15 }
 0x215   : > { %4330 = vst [vmem:[#allocation96_spill] sm:$0xff] %v3668_v52  ;;  %4331 = vst [vmem:[#allocation97_spill] sm:$0xff] %v3673_v17 }
 0x217   : > { %v1562_v46 = vpop.f32.mrb[64].mxu0  ;;  %v1755_v11 = vpop.f32.mrb[64].mxu1 }
 0x218   : > { %v1563_v12 = vadd.f32 %v1562_v46, %v3676_v5  ;;  %v1564_v41 = vpop.f32.mrb[65].mxu0  ;;  %v1756_v13 = vadd.f32 %v1755_v11, %v3681_v51  ;;  %v1757_v24 = vpop.f32.mrb[65].mxu1  ;;  %v4333_v46 = vmax.f32 %v3152_v61, %v3155_v9 }
 0x219   : > { %v1565_v14 = vadd.f32 %v1564_v41, %v3684_v22  ;;  %v1566_v1 = vpop.f32.mrb[66].mxu0  ;;  %v1758_v42 = vadd.f32 %v1757_v24, %v3689_v58  ;;  %v1759_v49 = vpop.f32.mrb[66].mxu1 }
 0x21a   : > { %v1978_v27 = vmax.f32 %v4332_v19, %v1563_v12  ;;  %v1567_v36 = vadd.f32 %v1566_v1, %v3676_v5  ;;  %v1568_v17 = vpop.f32.mrb[67].mxu0  ;;  %v1761_v41 = vpop.f32.mrb[67].mxu1  ;;  %v1760_v7 = vadd.f32 %v1759_v49, %v3681_v51  ;;  %v4335_v1 = vmax.f32 %v3166_v16, %v3171_v20 }
 0x21b   : > { %v1979_v52 = vmax.f32 %v4333_v46, %v1565_v14  ;;  %v1569_v11 = vadd.f32 %v1568_v17, %v3684_v22  ;;  %v1762_v24 = vadd.f32 %v1761_v41, %v3689_v58 }
 0x21c   : > { %v2042_v62 = vmax.f32 %v1978_v27, %v1756_v13  ;;  %v1980_v38 = vmax.f32 %v4334_v6, %v1567_v36  ;;  %v4337_v36 = vmax.f32 %v3188_v31, %v3191_v35 }
 0x21d   : > { %v2043_v55 = vmax.f32 %v1979_v52, %v1758_v42  ;;  %v1981_v12 = vmax.f32 %v4335_v1, %v1569_v11  ;;  %v4339_v1 = vmax.f32 %v3202_v44, %v3207_v50  ;;  %v4340_v50 = vmax.f32 %v3218_v59, %v3221_v2 }
 0x21e   : > { %2106 = vst [vmem:[%s3713_s23] sm:$0xff] %v2042_v62  ;;  %v2044_v61 = vmax.f32 %v1980_v38, %v1760_v7  ;;  %v4336_v62 = vmax.f32 %v3182_v26, %v3185_v30  ;;  %v4338_v26 = vmax.f32 %v3194_v37, %v3199_v43  ;;  %v4342_v59 = vmax.f32 %v3230_v39, %v3235_v3 }
 0x21f   : > { %2107 = vst [vmem:[%s3713_s23 + $0x8] sm:$0xff] %v2043_v55  ;;  %v2045_v9 = vmax.f32 %v1981_v12, %v1762_v24  ;;  %v1572_v10 = vpop.f32.mrb[68].mxu0  ;;  %v1765_v52 = vpop.f32.mrb[68].mxu1 }
 0x220   : > { %2108 = vst [vmem:[%s3713_s23 + $0x10] sm:$0xff] %v2044_v61  ;;  %v1573_v15 = vadd.f32 %v1572_v10, %v3676_v5  ;;  %v1574_v16 = vpop.f32.mrb[69].mxu0  ;;  %v1766_v20 = vadd.f32 %v1765_v52, %v3681_v51  ;;  %v1767_v27 = vpop.f32.mrb[69].mxu1 }
 0x221   : > { %2109 = vst [vmem:[%s3713_s23 + $0x18] sm:$0xff] %v2045_v9  ;;  %v1575_v6 = vadd.f32 %v1574_v16, %v3684_v22  ;;  %v1576_v13 = vpop.f32.mrb[70].mxu0  ;;  %v1768_v17 = vadd.f32 %v1767_v27, %v3689_v58  ;;  %v1769_v42 = vpop.f32.mrb[70].mxu1 }
 0x222   : > { %v1982_v38 = vmax.f32 %v4336_v62, %v1573_v15  ;;  %v1577_v14 = vadd.f32 %v1576_v13, %v3676_v5  ;;  %v1578_v19 = vpop.f32.mrb[71].mxu0  ;;  %v1771_v11 = vpop.f32.mrb[71].mxu1  ;;  %v1770_v7 = vadd.f32 %v1769_v42, %v3681_v51  ;;  %v4341_v62 = vmax.f32 %v3224_v4, %v3227_v21 }
 0x223   : > { %v1983_v49 = vmax.f32 %v4337_v36, %v1575_v6  ;;  %v1579_v46 = vadd.f32 %v1578_v19, %v3684_v22  ;;  %v1772_v24 = vadd.f32 %v1771_v11, %v3689_v58 }
 0x224   : > { %v2046_v41 = vmax.f32 %v1982_v38, %v1766_v20  ;;  %v1984_v30 = vmax.f32 %v4338_v26, %v1577_v14 }
 0x225   : > { %v2047_v55 = vmax.f32 %v1983_v49, %v1768_v17  ;;  %v1985_v12 = vmax.f32 %v4339_v1, %v1579_v46  ;;  %v4343_v49 = vmax.f32 %v3238_v29, %v3243_v8  ;;  %v4344_v8 = vmax.f32 %v3254_v25, %v3257_v32 }
 0x226   : > { %2110 = vst [vmem:[%s3713_s23 + $0x20] sm:$0xff] %v2046_v41  ;;  %v2048_v31 = vmax.f32 %v1984_v30, %v1770_v7  ;;  %v4346_v25 = vmax.f32 %v3266_v45, %v3271_v63 }
 0x227   : > { %2111 = vst [vmem:[%s3713_s23 + $0x28] sm:$0xff] %v2047_v55  ;;  %v2049_v35 = vmax.f32 %v1985_v12, %v1772_v24  ;;  %v1582_v61 = vpop.f32.mrb[72].mxu0  ;;  %v1775_v10 = vpop.f32.mrb[72].mxu1 }
 0x228   : > { %2112 = vst [vmem:[%s3713_s23 + $0x30] sm:$0xff] %v2048_v31  ;;  %v1583_v9 = vadd.f32 %v1582_v61, %v3676_v5  ;;  %v1584_v37 = vpop.f32.mrb[73].mxu0  ;;  %v1776_v43 = vadd.f32 %v1775_v10, %v3681_v51  ;;  %v1777_v52 = vpop.f32.mrb[73].mxu1  ;;  %v4345_v61 = vmax.f32 %v3260_v34, %v3263_v40 }
 0x229   : > { %2113 = vst [vmem:[%s3713_s23 + $0x38] sm:$0xff] %v2049_v35  ;;  %v1585_v15 = vadd.f32 %v1584_v37, %v3684_v22  ;;  %v1586_v44 = vpop.f32.mrb[74].mxu0  ;;  %v1778_v20 = vadd.f32 %v1777_v52, %v3689_v58  ;;  %v1779_v27 = vpop.f32.mrb[74].mxu1 }
 0x22a   : > { %v1986_v16 = vmax.f32 %v4340_v50, %v1583_v9  ;;  %v1587_v6 = vadd.f32 %v1586_v44, %v3676_v5  ;;  %v1588_v13 = vpop.f32.mrb[75].mxu0  ;;  %v1781_v14 = vpop.f32.mrb[75].mxu1  ;;  %v1780_v19 = vadd.f32 %v1779_v27, %v3681_v51  ;;  %v4347_v44 = vmax.f32 %v3274_v47, %v3279_v57 }
 0x22b   : > { %v1987_v38 = vmax.f32 %v4341_v62, %v1585_v15  ;;  %v1589_v17 = vadd.f32 %v1588_v13, %v3684_v22  ;;  %v1782_v11 = vadd.f32 %v1781_v14, %v3689_v58  ;;  %v4348_v57 = vmax.f32 %v3290_v28, %v3293_v54 }
 0x22c   : > { %v2050_v42 = vmax.f32 %v1986_v16, %v1776_v43  ;;  %v1988_v2 = vmax.f32 %v4342_v59, %v1587_v6  ;;  %v4350_v28 = vmax.f32 %v3302_v18, %v3307_v60 }
 0x22d   : > { %v2051_v36 = vmax.f32 %v1987_v38, %v1778_v20  ;;  %v1989_v46 = vmax.f32 %v4343_v49, %v1589_v17 }
 0x22e   : > { %2114 = vst [vmem:[%s3713_s23 + $0x40] sm:$0xff] %v2050_v42  ;;  %v2052_v4 = vmax.f32 %v1988_v2, %v1780_v19  ;;  %v4349_v2 = vmax.f32 %v3296_v56, %v3299_v33 }
 0x22f   : > { %2115 = vst [vmem:[%s3713_s23 + $0x48] sm:$0xff] %v2051_v36  ;;  %v2053_v21 = vmax.f32 %v1989_v46, %v1782_v11  ;;  %v1592_v41 = vpop.f32.mrb[76].mxu0  ;;  %v1785_v30 = vpop.f32.mrb[76].mxu1 }
 0x230   : > { %2116 = vst [vmem:[%s3713_s23 + $0x50] sm:$0xff] %v2052_v4  ;;  %v1593_v26 = vadd.f32 %v1592_v41, %v3676_v5  ;;  %v1594_v39 = vpop.f32.mrb[77].mxu0  ;;  %v1786_v3 = vadd.f32 %v1785_v30, %v3681_v51  ;;  %v1787_v55 = vpop.f32.mrb[77].mxu1 }
 0x231   : > { %2117 = vst [vmem:[%s3713_s23 + $0x58] sm:$0xff] %v2053_v21  ;;  %v1595_v7 = vadd.f32 %v1594_v39, %v3684_v22  ;;  %v1596_v29 = vpop.f32.mrb[78].mxu0  ;;  %v1788_v12 = vadd.f32 %v1787_v55, %v3689_v58  ;;  %v1789_v31 = vpop.f32.mrb[78].mxu1  ;;  %v4351_v21 = vmax.f32 %v3310_v53, %v3315_v0  ;;  %v4352_v0 = vld [vmem:[#allocation12_spill] sm:$0xff] }
 0x232   : > { %v1990_v1 = vmax.f32 %v4344_v8, %v1593_v26  ;;  %v1597_v24 = vadd.f32 %v1596_v29, %v3676_v5  ;;  %v1598_v35 = vpop.f32.mrb[79].mxu0  ;;  %v1791_v37 = vpop.f32.mrb[79].mxu1  ;;  %v1790_v15 = vadd.f32 %v1789_v31, %v3681_v51  ;;  %v4353_v29 = vmax.f32 %v3324_v48, %v4352_v0  ;;  %v4358_v48 = vld [vmem:[#allocation16_spill] sm:$0xff] }
 0x233   : > { %v1991_v9 = vmax.f32 %v4345_v61, %v1595_v7  ;;  %v1599_v10 = vadd.f32 %v1598_v35, %v3684_v22  ;;  %v1792_v16 = vadd.f32 %v1791_v37, %v3689_v58  ;;  %v4354_v35 = vld [vmem:[#allocation13_spill] sm:$0xff]  ;;  %v4355_v61 = vld [vmem:[#allocation14_spill] sm:$0xff] }
 0x234   : > { %v2054_v43 = vmax.f32 %v1990_v1, %v1786_v3  ;;  %v1992_v32 = vmax.f32 %v4346_v25, %v1597_v24 }
 0x235   : > { %v2055_v52 = vmax.f32 %v1991_v9, %v1788_v12  ;;  %v1993_v50 = vmax.f32 %v4347_v44, %v1599_v10  ;;  %v4356_v9 = vmax.f32 %v4354_v35, %v4355_v61 }
 0x236   : > { %2118 = vst [vmem:[%s3713_s23 + $0x60] sm:$0xff] %v2054_v43  ;;  %v2056_v34 = vmax.f32 %v1992_v32, %v1790_v15  ;;  %v4357_v32 = vld [vmem:[#allocation15_spill] sm:$0xff] }
 0x237   : > { %2119 = vst [vmem:[%s3713_s23 + $0x68] sm:$0xff] %v2055_v52  ;;  %v2057_v40 = vmax.f32 %v1993_v50, %v1792_v16  ;;  %v1602_v20 = vpop.f32.mrb[80].mxu0  ;;  %v1795_v27 = vpop.f32.mrb[80].mxu1  ;;  %v4359_v15 = vmax.f32 %v4357_v32, %v4358_v48  ;;  %v4360_v16 = vld [vmem:[#allocation17_spill] sm:$0xff] }
 0x238   : > { %2120 = vst [vmem:[%s3713_s23 + $0x70] sm:$0xff] %v2056_v34  ;;  %v1603_v6 = vadd.f32 %v1602_v20, %v3676_v5  ;;  %v1604_v45 = vpop.f32.mrb[81].mxu0  ;;  %v1796_v63 = vadd.f32 %v1795_v27, %v3681_v51  ;;  %v1797_v62 = vpop.f32.mrb[81].mxu1  ;;  %v4361_v34 = vld [vmem:[#allocation18_spill] sm:$0xff] }
 0x239   : > { %2121 = vst [vmem:[%s3713_s23 + $0x78] sm:$0xff] %v2057_v40  ;;  %v1605_v13 = vadd.f32 %v1604_v45, %v3684_v22  ;;  %v1606_v47 = vpop.f32.mrb[82].mxu0  ;;  %v1798_v17 = vadd.f32 %v1797_v62, %v3689_v58  ;;  %v1799_v42 = vpop.f32.mrb[82].mxu1  ;;  %v4362_v40 = vmax.f32 %v4360_v16, %v4361_v34  ;;  %v4378_v16 = vld [vmem:[#allocation29_spill] sm:$0xff]  ;;  %v4379_v34 = vld [vmem:[#allocation30_spill] sm:$0xff] }
 0x23a   : > { %v1994_v38 = vmax.f32 %v4348_v57, %v1603_v6  ;;  %v1607_v14 = vadd.f32 %v1606_v47, %v3676_v5  ;;  %v1608_v59 = vpop.f32.mrb[83].mxu0  ;;  %v1801_v49 = vpop.f32.mrb[83].mxu1  ;;  %v1800_v11 = vadd.f32 %v1799_v42, %v3681_v51  ;;  %v4363_v42 = vld [vmem:[#allocation19_spill] sm:$0xff] }
 0x23b   : > { %v1995_v19 = vmax.f32 %v4349_v2, %v1605_v13  ;;  %v1609_v36 = vadd.f32 %v1608_v59, %v3684_v22  ;;  %v1802_v26 = vadd.f32 %v1801_v49, %v3689_v58  ;;  %v4364_v59 = vld [vmem:[#allocation20_spill] sm:$0xff] }
 0x23c   : > { %v2058_v46 = vmax.f32 %v1994_v38, %v1796_v63  ;;  %v1996_v54 = vmax.f32 %v4350_v28, %v1607_v14  ;;  %v4365_v2 = vmax.f32 %v4363_v42, %v4364_v59 }
 0x23d   : > { %v2059_v4 = vmax.f32 %v1995_v19, %v1798_v17  ;;  %v1997_v41 = vmax.f32 %v4351_v21, %v1609_v36 }
 0x23e   : > { %2122 = vst [vmem:[%s3713_s23 + $0x80] sm:$0xff] %v2058_v46  ;;  %v2060_v33 = vmax.f32 %v1996_v54, %v1800_v11  ;;  %v4366_v54 = vld [vmem:[#allocation21_spill] sm:$0xff]  ;;  %v4367_v11 = vld [vmem:[#allocation22_spill] sm:$0xff] }
 0x23f   : > { %2123 = vst [vmem:[%s3713_s23 + $0x88] sm:$0xff] %v2059_v4  ;;  %v2061_v56 = vmax.f32 %v1997_v41, %v1802_v26  ;;  %v1612_v30 = vpop.f32.mrb[84].mxu0  ;;  %v1805_v3 = vpop.f32.mrb[84].mxu1  ;;  %v4368_v4 = vmax.f32 %v4366_v54, %v4367_v11 }
 0x240   : > { %2124 = vst [vmem:[%s3713_s23 + $0x90] sm:$0xff] %v2060_v33  ;;  %v1613_v39 = vadd.f32 %v1612_v30, %v3676_v5  ;;  %v1614_v60 = vpop.f32.mrb[85].mxu0  ;;  %v1806_v18 = vadd.f32 %v1805_v3, %v3681_v51  ;;  %v1807_v55 = vpop.f32.mrb[85].mxu1  ;;  %v4370_v30 = vld [vmem:[#allocation24_spill] sm:$0xff] }
 0x241   : > { %2125 = vst [vmem:[%s3713_s23 + $0x98] sm:$0xff] %v2061_v56  ;;  %v1615_v7 = vadd.f32 %v1614_v60, %v3684_v22  ;;  %v1616_v53 = vpop.f32.mrb[86].mxu0  ;;  %v1808_v1 = vadd.f32 %v1807_v55, %v3689_v58  ;;  %v1809_v24 = vpop.f32.mrb[86].mxu1  ;;  %v4369_v56 = vld [vmem:[#allocation23_spill] sm:$0xff]  ;;  %v4373_v55 = vld [vmem:[#allocation26_spill] sm:$0xff] }
 0x242   : > { %v1998_v8 = vmax.f32 %v4353_v29, %v1613_v39  ;;  %v1617_v12 = vadd.f32 %v1616_v53, %v3676_v5  ;;  %v1618_v31 = vpop.f32.mrb[87].mxu0  ;;  %v1811_v43 = vpop.f32.mrb[87].mxu1  ;;  %v1810_v44 = vadd.f32 %v1809_v24, %v3681_v51  ;;  %v4371_v39 = vmax.f32 %v4369_v56, %v4370_v30 }
 0x243   : > { %v1999_v10 = vmax.f32 %v4356_v9, %v1615_v7  ;;  %v1619_v37 = vadd.f32 %v1618_v31, %v3684_v22  ;;  %v1812_v6 = vadd.f32 %v1811_v43, %v3689_v58  ;;  %v4372_v7 = vld [vmem:[#allocation25_spill] sm:$0xff]  ;;  %v4375_v43 = vld [vmem:[#allocation27_spill] sm:$0xff] }
 0x244   : > { %v2062_v25 = vmax.f32 %v1998_v8, %v1806_v18  ;;  %v2000_v52 = vmax.f32 %v4359_v15, %v1617_v12  ;;  %v4374_v53 = vmax.f32 %v4372_v7, %v4373_v55  ;;  %v4390_v7 = vld [vmem:[#allocation37_spill] sm:$0xff]  ;;  %v4391_v55 = vld [vmem:[#allocation38_spill] sm:$0xff] }
 0x245   : > { %v2063_v50 = vmax.f32 %v1999_v10, %v1808_v1  ;;  %v2001_v20 = vmax.f32 %v4362_v40, %v1619_v37  ;;  %v4380_v40 = vmax.f32 %v4378_v16, %v4379_v34 }
 0x246   : > { %2126 = vst [vmem:[%s3713_s23 + $0xa0] sm:$0xff] %v2062_v25  ;;  %v2064_v27 = vmax.f32 %v2000_v52, %v1810_v44  ;;  %v4376_v25 = vld [vmem:[#allocation28_spill] sm:$0xff] }
 0x247   : > { %2127 = vst [vmem:[%s3713_s23 + $0xa8] sm:$0xff] %v2063_v50  ;;  %v2065_v45 = vmax.f32 %v2001_v20, %v1812_v6  ;;  %v1622_v63 = vpop.f32.mrb[88].mxu0  ;;  %v1815_v62 = vpop.f32.mrb[88].mxu1  ;;  %v4377_v32 = vmax.f32 %v4375_v43, %v4376_v25 }
 0x248   : > { %2128 = vst [vmem:[%s3713_s23 + $0xb0] sm:$0xff] %v2064_v27  ;;  %v1623_v13 = vadd.f32 %v1622_v63, %v3676_v5  ;;  %v1624_v47 = vpop.f32.mrb[89].mxu0  ;;  %v1816_v57 = vadd.f32 %v1815_v62, %v3681_v51  ;;  %v1817_v17 = vpop.f32.mrb[89].mxu1  ;;  %v4381_v63 = vld [vmem:[#allocation31_spill] sm:$0xff] }
 0x249   : > { %2129 = vst [vmem:[%s3713_s23 + $0xb8] sm:$0xff] %v2065_v45  ;;  %v1625_v38 = vadd.f32 %v1624_v47, %v3684_v22  ;;  %v1626_v14 = vpop.f32.mrb[90].mxu0  ;;  %v1818_v36 = vadd.f32 %v1817_v17, %v3689_v58  ;;  %v1819_v46 = vpop.f32.mrb[90].mxu1  ;;  %v4384_v17 = vld [vmem:[#allocation33_spill] sm:$0xff] }
 0x24a   : > { %v2002_v19 = vmax.f32 %v4365_v2, %v1623_v13  ;;  %v1627_v49 = vadd.f32 %v1626_v14, %v3676_v5  ;;  %v1628_v28 = vpop.f32.mrb[91].mxu0  ;;  %v1821_v26 = vpop.f32.mrb[91].mxu1  ;;  %v1820_v60 = vadd.f32 %v1819_v46, %v3681_v51  ;;  %v4382_v13 = vld [vmem:[#allocation32_spill] sm:$0xff]  ;;  %v4385_v14 = vld [vmem:[#allocation34_spill] sm:$0xff] }
 0x24b   : > { %v2003_v21 = vmax.f32 %v4368_v4, %v1625_v38  ;;  %v1629_v41 = vadd.f32 %v1628_v28, %v3684_v22  ;;  %v1822_v29 = vadd.f32 %v1821_v26, %v3689_v58  ;;  %v4383_v62 = vmax.f32 %v4381_v63, %v4382_v13  ;;  %v4387_v26 = vld [vmem:[#allocation35_spill] sm:$0xff] }
 0x24c   : > { %v2066_v33 = vmax.f32 %v2002_v19, %v1816_v57  ;;  %v2004_v3 = vmax.f32 %v4371_v39, %v1627_v49  ;;  %v4386_v42 = vmax.f32 %v4384_v17, %v4385_v14  ;;  %v4402_v17 = vld [vmem:[#allocation45_spill] sm:$0xff]  ;;  %v4403_v14 = vld [vmem:[#allocation46_spill] sm:$0xff] }
 0x24d   : > { %v2067_v18 = vmax.f32 %v2003_v21, %v1818_v36  ;;  %v2005_v0 = vmax.f32 %v4374_v53, %v1629_v41  ;;  %v4392_v53 = vmax.f32 %v4390_v7, %v4391_v55 }
 0x24e   : > { %2130 = vst [vmem:[%s3713_s23 + $0xc0] sm:$0xff] %v2066_v33  ;;  %v2068_v8 = vmax.f32 %v2004_v3, %v1820_v60  ;;  %v4388_v33 = vld [vmem:[#allocation36_spill] sm:$0xff] }
 0x24f   : > { %2131 = vst [vmem:[%s3713_s23 + $0xc8] sm:$0xff] %v2067_v18  ;;  %v2069_v1 = vmax.f32 %v2005_v0, %v1822_v29  ;;  %v1632_v12 = vpop.f32.mrb[92].mxu0  ;;  %v1825_v31 = vpop.f32.mrb[92].mxu1  ;;  %v4389_v56 = vmax.f32 %v4387_v26, %v4388_v33 }
 0x250   : > { %2132 = vst [vmem:[%s3713_s23 + $0xd0] sm:$0xff] %v2068_v8  ;;  %v1633_v24 = vadd.f32 %v1632_v12, %v3676_v5  ;;  %v1634_v35 = vpop.f32.mrb[93].mxu0  ;;  %v1826_v61 = vadd.f32 %v1825_v31, %v3681_v51  ;;  %v1827_v10 = vpop.f32.mrb[93].mxu1  ;;  %v4393_v12 = vld [vmem:[#allocation39_spill] sm:$0xff] }
 0x251   : > { %2133 = vst [vmem:[%s3713_s23 + $0xd8] sm:$0xff] %v2069_v1  ;;  %v1635_v9 = vadd.f32 %v1634_v35, %v3684_v22  ;;  %v1636_v37 = vpop.f32.mrb[94].mxu0  ;;  %v1828_v15 = vadd.f32 %v1827_v10, %v3689_v58  ;;  %v1829_v44 = vpop.f32.mrb[94].mxu1  ;;  %v4396_v10 = vld [vmem:[#allocation41_spill] sm:$0xff] }
 0x252   : > { %v2006_v48 = vmax.f32 %v4377_v32, %v1633_v24  ;;  %v1637_v52 = vadd.f32 %v1636_v37, %v3676_v5  ;;  %v1638_v50 = vpop.f32.mrb[95].mxu0  ;;  %v1831_v27 = vpop.f32.mrb[95].mxu1  ;;  %v1830_v57 = vadd.f32 %v1829_v44, %v3681_v51  ;;  %v4394_v24 = vld [vmem:[#allocation40_spill] sm:$0xff]  ;;  %v4397_v37 = vld [vmem:[#allocation42_spill] sm:$0xff] }
 0x253   : > { %v2007_v20 = vmax.f32 %v4380_v40, %v1635_v9  ;;  %v1639_v6 = vadd.f32 %v1638_v50, %v3684_v22  ;;  %v1832_v2 = vadd.f32 %v1831_v27, %v3689_v58  ;;  %v4395_v31 = vmax.f32 %v4393_v12, %v4394_v24  ;;  %v4399_v27 = vld [vmem:[#allocation43_spill] sm:$0xff] }
 0x254   : > { %v2070_v45 = vmax.f32 %v2006_v48, %v1826_v61  ;;  %v2008_v47 = vmax.f32 %v4383_v62, %v1637_v52  ;;  %v4398_v43 = vmax.f32 %v4396_v10, %v4397_v37  ;;  %v4414_v10 = vld [vmem:[#allocation53_spill] sm:$0xff]  ;;  %v4415_v37 = vld [vmem:[#allocation54_spill] sm:$0xff] }
 0x255   : > { %v2071_v38 = vmax.f32 %v2007_v20, %v1828_v15  ;;  %v2009_v59 = vmax.f32 %v4386_v42, %v1639_v6  ;;  %v4404_v42 = vmax.f32 %v4402_v17, %v4403_v14 }
 0x256   : > { %2134 = vst [vmem:[%s3713_s23 + $0xe0] sm:$0xff] %v2070_v45  ;;  %v2072_v19 = vmax.f32 %v2008_v47, %v1830_v57  ;;  %v4400_v45 = vld [vmem:[#allocation44_spill] sm:$0xff] }
 0x257   : > { %2135 = vst [vmem:[%s3713_s23 + $0xe8] sm:$0xff] %v2071_v38  ;;  %v2073_v36 = vmax.f32 %v2009_v59, %v1832_v2  ;;  %v1642_v49 = vpop.f32.mrb[96].mxu0  ;;  %v1835_v28 = vpop.f32.mrb[96].mxu1  ;;  %v4401_v63 = vmax.f32 %v4399_v27, %v4400_v45 }
 0x258   : > { %2136 = vst [vmem:[%s3713_s23 + $0xf0] sm:$0xff] %v2072_v19  ;;  %v1643_v46 = vadd.f32 %v1642_v49, %v3676_v5  ;;  %v1644_v54 = vpop.f32.mrb[97].mxu0  ;;  %v1836_v11 = vadd.f32 %v1835_v28, %v3681_v51  ;;  %v1837_v21 = vpop.f32.mrb[97].mxu1  ;;  %v4405_v49 = vld [vmem:[#allocation47_spill] sm:$0xff] }
 0x259   : > { %2137 = vst [vmem:[%s3713_s23 + $0xf8] sm:$0xff] %v2073_v36  ;;  %v1645_v4 = vadd.f32 %v1644_v54, %v3684_v22  ;;  %v1646_v41 = vpop.f32.mrb[98].mxu0  ;;  %v1838_v39 = vadd.f32 %v1837_v21, %v3689_v58  ;;  %v1839_v60 = vpop.f32.mrb[98].mxu1  ;;  %v4408_v21 = vld [vmem:[#allocation49_spill] sm:$0xff] }
 0x25a   : > { %v2010_v30 = vmax.f32 %v4389_v56, %v1643_v46  ;;  %v1647_v3 = vadd.f32 %v1646_v41, %v3676_v5  ;;  %v1648_v18 = vpop.f32.mrb[99].mxu0  ;;  %v1841_v8 = vpop.f32.mrb[99].mxu1  ;;  %v1840_v61 = vadd.f32 %v1839_v60, %v3681_v51  ;;  %v4406_v46 = vld [vmem:[#allocation48_spill] sm:$0xff]  ;;  %v4409_v41 = vld [vmem:[#allocation50_spill] sm:$0xff] }
 0x25b   : > { %v2011_v0 = vmax.f32 %v4392_v53, %v1645_v4  ;;  %v1649_v29 = vadd.f32 %v1648_v18, %v3684_v22  ;;  %v1842_v32 = vadd.f32 %v1841_v8, %v3689_v58  ;;  %v4407_v28 = vmax.f32 %v4405_v49, %v4406_v46  ;;  %v4411_v8 = vld [vmem:[#allocation51_spill] sm:$0xff] }
 0x25c   : > { %v2074_v1 = vmax.f32 %v2010_v30, %v1836_v11  ;;  %v2012_v35 = vmax.f32 %v4395_v31, %v1647_v3  ;;  %v4410_v26 = vmax.f32 %v4408_v21, %v4409_v41  ;;  %v4426_v21 = vld [vmem:[#allocation61_spill] sm:$0xff]  ;;  %v4427_v41 = vld [vmem:[#allocation62_spill] sm:$0xff] }
 0x25d   : > { %v2075_v9 = vmax.f32 %v2011_v0, %v1838_v39  ;;  %v2013_v25 = vmax.f32 %v4398_v43, %v1649_v29  ;;  %v4416_v43 = vmax.f32 %v4414_v10, %v4415_v37 }
 0x25e   : > { %2138 = vst [vmem:[%s3713_s23 + $0x100] sm:$0xff] %v2074_v1  ;;  %v2076_v48 = vmax.f32 %v2012_v35, %v1840_v61  ;;  %v4412_v1 = vld [vmem:[#allocation52_spill] sm:$0xff] }
 0x25f   : > { %2139 = vst [vmem:[%s3713_s23 + $0x108] sm:$0xff] %v2075_v9  ;;  %v2077_v15 = vmax.f32 %v2013_v25, %v1842_v32  ;;  %v1652_v52 = vpop.f32.mrb[100].mxu0  ;;  %v1845_v50 = vpop.f32.mrb[100].mxu1  ;;  %v4413_v12 = vmax.f32 %v4411_v8, %v4412_v1 }
 0x260   : > { %2140 = vst [vmem:[%s3713_s23 + $0x110] sm:$0xff] %v2076_v48  ;;  %v1653_v44 = vadd.f32 %v1652_v52, %v3676_v5  ;;  %v1654_v16 = vpop.f32.mrb[101].mxu0  ;;  %v1846_v34 = vadd.f32 %v1845_v50, %v3681_v51  ;;  %v1847_v20 = vpop.f32.mrb[101].mxu1  ;;  %v4417_v52 = vld [vmem:[#allocation55_spill] sm:$0xff] }
 0x261   : > { %2141 = vst [vmem:[%s3713_s23 + $0x118] sm:$0xff] %v2077_v15  ;;  %v1655_v40 = vadd.f32 %v1654_v16, %v3684_v22  ;;  %v1656_v6 = vpop.f32.mrb[102].mxu0  ;;  %v1848_v62 = vadd.f32 %v1847_v20, %v3689_v58  ;;  %v1849_v57 = vpop.f32.mrb[102].mxu1  ;;  %v4420_v20 = vld [vmem:[#allocation57_spill] sm:$0xff] }
 0x262   : > { %v2014_v13 = vmax.f32 %v4401_v63, %v1653_v44  ;;  %v1657_v47 = vadd.f32 %v1656_v6, %v3676_v5  ;;  %v1658_v38 = vpop.f32.mrb[103].mxu0  ;;  %v1851_v19 = vpop.f32.mrb[103].mxu1  ;;  %v1850_v11 = vadd.f32 %v1849_v57, %v3681_v51  ;;  %v4418_v44 = vld [vmem:[#allocation56_spill] sm:$0xff]  ;;  %v4421_v6 = vld [vmem:[#allocation58_spill] sm:$0xff] }
 0x263   : > { %v2015_v59 = vmax.f32 %v4404_v42, %v1655_v40  ;;  %v1659_v2 = vadd.f32 %v1658_v38, %v3684_v22  ;;  %v1852_v56 = vadd.f32 %v1851_v19, %v3689_v58  ;;  %v4419_v50 = vmax.f32 %v4417_v52, %v4418_v44  ;;  %v4423_v19 = vld [vmem:[#allocation59_spill] sm:$0xff] }
 0x264   : > { %v2078_v36 = vmax.f32 %v2014_v13, %v1846_v34  ;;  %v2016_v54 = vmax.f32 %v4407_v28, %v1657_v47  ;;  %v4422_v27 = vmax.f32 %v4420_v20, %v4421_v6  ;;  %v4438_v20 = vld [vmem:[#allocation69_spill] sm:$0xff]  ;;  %v4439_v6 = vld [vmem:[#allocation70_spill] sm:$0xff] }
 0x265   : > { %v2079_v4 = vmax.f32 %v2015_v59, %v1848_v62  ;;  %v2017_v33 = vmax.f32 %v4410_v26, %v1659_v2  ;;  %v4428_v26 = vmax.f32 %v4426_v21, %v4427_v41 }
 0x266   : > { %2142 = vst [vmem:[%s3713_s23 + $0x120] sm:$0xff] %v2078_v36  ;;  %v2080_v30 = vmax.f32 %v2016_v54, %v1850_v11  ;;  %v4424_v36 = vld [vmem:[#allocation60_spill] sm:$0xff] }
 0x267   : > { %2143 = vst [vmem:[%s3713_s23 + $0x128] sm:$0xff] %v2079_v4  ;;  %v2081_v39 = vmax.f32 %v2017_v33, %v1852_v56  ;;  %v1662_v3 = vpop.f32.mrb[104].mxu0  ;;  %v1855_v18 = vpop.f32.mrb[104].mxu1  ;;  %v4425_v49 = vmax.f32 %v4423_v19, %v4424_v36 }
 0x268   : > { %2144 = vst [vmem:[%s3713_s23 + $0x130] sm:$0xff] %v2080_v30  ;;  %v1663_v60 = vadd.f32 %v1662_v3, %v3676_v5  ;;  %v1664_v7 = vpop.f32.mrb[105].mxu0  ;;  %v1856_v55 = vadd.f32 %v1855_v18, %v3681_v51  ;;  %v1857_v0 = vpop.f32.mrb[105].mxu1  ;;  %v4429_v3 = vld [vmem:[#allocation63_spill] sm:$0xff] }
 0x269   : > { %2145 = vst [vmem:[%s3713_s23 + $0x138] sm:$0xff] %v2081_v39  ;;  %v1665_v53 = vadd.f32 %v1664_v7, %v3684_v22  ;;  %v1666_v29 = vpop.f32.mrb[106].mxu0  ;;  %v1858_v31 = vadd.f32 %v1857_v0, %v3689_v58  ;;  %v1859_v61 = vpop.f32.mrb[106].mxu1  ;;  %v4432_v0 = vld [vmem:[#allocation65_spill] sm:$0xff] }
 0x26a   : > { %v2018_v24 = vmax.f32 %v4413_v12, %v1663_v60  ;;  %v1667_v35 = vadd.f32 %v1666_v29, %v3676_v5  ;;  %v1668_v9 = vpop.f32.mrb[107].mxu0  ;;  %v1861_v48 = vpop.f32.mrb[107].mxu1  ;;  %v1860_v34 = vadd.f32 %v1859_v61, %v3681_v51  ;;  %v4430_v60 = vld [vmem:[#allocation64_spill] sm:$0xff]  ;;  %v4433_v29 = vld [vmem:[#allocation66_spill] sm:$0xff] }
 0x26b   : > { %v2019_v25 = vmax.f32 %v4416_v43, %v1665_v53  ;;  %v1669_v32 = vadd.f32 %v1668_v9, %v3684_v22  ;;  %v1862_v63 = vadd.f32 %v1861_v48, %v3689_v58  ;;  %v4431_v18 = vmax.f32 %v4429_v3, %v4430_v60  ;;  %v4435_v48 = vld [vmem:[#allocation67_spill] sm:$0xff] }
 0x26c   : > { %v2082_v15 = vmax.f32 %v2018_v24, %v1856_v55  ;;  %v2020_v16 = vmax.f32 %v4419_v50, %v1667_v35  ;;  %v4434_v8 = vmax.f32 %v4432_v0, %v4433_v29  ;;  %v4450_v0 = vld [vmem:[#allocation77_spill] sm:$0xff]  ;;  %v4451_v29 = vld [vmem:[#allocation78_spill] sm:$0xff] }
 0x26d   : > { %v2083_v40 = vmax.f32 %v2019_v25, %v1858_v31  ;;  %v2021_v45 = vmax.f32 %v4422_v27, %v1669_v32  ;;  %v4440_v27 = vmax.f32 %v4438_v20, %v4439_v6 }
 0x26e   : > { %2146 = vst [vmem:[%s3713_s23 + $0x140] sm:$0xff] %v2082_v15  ;;  %v2084_v13 = vmax.f32 %v2020_v16, %v1860_v34  ;;  %v4436_v15 = vld [vmem:[#allocation68_spill] sm:$0xff] }
 0x26f   : > { %2147 = vst [vmem:[%s3713_s23 + $0x148] sm:$0xff] %v2083_v40  ;;  %v2085_v62 = vmax.f32 %v2021_v45, %v1862_v63  ;;  %v1672_v47 = vpop.f32.mrb[108].mxu0  ;;  %v1865_v38 = vpop.f32.mrb[108].mxu1  ;;  %v4437_v52 = vmax.f32 %v4435_v48, %v4436_v15 }
 0x270   : > { %2148 = vst [vmem:[%s3713_s23 + $0x150] sm:$0xff] %v2084_v13  ;;  %v1673_v57 = vadd.f32 %v1672_v47, %v3676_v5  ;;  %v1674_v17 = vpop.f32.mrb[109].mxu0  ;;  %v1866_v14 = vadd.f32 %v1865_v38, %v3681_v51  ;;  %v1867_v59 = vpop.f32.mrb[109].mxu1  ;;  %v4441_v47 = vld [vmem:[#allocation71_spill] sm:$0xff] }
 0x271   : > { %2149 = vst [vmem:[%s3713_s23 + $0x158] sm:$0xff] %v2085_v62  ;;  %v1675_v42 = vadd.f32 %v1674_v17, %v3684_v22  ;;  %v1676_v2 = vpop.f32.mrb[110].mxu0  ;;  %v1868_v28 = vadd.f32 %v1867_v59, %v3689_v58  ;;  %v1869_v11 = vpop.f32.mrb[110].mxu1  ;;  %v4444_v59 = vld [vmem:[#allocation73_spill] sm:$0xff] }
 0x272   : > { %v2022_v46 = vmax.f32 %v4425_v49, %v1673_v57  ;;  %v1677_v54 = vadd.f32 %v1676_v2, %v3676_v5  ;;  %v1678_v4 = vpop.f32.mrb[111].mxu0  ;;  %v1871_v30 = vpop.f32.mrb[111].mxu1  ;;  %v1870_v55 = vadd.f32 %v1869_v11, %v3681_v51  ;;  %v4442_v57 = vld [vmem:[#allocation72_spill] sm:$0xff]  ;;  %v4445_v2 = vld [vmem:[#allocation74_spill] sm:$0xff] }
 0x273   : > { %v2023_v33 = vmax.f32 %v4428_v26, %v1675_v42  ;;  %v1679_v56 = vadd.f32 %v1678_v4, %v3684_v22  ;;  %v1872_v12 = vadd.f32 %v1871_v30, %v3689_v58  ;;  %v4443_v38 = vmax.f32 %v4441_v47, %v4442_v57  ;;  %v4447_v30 = vld [vmem:[#allocation75_spill] sm:$0xff] }
 0x274   : > { %v2086_v39 = vmax.f32 %v2022_v46, %v1866_v14  ;;  %v2024_v7 = vmax.f32 %v4431_v18, %v1677_v54  ;;  %v4446_v19 = vmax.f32 %v4444_v59, %v4445_v2  ;;  %v4462_v59 = vld [vmem:[#allocation85_spill] sm:$0xff]  ;;  %v4463_v2 = vld [vmem:[#allocation86_spill] sm:$0xff] }
 0x275   : > { %v2087_v53 = vmax.f32 %v2023_v33, %v1868_v28  ;;  %v2025_v1 = vmax.f32 %v4434_v8, %v1679_v56  ;;  %v4452_v8 = vmax.f32 %v4450_v0, %v4451_v29 }
 0x276   : > { %2150 = vst [vmem:[%s3713_s23 + $0x160] sm:$0xff] %v2086_v39  ;;  %v2088_v24 = vmax.f32 %v2024_v7, %v1870_v55  ;;  %v4448_v39 = vld [vmem:[#allocation76_spill] sm:$0xff] }
 0x277   : > { %2151 = vst [vmem:[%s3713_s23 + $0x168] sm:$0xff] %v2087_v53  ;;  %v2089_v31 = vmax.f32 %v2025_v1, %v1872_v12  ;;  %v1682_v35 = vpop.f32.mrb[112].mxu0  ;;  %v1875_v9 = vpop.f32.mrb[112].mxu1  ;;  %v4449_v3 = vmax.f32 %v4447_v30, %v4448_v39 }
 0x278   : > { %2152 = vst [vmem:[%s3713_s23 + $0x170] sm:$0xff] %v2088_v24  ;;  %v1683_v61 = vadd.f32 %v1682_v35, %v3676_v5  ;;  %v1684_v10 = vpop.f32.mrb[113].mxu0  ;;  %v1876_v37 = vadd.f32 %v1875_v9, %v3681_v51  ;;  %v1877_v25 = vpop.f32.mrb[113].mxu1  ;;  %v4453_v35 = vld [vmem:[#allocation79_spill] sm:$0xff] }
 0x279   : > { %2153 = vst [vmem:[%s3713_s23 + $0x178] sm:$0xff] %v2089_v31  ;;  %v1685_v43 = vadd.f32 %v1684_v10, %v3684_v22  ;;  %v1686_v32 = vpop.f32.mrb[114].mxu0  ;;  %v1878_v50 = vadd.f32 %v1877_v25, %v3689_v58  ;;  %v1879_v34 = vpop.f32.mrb[114].mxu1  ;;  %v4456_v25 = vld [vmem:[#allocation81_spill] sm:$0xff] }
 0x27a   : > { %v2026_v44 = vmax.f32 %v4437_v52, %v1683_v61  ;;  %v1687_v16 = vadd.f32 %v1686_v32, %v3676_v5  ;;  %v1688_v40 = vpop.f32.mrb[115].mxu0  ;;  %v1881_v13 = vpop.f32.mrb[115].mxu1  ;;  %v1880_v14 = vadd.f32 %v1879_v34, %v3681_v51  ;;  %v4454_v61 = vld [vmem:[#allocation80_spill] sm:$0xff]  ;;  %v4457_v32 = vld [vmem:[#allocation82_spill] sm:$0xff] }
 0x27b   : > { %v2027_v45 = vmax.f32 %v4440_v27, %v1685_v43  ;;  %v1689_v63 = vadd.f32 %v1688_v40, %v3684_v22  ;;  %v1882_v49 = vadd.f32 %v1881_v13, %v3689_v58  ;;  %v4455_v9 = vmax.f32 %v4453_v35, %v4454_v61  ;;  %v4459_v13 = vld [vmem:[#allocation83_spill] sm:$0xff] }
 0x27c   : > { %v2090_v62 = vmax.f32 %v2026_v44, %v1876_v37  ;;  %v2028_v17 = vmax.f32 %v4443_v38, %v1687_v16  ;;  %v4458_v48 = vmax.f32 %v4456_v25, %v4457_v32  ;;  %v4474_v25 = vld [vmem:[#allocation93_spill] sm:$0xff] }
 0x27d   : > { %v2091_v42 = vmax.f32 %v2027_v45, %v1878_v50  ;;  %v2029_v36 = vmax.f32 %v4446_v19, %v1689_v63  ;;  %v4464_v19 = vmax.f32 %v4462_v59, %v4463_v2 }
 0x27e   : > { %2154 = vst [vmem:[%s3713_s23 + $0x180] sm:$0xff] %v2090_v62  ;;  %v2092_v46 = vmax.f32 %v2028_v17, %v1880_v14  ;;  %v4460_v62 = vld [vmem:[#allocation84_spill] sm:$0xff] }
 0x27f   : > { %2155 = vst [vmem:[%s3713_s23 + $0x188] sm:$0xff] %v2091_v42  ;;  %v2093_v28 = vmax.f32 %v2029_v36, %v1882_v49  ;;  %v1692_v54 = vpop.f32.mrb[116].mxu0  ;;  %v1885_v4 = vpop.f32.mrb[116].mxu1  ;;  %v4461_v47 = vmax.f32 %v4459_v13, %v4460_v62 }
 0x280   : > { %2156 = vst [vmem:[%s3713_s23 + $0x190] sm:$0xff] %v2092_v46  ;;  %v1693_v11 = vadd.f32 %v1692_v54, %v3676_v5  ;;  %v1694_v21 = vpop.f32.mrb[117].mxu0  ;;  %v1886_v41 = vadd.f32 %v1885_v4, %v3681_v51  ;;  %v1887_v33 = vpop.f32.mrb[117].mxu1  ;;  %v4465_v54 = vld [vmem:[#allocation87_spill] sm:$0xff] }
 0x281   : > { %2157 = vst [vmem:[%s3713_s23 + $0x198] sm:$0xff] %v2093_v28  ;;  %v1695_v26 = vadd.f32 %v1694_v21, %v3684_v22  ;;  %v1696_v56 = vpop.f32.mrb[118].mxu0  ;;  %v1888_v18 = vadd.f32 %v1887_v33, %v3689_v58  ;;  %v1889_v55 = vpop.f32.mrb[118].mxu1  ;;  %v4468_v33 = vld [vmem:[#allocation89_spill] sm:$0xff] }
 0x282   : > { %v2030_v60 = vmax.f32 %v4449_v3, %v1693_v11  ;;  %v1697_v7 = vadd.f32 %v1696_v56, %v3676_v5  ;;  %v1698_v53 = vpop.f32.mrb[119].mxu0  ;;  %v1891_v24 = vpop.f32.mrb[119].mxu1  ;;  %v1890_v37 = vadd.f32 %v1889_v55, %v3681_v51  ;;  %v4466_v11 = vld [vmem:[#allocation88_spill] sm:$0xff]  ;;  %v4469_v56 = vld [vmem:[#allocation90_spill] sm:$0xff] }
 0x283   : > { %v2031_v1 = vmax.f32 %v4452_v8, %v1695_v26  ;;  %v1699_v12 = vadd.f32 %v1698_v53, %v3684_v22  ;;  %v1892_v52 = vadd.f32 %v1891_v24, %v3689_v58  ;;  %v4467_v4 = vmax.f32 %v4465_v54, %v4466_v11  ;;  %v4471_v24 = vld [vmem:[#allocation91_spill] sm:$0xff] }
 0x284   : > { %v2094_v31 = vmax.f32 %v2030_v60, %v1886_v41  ;;  %v2032_v10 = vmax.f32 %v4455_v9, %v1697_v7  ;;  %v4470_v30 = vmax.f32 %v4468_v33, %v4469_v56 }
 0x285   : > { %v2095_v43 = vmax.f32 %v2031_v1, %v1888_v18  ;;  %v2033_v15 = vmax.f32 %v4458_v48, %v1699_v12 }
 0x286   : > { %2158 = vst [vmem:[%s3713_s23 + $0x1a0] sm:$0xff] %v2094_v31  ;;  %v2096_v44 = vmax.f32 %v2032_v10, %v1890_v37  ;;  %v4472_v31 = vmax.f32 %v3644_v23, %v4471_v24  ;;  %v4476_v23 = vld [vmem:[#allocation94_spill] sm:$0xff] }
 0x287   : > { %2159 = vst [vmem:[%s3713_s23 + $0x1a8] sm:$0xff] %v2095_v43  ;;  %v2097_v50 = vmax.f32 %v2033_v15, %v1892_v52  ;;  %v1702_v16 = vpop.f32.mrb[120].mxu0  ;;  %v1895_v40 = vpop.f32.mrb[120].mxu1  ;;  %v4473_v43 = vld [vmem:[#allocation92_spill] sm:$0xff] }
 0x288   : > { %2160 = vst [vmem:[%s3713_s23 + $0x1b0] sm:$0xff] %v2096_v44  ;;  %v1703_v34 = vadd.f32 %v1702_v16, %v3676_v5  ;;  %v1704_v20 = vpop.f32.mrb[121].mxu0  ;;  %v1896_v6 = vadd.f32 %v1895_v40, %v3681_v51  ;;  %v1897_v45 = vpop.f32.mrb[121].mxu1  ;;  %v4475_v32 = vmax.f32 %v4473_v43, %v4474_v25 }
 0x289   : > { %2161 = vst [vmem:[%s3713_s23 + $0x1b8] sm:$0xff] %v2097_v50  ;;  %v1705_v27 = vadd.f32 %v1704_v20, %v3684_v22  ;;  %v1706_v63 = vpop.f32.mrb[122].mxu0  ;;  %v1898_v38 = vadd.f32 %v1897_v45, %v3689_v58  ;;  %v1899_v14 = vpop.f32.mrb[122].mxu1  ;;  %v4477_v50 = vld [vmem:[#allocation95_spill] sm:$0xff]  ;;  %v4479_v20 = vld [vmem:[#allocation96_spill] sm:$0xff] }
 0x28a   : > { %v2034_v57 = vmax.f32 %v4461_v47, %v1703_v34  ;;  %v1707_v17 = vadd.f32 %v1706_v63, %v3676_v5  ;;  %v1708_v42 = vpop.f32.mrb[123].mxu0  ;;  %v1901_v46 = vpop.f32.mrb[123].mxu1  ;;  %v1900_v41 = vadd.f32 %v1899_v14, %v3681_v51  ;;  %v4478_v16 = vmax.f32 %v4476_v23, %v4477_v50 }
 0x28b   : > { %v2035_v36 = vmax.f32 %v4464_v19, %v1705_v27  ;;  %v1709_v49 = vadd.f32 %v1708_v42, %v3684_v22  ;;  %v1902_v3 = vadd.f32 %v1901_v46, %v3689_v58 }
 0x28c   : > { %v2098_v28 = vmax.f32 %v2034_v57, %v1896_v6  ;;  %v2036_v21 = vmax.f32 %v4467_v4, %v1707_v17  ;;  %v4480_v6 = vld [vmem:[#allocation97_spill] sm:$0xff] }
 0x28d   : > { %v2099_v26 = vmax.f32 %v2035_v36, %v1898_v38  ;;  %v2037_v39 = vmax.f32 %v4470_v30, %v1709_v49  ;;  %v4481_v27 = vmax.f32 %v4479_v20, %v4480_v6 }
 0x28e   : > { %2162 = vst [vmem:[%s3713_s23 + $0x1c0] sm:$0xff] %v2098_v28  ;;  %v2100_v60 = vmax.f32 %v2036_v21, %v1900_v41 }
 0x28f   : > { %2163 = vst [vmem:[%s3713_s23 + $0x1c8] sm:$0xff] %v2099_v26  ;;  %v2101_v18 = vmax.f32 %v2037_v39, %v1902_v3  ;;  %v1712_v7 = vpop.f32.mrb[124].mxu0  ;;  %v1905_v53 = vpop.f32.mrb[124].mxu1 }
 0x290   : > { %2164 = vst [vmem:[%s3713_s23 + $0x1d0] sm:$0xff] %v2100_v60  ;;  %v1713_v55 = vadd.f32 %v1712_v7, %v3676_v5  ;;  %v1714_v0 = vpop.f32.mrb[125].mxu0  ;;  %v1906_v29 = vadd.f32 %v1905_v53, %v3681_v51  ;;  %v1907_v1 = vpop.f32.mrb[125].mxu1 }
 0x291   : > { %2165 = vst [vmem:[%s3713_s23 + $0x1d8] sm:$0xff] %v2101_v18  ;;  %v1715_v8 = vadd.f32 %v1714_v0, %v3684_v22  ;;  %v1716_v12 = vpop.f32.mrb[126].mxu0  ;;  %v1908_v61 = vadd.f32 %v1907_v1, %v3689_v58  ;;  %v1909_v10 = vpop.f32.mrb[126].mxu1 }
 0x292   : > { %v2038_v35 = vmax.f32 %v4472_v31, %v1713_v55  ;;  %v1717_v9 = vadd.f32 %v1716_v12, %v3676_v5  ;;  %v1718_v37 = vpop.f32.mrb[127].mxu0  ;;  %v1911_v52 = vpop.f32.mrb[127].mxu1  ;;  %v1910_v40 = vadd.f32 %v1909_v10, %v3681_v51 }
 0x293   : > { %v2039_v48 = vmax.f32 %v4475_v32, %v1715_v8  ;;  %v1719_v15 = vadd.f32 %v1718_v37, %v3684_v22  ;;  %v1912_v63 = vadd.f32 %v1911_v52, %v3689_v58  ;;  %2177 = sbr.rel (!%p4482_p9) target bundleno = 694 (0x2b6), region = 48 }
 0x294   : > { %v2102_v44 = vmax.f32 %v2038_v35, %v1906_v29  ;;  %v2040_v34 = vmax.f32 %v4478_v16, %v1717_v9 }
 0x295   : > { %v2103_v5 = vmax.f32 %v2039_v48, %v1908_v61  ;;  %v2041_v45 = vmax.f32 %v4481_v27, %v1719_v15 }
 0x296   : > { %2166 = vst [vmem:[%s3713_s23 + $0x1e0] sm:$0xff] %v2102_v44  ;;  %v2104_v13 = vmax.f32 %v2040_v34, %v1910_v40 }
 0x297   : > { %2167 = vst [vmem:[%s3713_s23 + $0x1e8] sm:$0xff] %v2103_v5  ;;  %v2105_v62 = vmax.f32 %v2041_v45, %v1912_v63 }
 0x298   : > { %2168 = vst [vmem:[%s3713_s23 + $0x1f0] sm:$0xff] %v2104_v13 }
 0x299   : > { %2169 = vst [vmem:[%s3713_s23 + $0x1f8] sm:$0xff] %v2105_v62 }
 0x29a   : > { %s4491_s6 = smov (!%p2180_p10, %s2179_s6), 32 }
 0x29b   : > { %s4083_s10 = sshll.u32 %s4491_s6, 8 }
 0x29c   : > { %s2185_s11 = ssub.s32 8192, %s4083_s10 }
 0x29d   : > { %2186 = vsyncadd %s2171_s26, %s2185_s11  ;;  %p2435_p1 = scmp.ne.s32.totalorder %s4083_s10, 0  ;;  %s2447_s24 = sshll.u32 %s2721_s16, 13 }
 0x29e   : > { %s4093_s5 = scalar_lea.hbm %s4145_s3, %s2447_s24  ;;  %s2192_s4 = sshll.u32 %s3713_s23, 4  ;;  %s4096_s4 = int_to_ptr.vmem [resolvable:$true] %s2192_s4 }
 0x29f   : > { %s2598_s7 = scalar_lea.vmem %s4096_s4, %s4083_s10  ;;  %s2677_s22 = smov [#allocation8]  }
 0x2a0   : > { %p2599_p3 = scmp.ne.s32.totalorder %s4096_s4, %s2598_s7  ;;  %s2602_s8 = sshll.u32 %s2677_s22, 4  ;;  %s2603_s8 = int_to_ptr.vmem [resolvable:$false] %s2602_s8 }
 0x2a1   : > { %s2604_s16 = scalar_lea.vmem %s2603_s8, 16384  ;;  %p2605_p11 = scmp.lt.s32.totalorder %s4096_s4, %s2603_s8 }
 0x2a2   : > { %p2600_p5 = pnand %p2599_p3, %p2435_p1  ;;  %p2606_p13 = scmp.lt.s32.totalorder %s2604_s16, %s2598_s7 }
 0x2a4   : > { %p2601_p6 = pneg %p2600_p5  ;;  %p2607_p0 = por %p2606_p13, %p2605_p11 }
 0x2a6   : > { %p2608_p12 = pnand %p2607_p0, %p2601_p6 }
 0x2a8   : > { %2611 = shalt.err (!%p2608_p12)
}
 0x2a9   : > { %s2612_s9 = scalar_lea.hbm %s4093_s5, %s4083_s10  ;;  %s2616_s20 = scalar_lea.hbm %s4145_s3, 12288 }
 0x2aa   : > { %p2613_p7 = scmp.ne.s32.totalorder %s4093_s5, %s2612_s9  ;;  %p2617_p9 = scmp.lt.u32.totalorder %s4093_s5, %s4145_s3 }
 0x2ab   : > { %p2618_p10 = scmp.lt.u32.totalorder %s2616_s20, %s2612_s9  ;;  %p2620_p5 = scmp.lt.u32.totalorder %s2612_s9, %s4093_s5 }
 0x2ac   : > { %p2614_p2 = pnand %p2613_p7, %p2435_p1 }
 0x2ad   : > { %p2619_p3 = por %p2618_p10, %p2617_p9 }
 0x2ae   : > { %p2615_p8 = pneg %p2614_p2 }
 0x2af   : > { %p2621_p6 = por %p2620_p5, %p2619_p3 }
 0x2b1   : > { %p2622_p11 = pnand %p2621_p6, %p2615_p8 }
 0x2b3   : > { %2625 = shalt.err (!%p2622_p11)
}
 0x2b4   : > { %s2678_s6 = smov 256   ;;  %s2679_s11 = smov 16  }
 0x2b5   : > { %2198 = dma.vmem_to_hbm [thread:$0]  (%p2435_p1), %s4096_s4, %s4083_s10, %s4093_s5, %s2171_s26, %s2678_s6, %s2678_s6, %s2679_s11  }
 0x2b6 PF: > { %s2207_s24 = sand.u32 1, %s2656_s12   ;;  %p4483_p13 = scmp.ne.s32.totalorder %s4238_s25, 0 }
 0x2b7   : > { %s2208_s27 = scalar_lea.sflag [#allocation4], %s2207_s24 }
 0x2b8   : > { %p2466_p0 = pnand %p2288_p4, %p4483_p13 }
 0x2ba   : > { %2651 = dma.done.wait (!%p2466_p0), %s2208_s27, 8192  }
 0x2bb   : > { %2653 = vsyncadd (!%p2466_p0), %s2208_s27, 4294959104  ;;  %p17_p12 = scmp.ge.s32.totalorder %s2725_s18, 4   ;;  %s4484_s12 = smov %s2660_s13 }
 0x2bc   : > { %s4485_s13 = smov %s2664_s14  ;;  %s4486_s14 = smov %s2737_s21 }
 0x2bd   : > { %s4487_s15 = smov %s2725_s18  ;;  %19 = sbr.rel (!%p17_p12) target bundleno = 6 (0x6), region = 85 }
 0x2c4   :  { %2213 = vsyncpa [#allocation3], 1 }
 0x2c5   :  { %2215 = vsyncpa [#allocation3 + $0x1], 1 }
 0x2c6   :  { %2216 = vsyncpa [#allocation6], 1 }
 0x2c7   :  { %2217 = vsyncpa [#allocation4], 1 }
 0x2c8   :  { %2219 = vsyncpa [#allocation4 + $0x1], 1 }

// kernel: tpu_custom_call.1
= control target key start
LH: loop header
LB: loop body
LE: loop exit
PB: predicated region body
PF: predicated region fallthrough
CT: control target
= control target key end

     0   :  { %8 = vsyncpa [#allocation3], 0  ;;  %s4142_s0 = inlined_call_operand.hbm [shape: f32[384,256], index: 0, kind: input, shape index: {}]   ;;  %s4143_s1 = inlined_call_operand.hbm [shape: bf16[256,1024], index: 1, kind: input, shape index: {}]   ;;  %s4144_s2 = inlined_call_operand.hbm [shape: f32[1,1024], index: 2, kind: input, shape index: {}]   ;;  %s4145_s3 = inlined_call_operand.hbm [shape: f32[384,256], index: 3, kind: output, shape index: {}]  }
   0x1   :  { %10 = vsyncpa [#allocation3 + $0x1], 0 }
   0x2   :  { %11 = vsyncpa [#allocation6], 0 }
   0x3   :  { %12 = vsyncpa [#allocation4], 0 }
   0x4   :  { %14 = vsyncpa [#allocation4 + $0x1], 0  ;;  %s2700_s12 = smov 0   ;;  %s2702_s13 = smov 0  }
   0x5   :  { %s2704_s14 = smov 0   ;;  %s2706_s15 = smov 0  }
   0x6 LB: > { %s2721_s16 = sadd.s32 4294967295, %s2668_s15   ;;  %s2284_s17 = sadd.s32 4294967294, %s2668_s15   ;;  %s2668_s15 = sphi %s2706_s15, %s4487_s15   ;;  %s2664_s14 = sphi %s2704_s14, %s4486_s14   ;;  %s2660_s13 = sphi %s2702_s13, %s4485_s13   ;;  %s2656_s12 = sphi %s2700_s12, %s4484_s12  }
   0x7   : > { %s2725_s18 = sadd.s32 1, %s2668_s15   ;;  %s27_s19 = sadd.s32 1, %s2664_s14 }
   0x8   : > { %s24_s20 = ssub.s32 %s2668_s15, %s2725_s18  ;;  %p34_p0 = scmp.ne.s32.totalorder %s2664_s14, %s2660_s13 }
   0x9   : > { %p25_p1 = scmp.eq.s32.totalorder %s24_s20, 0  ;;  %p35_p2 = scmp.eq.s32.totalorder %s2668_s15, 0 }
   0xa   : > { %p40_p3 = scmp.ne.s32.totalorder %s2660_s13, %s2656_s12  ;;  %p4146_p4 = scmp.eq.s32.totalorder %s2721_s16, 0 }
   0xb   : > { %s2737_s21 = scalar_select %p25_p1, %s2664_s14, %s27_s19  }
   0xc   : > { %p2739_p5 = por %p35_p2, %p34_p0  ;;  %p2745_p6 = por %p4146_p4, %p40_p3 }
   0xd   : > { %p106_p7 = scmp.eq.s32.totalorder %s2721_s16, 1  ;;  %p112_p8 = scmp.eq.s32.totalorder %s2284_s17, 1 }
   0xe   : > { %s4235_s22 = scalar_select %p2739_p5, 1, 0 }
   0xf   : > { %s4236_s23 = scalar_select %p2745_p6, 1, 0 }
  0x10   : > { %p2285_p9 = scmp.ge.s32.totalorder %s2668_s15, 1  ;;  %p119_p10 = scmp.lt.s32.totalorder %s2668_s15, 3 }
  0x11   : > { %p2752_p11 = por %p106_p7, %p34_p0  ;;  %p2756_p12 = por %p112_p8, %p40_p3 }
  0x12   : > { %p2760_p13 = pnand %p2285_p9, %p119_p10  ;;  %s2670_s27 = smov [#allocation5]  }
  0x13   : > { %s4237_s24 = scalar_select %p2752_p11, 1, 0 }
  0x14   : > { %s4238_s25 = scalar_select %p2756_p12, 1, 0 }
  0x15   : > { %s4239_s26 = scalar_select %p2760_p13, 1, 0 }
  0x16   : > { %p2458_p1 = pneg %p2760_p13  ;;  %s131_s28 = sshll.u32 %s2670_s27, 4  ;;  %s132_s28 = int_to_ptr.vmem [resolvable:$true] %s131_s28 }
  0x17   : > { %s2671_s30 = smov [#allocation7]   ;;  %s2514_s7 = scalar_lea.hbm %s4143_s1, 16384 }
  0x18   : > { %p2768_p2 = pnand %p2458_p1, %p4146_p4  ;;  %s145_s4 = sshll.u32 %s2671_s30, 4  ;;  %s2772_s4 = int_to_ptr.vmem [resolvable:$true] %s145_s4 }
  0x19   : > { %p2515_p0 = scmp.ne.s32.totalorder %s4143_s1, %s2514_s7  ;;  %p2521_p9 = scmp.lt.u32.totalorder %s2514_s7, %s4143_s1 }
  0x1a   : > { %p2516_p3 = pneg %p2768_p2 }
  0x1c   : > { %p2517_p7 = pnand %p2516_p3, %p2515_p0 }
  0x1e   : > { %p2518_p8 = pneg %p2517_p7 }
  0x20   : > { %p2523_p10 = pnand %p2521_p9, %p2518_p8 }
  0x22   : > { %2526 = shalt.err (!%p2523_p10)
}
  0x23   : > { %s2527_s17 = scalar_lea.vmem %s132_s28, 16384  ;;  %p2535_p11 = scmp.lt.s32.totalorder %s132_s28, %s132_s28 }
  0x24   : > { %p2528_p1 = scmp.ne.s32.totalorder %s132_s28, %s2527_s17  ;;  %p2536_p6 = scmp.lt.s32.totalorder %s2527_s17, %s2527_s17 }
  0x26   : > { %p2530_p4 = pnand %p2528_p1, %p2516_p3  ;;  %p2537_p13 = por %p2536_p6, %p2535_p11 }
  0x28   : > { %p2531_p12 = pneg %p2530_p4 }
  0x2a   : > { %p2538_p5 = pnand %p2537_p13, %p2531_p12 }
  0x2c   : > { %2541 = shalt.err (!%p2538_p5)
}
  0x2d   : > { %s2672_s19 = smov 512   ;;  %s2673_s20 = smov 32  }
  0x2e   : > { %2461 = dma.hbm_to_vmem [thread:$0]  (!%p2768_p2), %s4143_s1, 16384, %s132_s28, [#allocation6], %s2672_s19, %s2672_s19, %s2673_s20  }
  0x2f   : > { %s2542_s7 = scalar_lea.hbm %s4144_s2, 128 }
  0x30   : > { %p2543_p4 = scmp.ne.s32.totalorder %s4144_s2, %s2542_s7  ;;  %p2549_p11 = scmp.lt.u32.totalorder %s2542_s7, %s4144_s2 }
  0x32   : > { %p2545_p5 = pnand %p2543_p4, %p2516_p3 }
  0x34   : > { %p2546_p6 = pneg %p2545_p5 }
  0x36   : > { %p2551_p12 = pnand %p2549_p11, %p2546_p6 }
  0x38   : > { %2554 = shalt.err (!%p2551_p12)
}
  0x39   : > { %s2555_s28 = scalar_lea.vmem %s2772_s4, 128  ;;  %p2563_p8 = scmp.lt.s32.totalorder %s2772_s4, %s2772_s4 }
  0x3a   : > { %p2556_p13 = scmp.ne.s32.totalorder %s2772_s4, %s2555_s28  ;;  %p2564_p9 = scmp.lt.s32.totalorder %s2555_s28, %s2555_s28 }
  0x3c   : > { %p2558_p0 = pnand %p2556_p13, %p2516_p3  ;;  %p2565_p10 = por %p2564_p9, %p2563_p8 }
  0x3e   : > { %p2559_p7 = pneg %p2558_p0 }
  0x40   : > { %p2566_p1 = pnand %p2565_p10, %p2559_p7 }
  0x42   : > { %2569 = shalt.err (!%p2566_p1)
}
  0x43   : > { %2464 = dma.hbm_to_vmem [thread:$0]  (!%p2768_p2), %s4144_s2, 128, %s2772_s4, [#allocation6]  }
  0x44   : > { %p2288_p4 = scmp.ge.s32.totalorder %s2668_s15, 2 }
  0x45   : > { %p4241_p3 = scmp.ne.s32.totalorder (!%p2288_p4), %s4235_s22, 0 }
  0x46   : > { %152 = sbr.rel (%p2288_p4) target bundleno = 112 (0x70), region = 24 }
  0x4d   : > { %155 = sbr.rel (!%p4241_p3) target bundleno = 112 (0x70), region = 28  ;;  %s156_s20 = sand.u32 (%p4241_p3), 1, %s2664_s14  }
  0x4e   : > { %s2290_s27 = sshll.u32 (%p4241_p3), %s2668_s15, 5  ;;  %s2289_s30 = sshll.u32 (%p4241_p3), %s156_s20, 9 }
  0x4f   : > { %s162_s5 = ssub.s32 (%p4241_p3), 48, %s2290_s27  ;;  %s2831_s6 = scalar_lea.sflag (%p4241_p3), [#allocation3], %s156_s20 }
  0x50   : > { %p163_p5 = scmp.lt.s32.totalorder (%p4241_p3), %s162_s5, 32  ;;  %s160_s7 = scalar_lea.vmem (%p4241_p3), [#allocation2], %s2289_s30 }
  0x54   : > { %s4489_s5 = smov (!%p163_p5, %s162_s5), 32 }
  0x55   : > { %s2828_s29 = sshll.u32 %s4489_s5, 8 }
  0x56   : > { %s168_s4 = ssub.s32 8192, %s2828_s29 }
  0x57   : > { %169 = vsyncadd %s2831_s6, %s168_s4  ;;  %p2293_p2 = scmp.ne.s32.totalorder %s2828_s29, 0  ;;  %s2444_s22 = sshll.u32 %s2668_s15, 13 }
  0x58   : > { %s2839_s10 = scalar_lea.hbm %s4142_s0, %s2444_s22  ;;  %s175_s11 = sshll.u32 %s160_s7, 4  ;;  %s2841_s11 = int_to_ptr.vmem [resolvable:$true] %s175_s11 }
  0x59   : > { %s2570_s28 = scalar_lea.hbm %s2839_s10, %s2828_s29  ;;  %s2574_s20 = scalar_lea.hbm %s4142_s0, 12288 }
  0x5a   : > { %p2571_p6 = scmp.ne.s32.totalorder %s2839_s10, %s2570_s28  ;;  %p2575_p13 = scmp.lt.u32.totalorder %s2839_s10, %s4142_s0 }
  0x5b   : > { %p2576_p0 = scmp.lt.u32.totalorder %s2574_s20, %s2570_s28  ;;  %p2578_p8 = scmp.lt.u32.totalorder %s2570_s28, %s2839_s10 }
  0x5c   : > { %p2572_p11 = pnand %p2571_p6, %p2293_p2 }
  0x5d   : > { %p2577_p7 = por %p2576_p0, %p2575_p13 }
  0x5e   : > { %p2573_p12 = pneg %p2572_p11 }
  0x5f   : > { %p2579_p9 = por %p2578_p8, %p2577_p7 }
  0x61   : > { %p2580_p10 = pnand %p2579_p9, %p2573_p12 }
  0x63   : > { %2583 = shalt.err (!%p2580_p10)
}
  0x64   : > { %s2584_s5 = scalar_lea.vmem %s2841_s11, %s2828_s29  ;;  %s2674_s4 = smov [#allocation2]  }
  0x65   : > { %p2585_p1 = scmp.ne.s32.totalorder %s2841_s11, %s2584_s5  ;;  %s2588_s7 = sshll.u32 %s2674_s4, 4  ;;  %s2589_s7 = int_to_ptr.vmem [resolvable:$false] %s2588_s7 }
  0x66   : > { %s2590_s22 = scalar_lea.vmem %s2589_s7, 16384  ;;  %p2591_p6 = scmp.lt.s32.totalorder %s2841_s11, %s2589_s7 }
  0x67   : > { %p2586_p3 = pnand %p2585_p1, %p2293_p2  ;;  %p2592_p11 = scmp.lt.s32.totalorder %s2590_s22, %s2584_s5 }
  0x69   : > { %p2587_p5 = pneg %p2586_p3  ;;  %p2593_p13 = por %p2592_p11, %p2591_p6 }
  0x6b   : > { %p2594_p0 = pnand %p2593_p13, %p2587_p5 }
  0x6d   : > { %2597 = shalt.err (!%p2594_p0)
}
  0x6e   : > { %s2675_s8 = smov 256   ;;  %s2676_s9 = smov 16  }
  0x6f   : > { %181 = dma.hbm_to_vmem [thread:$0]  (%p2293_p2), %s2839_s10, %s2828_s29, %s2841_s11, %s2831_s6, %s2675_s8, %s2675_s8, %s2676_s9  }
  0x70 PF: > { %p4242_p12 = scmp.ne.s32.totalorder %s4239_s26, 0 }
  0x72   : > { %187 = sbr.rel (%p4242_p12) target bundleno = 694 (0x2b6), region = 32 }
  0x79   : > { %s2871_s28 = sand.u32 1, %s2660_s13   ;;  %p4243_p7 = scmp.ne.s32.totalorder %s4236_s23, 0 }
  0x7a   : > { %s2299_s17 = sshll.u32 %s2871_s28, 9  ;;  %s190_s19 = scalar_lea.sflag [#allocation3], %s2871_s28 }
  0x7b   : > { %s2877_s20 = scalar_lea.vmem [#allocation2], %s2299_s17 }
  0x7c   : > { %2643 = dma.done.wait (%p4243_p7), %s190_s19, 8192  }
  0x7d   : > { %2645 = vsyncadd (%p4243_p7), %s190_s19, 4294959104  ;;  %p4244_p2 = scmp.eq.s32.totalorder %s2721_s16, 0 }
  0x7f   : > { %2647 = dma.done.wait (%p4244_p2), [#allocation6], 16512   ;;  %p4245_p8 = pmov %p4244_p2 }
  0x80   : > { %v332_v0 = vld [vmem:[#allocation5] sm:$0xff]  ;;  %v333_v2 = vld [vmem:[#allocation5 + $0x8] sm:$0xff]  ;;  %v239_v54 = vld [vmem:[%s2877_s20 + $0x18] sm:$0xff]  ;;  %s3713_s23 = scalar_lea.vmem [#allocation8], %s2299_s17  ;;  %s2171_s26 = scalar_lea.sflag [#allocation4], %s2871_s28 }
  0x81   : > { %2649 = vsyncadd (%p4245_p8), [#allocation6], 4294950784  ;;  %v336_v1 = vld [vmem:[#allocation5 + $0x20] sm:$0xff]  ;;  %v337_v4 = vld [vmem:[#allocation5 + $0x28] sm:$0xff]  ;;  %p4482_p9 = scmp.ne.s32.totalorder %s4237_s24, 0 }
  0x82   : > { %v2304_v3 = vcombine.high %v332_v0, %v336_v1  ;;  %v2303_v5 = vcombine.low %v332_v0, %v336_v1  ;;  %v340_v6 = vld [vmem:[#allocation5 + $0x40] sm:$0xff]  ;;  %v2306_v8 = vcombine.high %v333_v2, %v337_v4  ;;  %v2305_v9 = vcombine.low %v333_v2, %v337_v4  ;;  %v341_v11 = vld [vmem:[#allocation5 + $0x48] sm:$0xff]  ;;  %s2432_s29 = sshll.u32 (%p4482_p9), %s2721_s16, 5 }
  0x83   : > { %v344_v7 = vld [vmem:[#allocation5 + $0x60] sm:$0xff]  ;;  %v345_v12 = vld [vmem:[#allocation5 + $0x68] sm:$0xff]  ;;  %s2179_s6 = ssub.s32 (%p4482_p9), 48, %s2432_s29 }
  0x84   : > { %v2312_v10 = vcombine.high %v340_v6, %v344_v7  ;;  %v348_v13 = vld [vmem:[#allocation5 + $0x80] sm:$0xff]  ;;  %1142 = vmatprep.subr.bf16.mxu0 %v2304_v3  ;;  %v2314_v14 = vcombine.high %v341_v11, %v345_v12  ;;  %v349_v16 = vld [vmem:[#allocation5 + $0x88] sm:$0xff]  ;;  %1335 = vmatprep.subr.bf16.mxu1 %v2306_v8  ;;  %v2311_v18 = vcombine.low %v340_v6, %v344_v7  ;;  %p2180_p10 = scmp.lt.s32.totalorder (%p4482_p9), %s2179_s6, 32 }
  0x85   : > { %v352_v15 = vld [vmem:[#allocation5 + $0xa0] sm:$0xff]  ;;  %v353_v17 = vld [vmem:[#allocation5 + $0xa8] sm:$0xff]  ;;  %1143 = vmatpush1.bf16.msra.mxu0 %v2303_v5  ;;  %1336 = vmatpush1.bf16.msra.mxu1 %v2305_v9  ;;  %v2313_v19 = vcombine.low %v341_v11, %v345_v12 }
  0x86   : > { %1144 = vmatprep.subr.bf16.mxu0 %v2312_v10  ;;  %v2320_v20 = vcombine.high %v348_v13, %v352_v15  ;;  %1337 = vmatprep.subr.bf16.mxu1 %v2314_v14  ;;  %v2322_v21 = vcombine.high %v349_v16, %v353_v17  ;;  %v356_v22 = vld [vmem:[#allocation5 + $0xc0] sm:$0xff]  ;;  %v357_v24 = vld [vmem:[#allocation5 + $0xc8] sm:$0xff]  ;;  %v2319_v26 = vcombine.low %v348_v13, %v352_v15 }
  0x87   : > { %v360_v23 = vld [vmem:[#allocation5 + $0xe0] sm:$0xff]  ;;  %v361_v25 = vld [vmem:[#allocation5 + $0xe8] sm:$0xff]  ;;  %v2321_v27 = vcombine.low %v349_v16, %v353_v17 }
  0x88   : > { %v2328_v28 = vcombine.high %v356_v22, %v360_v23  ;;  %v2330_v29 = vcombine.high %v357_v24, %v361_v25  ;;  %v364_v30 = vld [vmem:[#allocation5 + $0x100] sm:$0xff]  ;;  %v365_v32 = vld [vmem:[#allocation5 + $0x108] sm:$0xff]  ;;  %v2327_v34 = vcombine.low %v356_v22, %v360_v23  ;;  %v2329_v35 = vcombine.low %v357_v24, %v361_v25 }
  0x89   : > { %1145 = vmatpush1.bf16.msra.mxu0 %v2311_v18  ;;  %1338 = vmatpush1.bf16.msra.mxu1 %v2313_v19  ;;  %v368_v31 = vld [vmem:[#allocation5 + $0x120] sm:$0xff]  ;;  %v369_v33 = vld [vmem:[#allocation5 + $0x128] sm:$0xff] }
  0x8a   : > { %1146 = vmatprep.subr.bf16.mxu0 %v2320_v20  ;;  %1339 = vmatprep.subr.bf16.mxu1 %v2322_v21  ;;  %v2336_v36 = vcombine.high %v364_v30, %v368_v31  ;;  %v2338_v37 = vcombine.high %v365_v32, %v369_v33  ;;  %v372_v38 = vld [vmem:[#allocation5 + $0x140] sm:$0xff]  ;;  %v373_v40 = vld [vmem:[#allocation5 + $0x148] sm:$0xff]  ;;  %v2335_v42 = vcombine.low %v364_v30, %v368_v31 }
  0x8b   : > { %v376_v39 = vld [vmem:[#allocation5 + $0x160] sm:$0xff]  ;;  %v377_v41 = vld [vmem:[#allocation5 + $0x168] sm:$0xff]  ;;  %v2337_v43 = vcombine.low %v365_v32, %v369_v33 }
  0x8c   : > { %v2344_v44 = vcombine.high %v372_v38, %v376_v39  ;;  %v2346_v45 = vcombine.high %v373_v40, %v377_v41  ;;  %v380_v46 = vld [vmem:[#allocation5 + $0x180] sm:$0xff]  ;;  %v381_v48 = vld [vmem:[#allocation5 + $0x188] sm:$0xff]  ;;  %v2343_v50 = vcombine.low %v372_v38, %v376_v39  ;;  %v2345_v51 = vcombine.low %v373_v40, %v377_v41 }
  0x8d   : > { %1147 = vmatpush1.bf16.msra.mxu0 %v2319_v26  ;;  %1340 = vmatpush1.bf16.msra.mxu1 %v2321_v27  ;;  %v384_v47 = vld [vmem:[#allocation5 + $0x1a0] sm:$0xff]  ;;  %v385_v49 = vld [vmem:[#allocation5 + $0x1a8] sm:$0xff] }
  0x8e   : > { %1148 = vmatprep.subr.bf16.mxu0 %v2328_v28  ;;  %1341 = vmatprep.subr.bf16.mxu1 %v2330_v29  ;;  %v2352_v52 = vcombine.high %v380_v46, %v384_v47  ;;  %v237_v53 = vld [vmem:[%s2877_s20 + $0x8] sm:$0xff]  ;;  %v2354_v55 = vcombine.high %v381_v48, %v385_v49  ;;  %v388_v56 = vld [vmem:[#allocation5 + $0x1c0] sm:$0xff]  ;;  %v2351_v61 = vcombine.low %v380_v46, %v384_v47 }
  0x8f   : > { %v392_v57 = vld [vmem:[#allocation5 + $0x1e0] sm:$0xff]  ;;  %v2889_v58 = vpack.c.bf16 %v239_v54, %v237_v53  ;;  %v389_v59 = vld [vmem:[#allocation5 + $0x1c8] sm:$0xff]  ;;  %v2353_v62 = vcombine.low %v381_v48, %v385_v49 }
  0x90   : > { %v393_v60 = vld [vmem:[#allocation5 + $0x1e8] sm:$0xff]  ;;  %v2360_v63 = vcombine.high %v388_v56, %v392_v57  ;;  %v396_v1 = vld [vmem:[#allocation5 + $0x200] sm:$0xff]  ;;  %v2359_v5 = vcombine.low %v388_v56, %v392_v57 }
  0x91   : > { %1149 = vmatpush1.bf16.msra.mxu0 %v2327_v34  ;;  %1342 = vmatpush1.bf16.msra.mxu1 %v2329_v35  ;;  %v2362_v0 = vcombine.high %v389_v59, %v393_v60  ;;  %v400_v2 = vld [vmem:[#allocation5 + $0x220] sm:$0xff]  ;;  %v397_v3 = vld [vmem:[#allocation5 + $0x208] sm:$0xff]  ;;  %v2361_v6 = vcombine.low %v389_v59, %v393_v60 }
  0x92   : > { %1150 = vmatprep.subr.bf16.mxu0 %v2336_v36  ;;  %1343 = vmatprep.subr.bf16.mxu1 %v2338_v37  ;;  %v401_v4 = vld [vmem:[#allocation5 + $0x228] sm:$0xff]  ;;  %v2368_v7 = vcombine.high %v396_v1, %v400_v2  ;;  %v404_v9 = vld [vmem:[#allocation5 + $0x240] sm:$0xff]  ;;  %v2367_v13 = vcombine.low %v396_v1, %v400_v2  ;;  %v334_v2 = vld [vmem:[#allocation5 + $0x10] sm:$0xff] }
  0x93   : > { %1174 = vmatprep.mubr.bf16.mxu0 %v2889_v58  ;;  %1367 = vmatprep.mubr.bf16.mxu1 %v2889_v58  ;;  %v2370_v8 = vcombine.high %v397_v3, %v401_v4  ;;  %v408_v10 = vld [vmem:[#allocation5 + $0x260] sm:$0xff]  ;;  %v405_v11 = vld [vmem:[#allocation5 + $0x248] sm:$0xff]  ;;  %v2369_v14 = vcombine.low %v397_v3, %v401_v4  ;;  %v338_v3 = vld [vmem:[#allocation5 + $0x30] sm:$0xff] }
  0x94   : > { %v409_v12 = vld [vmem:[#allocation5 + $0x268] sm:$0xff]  ;;  %v2376_v15 = vcombine.high %v404_v9, %v408_v10  ;;  %v412_v17 = vld [vmem:[#allocation5 + $0x280] sm:$0xff]  ;;  %v2375_v21 = vcombine.low %v404_v9, %v408_v10  ;;  %v335_v4 = vld [vmem:[#allocation5 + $0x18] sm:$0xff]  ;;  %v2308_v10 = vcombine.high %v334_v2, %v338_v3 }
  0x95   : > { %1151 = vmatpush1.bf16.msra.mxu0 %v2335_v42  ;;  %1344 = vmatpush1.bf16.msra.mxu1 %v2337_v43  ;;  %v2378_v16 = vcombine.high %v405_v11, %v409_v12  ;;  %v416_v18 = vld [vmem:[#allocation5 + $0x2a0] sm:$0xff]  ;;  %v413_v19 = vld [vmem:[#allocation5 + $0x288] sm:$0xff]  ;;  %v2377_v22 = vcombine.low %v405_v11, %v409_v12 }
  0x96   : > { %1152 = vmatprep.subr.bf16.mxu0 %v2344_v44  ;;  %1345 = vmatprep.subr.bf16.mxu1 %v2346_v45  ;;  %v417_v20 = vld [vmem:[#allocation5 + $0x2a8] sm:$0xff]  ;;  %v2384_v23 = vcombine.high %v412_v17, %v416_v18  ;;  %v420_v25 = vld [vmem:[#allocation5 + $0x2c0] sm:$0xff]  ;;  %v2383_v29 = vcombine.low %v412_v17, %v416_v18  ;;  %v2307_v17 = vcombine.low %v334_v2, %v338_v3  ;;  %v343_v18 = vld [vmem:[#allocation5 + $0x58] sm:$0xff] }
  0x97   : > { %v2386_v24 = vcombine.high %v413_v19, %v417_v20  ;;  %v424_v26 = vld [vmem:[#allocation5 + $0x2e0] sm:$0xff]  ;;  %v421_v27 = vld [vmem:[#allocation5 + $0x2c8] sm:$0xff]  ;;  %v2385_v30 = vcombine.low %v413_v19, %v417_v20  ;;  %v347_v19 = vld [vmem:[#allocation5 + $0x78] sm:$0xff] }
  0x98   : > { %v425_v28 = vld [vmem:[#allocation5 + $0x2e8] sm:$0xff]  ;;  %v2392_v31 = vcombine.high %v420_v25, %v424_v26  ;;  %v428_v33 = vld [vmem:[#allocation5 + $0x300] sm:$0xff]  ;;  %v2391_v37 = vcombine.low %v420_v25, %v424_v26  ;;  %v2318_v25 = vcombine.high %v343_v18, %v347_v19  ;;  %v351_v26 = vld [vmem:[#allocation5 + $0x98] sm:$0xff] }
  0x99   : > { %1153 = vmatpush1.bf16.msra.mxu0 %v2343_v50  ;;  %1346 = vmatpush1.bf16.msra.mxu1 %v2345_v51  ;;  %v2394_v32 = vcombine.high %v421_v27, %v425_v28  ;;  %v432_v34 = vld [vmem:[#allocation5 + $0x320] sm:$0xff]  ;;  %v429_v35 = vld [vmem:[#allocation5 + $0x308] sm:$0xff]  ;;  %v2393_v38 = vcombine.low %v421_v27, %v425_v28  ;;  %v355_v27 = vld [vmem:[#allocation5 + $0xb8] sm:$0xff] }
  0x9a   : > { %1154 = vmatprep.subr.bf16.mxu0 %v2352_v52  ;;  %1347 = vmatprep.subr.bf16.mxu1 %v2354_v55  ;;  %v433_v36 = vld [vmem:[#allocation5 + $0x328] sm:$0xff]  ;;  %v2400_v39 = vcombine.high %v428_v33, %v432_v34  ;;  %v436_v41 = vld [vmem:[#allocation5 + $0x340] sm:$0xff]  ;;  %v2399_v45 = vcombine.low %v428_v33, %v432_v34  ;;  %v247_v33 = vld [vmem:[%s2877_s20 + $0x58] sm:$0xff] }
  0x9b   : > { %v2402_v40 = vcombine.high %v429_v35, %v433_v36  ;;  %v440_v42 = vld [vmem:[#allocation5 + $0x360] sm:$0xff]  ;;  %v437_v43 = vld [vmem:[#allocation5 + $0x348] sm:$0xff]  ;;  %v2401_v46 = vcombine.low %v429_v35, %v433_v36  ;;  %v2326_v35 = vcombine.high %v351_v26, %v355_v27 }
  0x9c   : > { %v441_v44 = vld [vmem:[#allocation5 + $0x368] sm:$0xff]  ;;  %v2408_v47 = vcombine.high %v436_v41, %v440_v42  ;;  %v444_v49 = vld [vmem:[#allocation5 + $0x380] sm:$0xff]  ;;  %v2407_v53 = vcombine.low %v436_v41, %v440_v42  ;;  %v363_v41 = vld [vmem:[#allocation5 + $0xf8] sm:$0xff] }
  0x9d   : > { %1155 = vmatpush1.bf16.msra.mxu0 %v2351_v61  ;;  %1348 = vmatpush1.bf16.msra.mxu1 %v2353_v62  ;;  %v2410_v48 = vcombine.high %v437_v43, %v441_v44  ;;  %v448_v50 = vld [vmem:[#allocation5 + $0x3a0] sm:$0xff]  ;;  %v445_v51 = vld [vmem:[#allocation5 + $0x388] sm:$0xff]  ;;  %v2409_v54 = vcombine.low %v437_v43, %v441_v44  ;;  %v2325_v43 = vcombine.low %v351_v26, %v355_v27 }
  0x9e   : > { %1156 = vmatprep.subr.bf16.mxu0 %v2360_v63  ;;  %1349 = vmatprep.subr.bf16.mxu1 %v2362_v0  ;;  %v449_v52 = vld [vmem:[#allocation5 + $0x3a8] sm:$0xff]  ;;  %v2416_v55 = vcombine.high %v444_v49, %v448_v50  ;;  %v452_v57 = vld [vmem:[#allocation5 + $0x3c0] sm:$0xff]  ;;  %v2415_v62 = vcombine.low %v444_v49, %v448_v50  ;;  %v246_v49 = vld [vmem:[%s2877_s20 + $0x50] sm:$0xff] }
  0x9f   : > { %v2418_v56 = vcombine.high %v445_v51, %v449_v52  ;;  %v456_v59 = vld [vmem:[#allocation5 + $0x3e0] sm:$0xff]  ;;  %v453_v60 = vld [vmem:[#allocation5 + $0x3c8] sm:$0xff]  ;;  %v2417_v63 = vcombine.low %v445_v51, %v449_v52  ;;  %v367_v50 = vld [vmem:[#allocation5 + $0x118] sm:$0xff] }
  0xa0   : > { %v457_v61 = vld [vmem:[#allocation5 + $0x3e8] sm:$0xff]  ;;  %v2424_v0 = vcombine.high %v452_v57, %v456_v59  ;;  %v240_v28 = vld [vmem:[%s2877_s20 + $0x20] sm:$0xff]  ;;  %v371_v51 = vld [vmem:[#allocation5 + $0x138] sm:$0xff] }
  0xa1   : > { %1157 = vmatpush1.bf16.msra.mxu0 %v2359_v5  ;;  %1350 = vmatpush1.bf16.msra.mxu1 %v2361_v6  ;;  %v2426_v1 = vcombine.high %v453_v60, %v457_v61  ;;  %v339_v5 = vld [vmem:[#allocation5 + $0x38] sm:$0xff]  ;;  %v2423_v6 = vcombine.low %v452_v57, %v456_v59  ;;  %v2425_v9 = vcombine.low %v453_v60, %v457_v61  ;;  %v241_v12 = vld [vmem:[%s2877_s20 + $0x28] sm:$0xff]  ;;  %v374_v60 = vld [vmem:[#allocation5 + $0x150] sm:$0xff] }
  0xa2   : > { %1158 = vmatprep.subr.bf16.mxu0 %v2368_v7  ;;  %1351 = vmatprep.subr.bf16.mxu1 %v2370_v8  ;;  %v236_v7 = vld [vmem:[%s2877_s20] sm:$0xff]  ;;  %v238_v8 = vld [vmem:[%s2877_s20 + $0x10] sm:$0xff]  ;;  %v2310_v11 = vcombine.high %v335_v4, %v339_v5  ;;  %v2309_v20 = vcombine.low %v335_v4, %v339_v5  ;;  %v249_v52 = vld [vmem:[%s2877_s20 + $0x68] sm:$0xff]  ;;  %v2342_v59 = vcombine.high %v367_v50, %v371_v51 }
  0xa3   : > { %v378_v61 = vld [vmem:[#allocation5 + $0x170] sm:$0xff]  ;;  %v2341_v2 = vcombine.low %v367_v50, %v371_v51  ;;  %v248_v4 = vld [vmem:[%s2877_s20 + $0x60] sm:$0xff] }
  0xa4   : > { %v2348_v3 = vcombine.high %v374_v60, %v378_v61 }
  0xa5   : > { %1159 = vmatpush1.bf16.msra.mxu0 %v2367_v13  ;;  %1352 = vmatpush1.bf16.msra.mxu1 %v2369_v14  ;;  %v243_v13 = vld [vmem:[%s2877_s20 + $0x38] sm:$0xff]  ;;  %v2897_v14 = vpack.c.bf16 %v238_v8, %v236_v7  ;;  %v386_v7 = vld [vmem:[#allocation5 + $0x1b0] sm:$0xff] }
  0xa6   : > { %1160 = vmatprep.subr.bf16.mxu0 %v2376_v15  ;;  %1353 = vmatprep.subr.bf16.mxu1 %v2378_v16  ;;  %v342_v15 = vld [vmem:[#allocation5 + $0x50] sm:$0xff] }
  0xa7   : > { %v346_v16 = vld [vmem:[#allocation5 + $0x70] sm:$0xff] }
  0xa8   : > { %v250_v8 = vld [vmem:[%s2877_s20 + $0x70] sm:$0xff] }
  0xa9   : > { %1161 = vmatpush1.bf16.msra.mxu0 %v2375_v21  ;;  %1354 = vmatpush1.bf16.msra.mxu1 %v2377_v22  ;;  %v2899_v21 = vpack.c.bf16 %v243_v13, %v241_v12  ;;  %v2316_v22 = vcombine.high %v342_v15, %v346_v16  ;;  %v255_v12 = vld [vmem:[%s2877_s20 + $0x98] sm:$0xff]  ;;  %v2347_v13 = vcombine.low %v374_v60, %v378_v61  ;;  %v261_v61 = vld [vmem:[%s2877_s20 + $0xc8] sm:$0xff] }
  0xaa   : > { %1162 = vmatprep.subr.bf16.mxu0 %v2384_v23  ;;  %1355 = vmatprep.subr.bf16.mxu1 %v2386_v24  ;;  %v350_v23 = vld [vmem:[#allocation5 + $0x90] sm:$0xff]  ;;  %v419_v60 = vld [vmem:[#allocation5 + $0x2b8] sm:$0xff] }
  0xab   : > { %v354_v24 = vld [vmem:[#allocation5 + $0xb0] sm:$0xff] }
  0xac   : > { %v2324_v34 = vcombine.high %v350_v23, %v354_v24  ;;  %v2323_v42 = vcombine.low %v350_v23, %v354_v24  ;;  %v391_v23 = vld [vmem:[#allocation5 + $0x1d8] sm:$0xff] }
  0xad   : > { %1163 = vmatpush1.bf16.msra.mxu0 %v2383_v29  ;;  %1356 = vmatpush1.bf16.msra.mxu1 %v2385_v30  ;;  %v242_v29 = vld [vmem:[%s2877_s20 + $0x30] sm:$0xff]  ;;  %v2315_v30 = vcombine.low %v342_v15, %v346_v16  ;;  %v395_v24 = vld [vmem:[#allocation5 + $0x1f8] sm:$0xff] }
  0xae   : > { %1164 = vmatprep.subr.bf16.mxu0 %v2392_v31  ;;  %1357 = vmatprep.subr.bf16.mxu1 %v2394_v32  ;;  %v2317_v31 = vcombine.low %v343_v18, %v347_v19  ;;  %v245_v32 = vld [vmem:[%s2877_s20 + $0x48] sm:$0xff]  ;;  %v2909_v36 = vpack.c.bf16 %v242_v29, %v240_v28  ;;  %v390_v19 = vld [vmem:[#allocation5 + $0x1d0] sm:$0xff]  ;;  %v252_v28 = vld [vmem:[%s2877_s20 + $0x80] sm:$0xff]  ;;  %v2366_v29 = vcombine.high %v391_v23, %v395_v24 }
  0xb1   : > { %1165 = vmatpush1.bf16.msra.mxu0 %v2391_v37  ;;  %1358 = vmatpush1.bf16.msra.mxu1 %v2393_v38  ;;  %v358_v37 = vld [vmem:[#allocation5 + $0xd0] sm:$0xff] }
  0xb2   : > { %1166 = vmatprep.subr.bf16.mxu0 %v2400_v39  ;;  %1359 = vmatprep.subr.bf16.mxu1 %v2402_v40  ;;  %v362_v38 = vld [vmem:[#allocation5 + $0xf0] sm:$0xff]  ;;  %v2911_v39 = vpack.c.bf16 %v247_v33, %v245_v32  ;;  %v359_v40 = vld [vmem:[#allocation5 + $0xd8] sm:$0xff] }
  0xb3   : > { %v2332_v44 = vcombine.high %v358_v37, %v362_v38  ;;  %v254_v32 = vld [vmem:[%s2877_s20 + $0x90] sm:$0xff]  ;;  %v399_v33 = vld [vmem:[#allocation5 + $0x218] sm:$0xff] }
  0xb5   : > { %1167 = vmatpush1.bf16.msra.mxu0 %v2399_v45  ;;  %1360 = vmatpush1.bf16.msra.mxu1 %v2401_v46  ;;  %v244_v45 = vld [vmem:[%s2877_s20 + $0x40] sm:$0xff]  ;;  %v2334_v46 = vcombine.high %v359_v40, %v363_v41 }
  0xb6   : > { %1168 = vmatprep.subr.bf16.mxu0 %v2408_v47  ;;  %1361 = vmatprep.subr.bf16.mxu1 %v2410_v48  ;;  %v366_v47 = vld [vmem:[#allocation5 + $0x110] sm:$0xff]  ;;  %v2921_v57 = vpack.c.bf16 %v246_v49, %v244_v45 }
  0xb7   : > { %v370_v48 = vld [vmem:[#allocation5 + $0x130] sm:$0xff] }
  0xb8   : > { %v410_v45 = vld [vmem:[#allocation5 + $0x270] sm:$0xff] }
  0xb9   : > { %1169 = vmatpush1.bf16.msra.mxu0 %v2407_v53  ;;  %1362 = vmatpush1.bf16.msra.mxu1 %v2409_v54  ;;  %v251_v53 = vld [vmem:[%s2877_s20 + $0x78] sm:$0xff]  ;;  %v2331_v54 = vcombine.low %v358_v37, %v362_v38 }
  0xba   : > { %1170 = vmatprep.subr.bf16.mxu0 %v2416_v55  ;;  %1363 = vmatprep.subr.bf16.mxu1 %v2418_v56  ;;  %v2333_v55 = vcombine.low %v359_v40, %v363_v41  ;;  %v2340_v56 = vcombine.high %v366_v47, %v370_v48  ;;  %v259_v37 = vld [vmem:[%s2877_s20 + $0xb8] sm:$0xff]  ;;  %v2365_v40 = vcombine.low %v391_v23, %v395_v24  ;;  %v265_v24 = vld [vmem:[%s2877_s20 + $0xe8] sm:$0xff] }
  0xbb   : > { %v435_v23 = vld [vmem:[#allocation5 + $0x338] sm:$0xff] }
  0xbd   : > { %1171 = vmatpush1.bf16.msra.mxu0 %v2415_v62  ;;  %1364 = vmatpush1.bf16.msra.mxu1 %v2417_v63  ;;  %v2923_v62 = vpack.c.bf16 %v251_v53, %v249_v52  ;;  %v375_v63 = vld [vmem:[#allocation5 + $0x158] sm:$0xff]  ;;  %v256_v52 = vld [vmem:[%s2877_s20 + $0xa0] sm:$0xff] }
  0xbe   : > { %1172 = vmatprep.subr.bf16.mxu0 %v2424_v0  ;;  %1365 = vmatprep.subr.bf16.mxu1 %v2426_v1  ;;  %v379_v0 = vld [vmem:[#allocation5 + $0x178] sm:$0xff]  ;;  %v2339_v1 = vcombine.low %v366_v47, %v370_v48 }
  0xbf   : > { %v2350_v5 = vcombine.high %v375_v63, %v379_v0  ;;  %v2349_v15 = vcombine.low %v375_v63, %v379_v0  ;;  %v407_v47 = vld [vmem:[#allocation5 + $0x258] sm:$0xff] }
  0xc0   : > { %v411_v48 = vld [vmem:[#allocation5 + $0x278] sm:$0xff] }
  0xc1   : > { %1173 = vmatpush1.bf16.msra.mxu0 %v2423_v6  ;;  %1366 = vmatpush1.bf16.msra.mxu1 %v2425_v9  ;;  %v382_v6 = vld [vmem:[#allocation5 + $0x190] sm:$0xff]  ;;  %v383_v9 = vld [vmem:[#allocation5 + $0x198] sm:$0xff]  ;;  %v2382_v53 = vcombine.high %v407_v47, %v411_v48 }
  0xc2   : > { %1528 = vmatprep.subr.bf16.mxu0 %v2308_v10  ;;  %1721 = vmatprep.subr.bf16.mxu1 %v2310_v11  ;;  %v387_v10 = vld [vmem:[#allocation5 + $0x1b8] sm:$0xff]  ;;  %v253_v11 = vld [vmem:[%s2877_s20 + $0x88] sm:$0xff]  ;;  %v2356_v16 = vcombine.high %v382_v6, %v386_v7 }
  0xc3   : > { %v2358_v18 = vcombine.high %v383_v9, %v387_v10  ;;  %v2357_v26 = vcombine.low %v383_v9, %v387_v10  ;;  %v263_v63 = vld [vmem:[%s2877_s20 + $0xd8] sm:$0xff] }
  0xc4   : > { %1175 = vmatmul.mubr.bf16.vlgmr.msra.gmra.mrb[0].mxu0 %v2897_v14  ;;  %1368 = vmatmul.mubr.bf16.vlgmr.msra.gmra.mrb[0].mxu1 %v2897_v14  ;;  %v427_v9 = vld [vmem:[#allocation5 + $0x2f8] sm:$0xff] }
  0xc5   : > { %1529 = vmatpush1.bf16.msra.mxu0 %v2307_v17  ;;  %1722 = vmatpush1.bf16.msra.mxu1 %v2309_v20  ;;  %v2933_v17 = vpack.c.bf16 %v250_v8, %v248_v4  ;;  %v394_v20 = vld [vmem:[#allocation5 + $0x1f0] sm:$0xff]  ;;  %v423_v8 = vld [vmem:[#allocation5 + $0x2d8] sm:$0xff] }
  0xc6   : > { %1184 = vmatprep.mubr.bf16.mxu0 %v2899_v21  ;;  %1377 = vmatprep.mubr.bf16.mxu1 %v2899_v21  ;;  %v2364_v27 = vcombine.high %v390_v19, %v394_v20  ;;  %v2363_v38 = vcombine.low %v390_v19, %v394_v20  ;;  %v262_v19 = vld [vmem:[%s2877_s20 + $0xd0] sm:$0xff]  ;;  %v431_v20 = vld [vmem:[#allocation5 + $0x318] sm:$0xff] }
  0xc7   : > { %1530 = vmatprep.subr.bf16.mxu0 %v2316_v22  ;;  %1723 = vmatprep.subr.bf16.mxu1 %v2318_v25  ;;  %v2935_v22 = vpack.c.bf16 %v255_v12, %v253_v11  ;;  %v2355_v25 = vcombine.low %v382_v6, %v386_v7  ;;  %v426_v6 = vld [vmem:[#allocation5 + $0x2f0] sm:$0xff]  ;;  %v2959_v7 = vpack.c.bf16 %v263_v63, %v261_v61  ;;  %v455_v63 = vld [vmem:[#allocation5 + $0x3d8] sm:$0xff] }
  0xc9   : > { %1531 = vmatpush1.bf16.msra.mxu0 %v2315_v30  ;;  %1724 = vmatpush1.bf16.msra.mxu1 %v2317_v31  ;;  %v398_v30 = vld [vmem:[#allocation5 + $0x210] sm:$0xff] }
  0xca   : > { %1532 = vmatprep.subr.bf16.mxu0 %v2324_v34  ;;  %1725 = vmatprep.subr.bf16.mxu1 %v2326_v35  ;;  %v402_v31 = vld [vmem:[#allocation5 + $0x230] sm:$0xff]  ;;  %v403_v34 = vld [vmem:[#allocation5 + $0x238] sm:$0xff]  ;;  %v257_v35 = vld [vmem:[%s2877_s20 + $0xa8] sm:$0xff] }
  0xcb   : > { %v2372_v41 = vcombine.high %v398_v30, %v402_v31  ;;  %v2371_v49 = vcombine.low %v398_v30, %v402_v31  ;;  %v2373_v50 = vcombine.low %v399_v33, %v403_v34  ;;  %v2406_v30 = vcombine.high %v431_v20, %v435_v23  ;;  %v438_v31 = vld [vmem:[#allocation5 + $0x350] sm:$0xff] }
  0xcc   : > { %1185 = vmatmul.mubr.bf16.gmra.mrb[4].mxu0 %v2909_v36  ;;  %1378 = vmatmul.mubr.bf16.gmra.mrb[4].mxu1 %v2909_v36 }
  0xcd   : > { %1194 = vmatprep.mubr.bf16.mxu0 %v2911_v39  ;;  %1387 = vmatprep.mubr.bf16.mxu1 %v2911_v39 }
  0xce   : > { %1533 = vmatpush1.bf16.msra.mxu0 %v2323_v42  ;;  %1726 = vmatpush1.bf16.msra.mxu1 %v2325_v43  ;;  %v2945_v42 = vpack.c.bf16 %v254_v32, %v252_v28  ;;  %v2374_v43 = vcombine.high %v399_v33, %v403_v34  ;;  %v442_v32 = vld [vmem:[#allocation5 + $0x370] sm:$0xff]  ;;  %v439_v34 = vld [vmem:[#allocation5 + $0x358] sm:$0xff] }
  0xcf   : > { %1534 = vmatprep.subr.bf16.mxu0 %v2332_v44  ;;  %1727 = vmatprep.subr.bf16.mxu1 %v2334_v46  ;;  %v406_v44 = vld [vmem:[#allocation5 + $0x250] sm:$0xff]  ;;  %v2947_v46 = vpack.c.bf16 %v259_v37, %v257_v35  ;;  %v443_v35 = vld [vmem:[#allocation5 + $0x378] sm:$0xff] }
  0xd0   : > { %v2380_v51 = vcombine.high %v406_v44, %v410_v45  ;;  %v2379_v0 = vcombine.low %v406_v44, %v410_v45  ;;  %v446_v44 = vld [vmem:[#allocation5 + $0x390] sm:$0xff] }
  0xd1   : > { %v450_v45 = vld [vmem:[#allocation5 + $0x3b0] sm:$0xff] }
  0xd2   : > { %1535 = vmatpush1.bf16.msra.mxu0 %v2331_v54  ;;  %1728 = vmatpush1.bf16.msra.mxu1 %v2333_v55  ;;  %v414_v54 = vld [vmem:[#allocation5 + $0x290] sm:$0xff] }
  0xd3   : > { %1536 = vmatprep.subr.bf16.mxu0 %v2340_v56  ;;  %1729 = vmatprep.subr.bf16.mxu1 %v2342_v59  ;;  %v418_v55 = vld [vmem:[#allocation5 + $0x2b0] sm:$0xff]  ;;  %v415_v59 = vld [vmem:[#allocation5 + $0x298] sm:$0xff] }
  0xd4   : > { %1195 = vmatmul.mubr.bf16.gmra.mrb[8].mxu0 %v2921_v57  ;;  %1388 = vmatmul.mubr.bf16.gmra.mrb[8].mxu1 %v2921_v57  ;;  %v258_v56 = vld [vmem:[%s2877_s20 + $0xb0] sm:$0xff]  ;;  %v2390_v4 = vcombine.high %v415_v59, %v419_v60  ;;  %v2387_v10 = vcombine.low %v414_v54, %v418_v55  ;;  %v2389_v11 = vcombine.low %v415_v59, %v419_v60 }
  0xd5   : > { %1204 = vmatprep.mubr.bf16.mxu0 %v2923_v62  ;;  %1397 = vmatprep.mubr.bf16.mxu1 %v2923_v62  ;;  %v454_v59 = vld [vmem:[#allocation5 + $0x3d0] sm:$0xff] }
  0xd6   : > { %1537 = vmatpush1.bf16.msra.mxu0 %v2339_v1  ;;  %1730 = vmatpush1.bf16.msra.mxu1 %v2341_v2  ;;  %v2381_v1 = vcombine.low %v407_v47, %v411_v48  ;;  %v2388_v2 = vcombine.high %v414_v54, %v418_v55  ;;  %v266_v47 = vld [vmem:[%s2877_s20 + $0xf0] sm:$0xff]  ;;  %v447_v48 = vld [vmem:[#allocation5 + $0x398] sm:$0xff]  ;;  %v2420_v54 = vcombine.high %v446_v44, %v450_v45 }
  0xd7   : > { %1538 = vmatprep.subr.bf16.mxu0 %v2348_v3  ;;  %1731 = vmatprep.subr.bf16.mxu1 %v2350_v5  ;;  %v2957_v3 = vpack.c.bf16 %v258_v56, %v256_v52  ;;  %v422_v5 = vld [vmem:[#allocation5 + $0x2d0] sm:$0xff]  ;;  %v2411_v52 = vcombine.low %v438_v31, %v442_v32 }
  0xd8   : > { %v2396_v12 = vcombine.high %v422_v5, %v426_v6  ;;  %v458_v60 = vld [vmem:[#allocation5 + $0x3f0] sm:$0xff] }
  0xda   : > { %1539 = vmatpush1.bf16.msra.mxu0 %v2347_v13  ;;  %1732 = vmatpush1.bf16.msra.mxu1 %v2349_v15  ;;  %v260_v13 = vld [vmem:[%s2877_s20 + $0xc0] sm:$0xff]  ;;  %v2398_v15 = vcombine.high %v423_v8, %v427_v9 }
  0xdb   : > { %1540 = vmatprep.subr.bf16.mxu0 %v2356_v16  ;;  %1733 = vmatprep.subr.bf16.mxu1 %v2358_v18  ;;  %v430_v16 = vld [vmem:[#allocation5 + $0x310] sm:$0xff] }
  0xdc   : > { %1205 = vmatmul.mubr.bf16.gmra.mrb[12].mxu0 %v2933_v17  ;;  %1398 = vmatmul.mubr.bf16.gmra.mrb[12].mxu1 %v2933_v17  ;;  %v434_v18 = vld [vmem:[#allocation5 + $0x330] sm:$0xff] }
  0xdd   : > { %1214 = vmatprep.mubr.bf16.mxu0 %v2935_v22  ;;  %1407 = vmatprep.mubr.bf16.mxu1 %v2935_v22  ;;  %v2404_v28 = vcombine.high %v430_v16, %v434_v18  ;;  %v2403_v37 = vcombine.low %v430_v16, %v434_v18  ;;  %v272_v16 = vld [vmem:[%s2877_s20 + $0x120] sm:$0xff]  ;;  %v274_v18 = vld [vmem:[%s2877_s20 + $0x130] sm:$0xff] }
  0xde   : > { %1541 = vmatpush1.bf16.msra.mxu0 %v2355_v25  ;;  %1734 = vmatpush1.bf16.msra.mxu1 %v2357_v26  ;;  %v267_v25 = vld [vmem:[%s2877_s20 + $0xf8] sm:$0xff]  ;;  %v2395_v26 = vcombine.low %v422_v5, %v426_v6  ;;  %v268_v6 = vld [vmem:[%s2877_s20 + $0x100] sm:$0xff] }
  0xdf   : > { %1542 = vmatprep.subr.bf16.mxu0 %v2364_v27  ;;  %1735 = vmatprep.subr.bf16.mxu1 %v2366_v29  ;;  %v2397_v27 = vcombine.low %v423_v8, %v427_v9  ;;  %v2969_v29 = vpack.c.bf16 %v262_v19, %v260_v13  ;;  %v2971_v33 = vpack.c.bf16 %v267_v25, %v265_v24  ;;  %v270_v8 = vld [vmem:[%s2877_s20 + $0x110] sm:$0xff]  ;;  %v273_v9 = vld [vmem:[%s2877_s20 + $0x128] sm:$0xff]  ;;  %v276_v25 = vld [vmem:[%s2877_s20 + $0x140] sm:$0xff] }
  0xe0   : > { %v2993_v13 = vpack.c.bf16 %v270_v8, %v268_v6  ;;  %v277_v19 = vld [vmem:[%s2877_s20 + $0x148] sm:$0xff] }
  0xe2   : > { %1543 = vmatpush1.bf16.msra.mxu0 %v2363_v38  ;;  %1736 = vmatpush1.bf16.msra.mxu1 %v2365_v40  ;;  %v2405_v38 = vcombine.low %v431_v20, %v435_v23  ;;  %v2412_v40 = vcombine.high %v438_v31, %v442_v32  ;;  %v279_v20 = vld [vmem:[%s2877_s20 + $0x158] sm:$0xff]  ;;  %v3005_v23 = vpack.c.bf16 %v274_v18, %v272_v16  ;;  %v280_v32 = vld [vmem:[%s2877_s20 + $0x160] sm:$0xff] }
  0xe3   : > { %1544 = vmatprep.subr.bf16.mxu0 %v2372_v41  ;;  %1737 = vmatprep.subr.bf16.mxu1 %v2374_v43  ;;  %v264_v41 = vld [vmem:[%s2877_s20 + $0xe0] sm:$0xff]  ;;  %v2414_v43 = vcombine.high %v439_v34, %v443_v35  ;;  %v3007_v24 = vpack.c.bf16 %v279_v20, %v277_v19 }
  0xe4   : > { %1215 = vmatmul.mubr.bf16.gmra.mrb[16].mxu0 %v2945_v42  ;;  %1408 = vmatmul.mubr.bf16.gmra.mrb[16].mxu1 %v2945_v42  ;;  %v2981_v55 = vpack.c.bf16 %v266_v47, %v264_v41  ;;  %v284_v41 = vld [vmem:[%s2877_s20 + $0x180] sm:$0xff] }
  0xe5   : > { %1224 = vmatprep.mubr.bf16.mxu0 %v2947_v46  ;;  %1417 = vmatprep.mubr.bf16.mxu1 %v2947_v46 }
  0xe6   : > { %1545 = vmatpush1.bf16.msra.mxu0 %v2371_v49  ;;  %1738 = vmatpush1.bf16.msra.mxu1 %v2373_v50  ;;  %v451_v49 = vld [vmem:[#allocation5 + $0x3b8] sm:$0xff]  ;;  %v269_v50 = vld [vmem:[%s2877_s20 + $0x108] sm:$0xff] }
  0xe7   : > { %1546 = vmatprep.subr.bf16.mxu0 %v2380_v51  ;;  %1739 = vmatprep.subr.bf16.mxu1 %v2382_v53  ;;  %v271_v51 = vld [vmem:[%s2877_s20 + $0x118] sm:$0xff]  ;;  %v2413_v53 = vcombine.low %v439_v34, %v443_v35  ;;  %v2422_v56 = vcombine.high %v447_v48, %v451_v49  ;;  %v282_v34 = vld [vmem:[%s2877_s20 + $0x170] sm:$0xff]  ;;  %v285_v35 = vld [vmem:[%s2877_s20 + $0x188] sm:$0xff] }
  0xe8   : > { %v2983_v61 = vpack.c.bf16 %v271_v51, %v269_v50  ;;  %v290_v50 = vld [vmem:[%s2877_s20 + $0x1b0] sm:$0xff]  ;;  %v293_v51 = vld [vmem:[%s2877_s20 + $0x1c8] sm:$0xff] }
  0xea   : > { %1547 = vmatpush1.bf16.msra.mxu0 %v2379_v0  ;;  %1740 = vmatpush1.bf16.msra.mxu1 %v2381_v1  ;;  %v459_v0 = vld [vmem:[#allocation5 + $0x3f8] sm:$0xff]  ;;  %v2419_v1 = vcombine.low %v446_v44, %v450_v45  ;;  %v289_v44 = vld [vmem:[%s2877_s20 + $0x1a8] sm:$0xff] }
  0xeb   : > { %1548 = vmatprep.subr.bf16.mxu0 %v2388_v2  ;;  %1741 = vmatprep.subr.bf16.mxu1 %v2390_v4  ;;  %v2421_v2 = vcombine.low %v447_v48, %v451_v49  ;;  %v2428_v4 = vcombine.high %v454_v59, %v458_v60  ;;  %v2430_v5 = vcombine.high %v455_v63, %v459_v0  ;;  %v291_v45 = vld [vmem:[%s2877_s20 + $0x1b8] sm:$0xff]  ;;  %v288_v49 = vld [vmem:[%s2877_s20 + $0x1a0] sm:$0xff] }
  0xec   : > { %1225 = vmatmul.mubr.bf16.gmra.mrb[20].mxu0 %v2957_v3  ;;  %1418 = vmatmul.mubr.bf16.gmra.mrb[20].mxu1 %v2957_v3  ;;  %v3043_v48 = vpack.c.bf16 %v291_v45, %v289_v44 }
  0xed   : > { %1234 = vmatprep.mubr.bf16.mxu0 %v2959_v7  ;;  %1427 = vmatprep.mubr.bf16.mxu1 %v2959_v7 }
  0xee   : > { %1549 = vmatpush1.bf16.msra.mxu0 %v2387_v10  ;;  %1742 = vmatpush1.bf16.msra.mxu1 %v2389_v11  ;;  %v275_v10 = vld [vmem:[%s2877_s20 + $0x138] sm:$0xff]  ;;  %v2427_v11 = vcombine.low %v454_v59, %v458_v60  ;;  %v294_v59 = vld [vmem:[%s2877_s20 + $0x1d0] sm:$0xff]  ;;  %v297_v60 = vld [vmem:[%s2877_s20 + $0x1e8] sm:$0xff] }
  0xef   : > { %1550 = vmatprep.subr.bf16.mxu0 %v2396_v12  ;;  %1743 = vmatprep.subr.bf16.mxu1 %v2398_v15  ;;  %v2429_v12 = vcombine.low %v455_v63, %v459_v0  ;;  %v2995_v15 = vpack.c.bf16 %v275_v10, %v273_v9  ;;  %v299_v63 = vld [vmem:[%s2877_s20 + $0x1f8] sm:$0xff] }
  0xf2   : > { %1551 = vmatpush1.bf16.msra.mxu0 %v2395_v26  ;;  %1744 = vmatpush1.bf16.msra.mxu1 %v2397_v27  ;;  %v278_v26 = vld [vmem:[%s2877_s20 + $0x150] sm:$0xff]  ;;  %v281_v27 = vld [vmem:[%s2877_s20 + $0x168] sm:$0xff] }
  0xf3   : > { %1552 = vmatprep.subr.bf16.mxu0 %v2404_v28  ;;  %1745 = vmatprep.subr.bf16.mxu1 %v2406_v30  ;;  %v283_v28 = vld [vmem:[%s2877_s20 + $0x178] sm:$0xff]  ;;  %v3017_v30 = vpack.c.bf16 %v278_v26, %v276_v25 }
  0xf4   : > { %1235 = vmatmul.mubr.bf16.gmra.mrb[24].mxu0 %v2969_v29  ;;  %1428 = vmatmul.mubr.bf16.gmra.mrb[24].mxu1 %v2969_v29  ;;  %v3019_v31 = vpack.c.bf16 %v283_v28, %v281_v27 }
  0xf5   : > { %1244 = vmatprep.mubr.bf16.mxu0 %v2971_v33  ;;  %1437 = vmatprep.mubr.bf16.mxu1 %v2971_v33 }
  0xf6   : > { %1553 = vmatpush1.bf16.msra.mxu0 %v2403_v37  ;;  %1746 = vmatpush1.bf16.msra.mxu1 %v2405_v38  ;;  %v287_v37 = vld [vmem:[%s2877_s20 + $0x198] sm:$0xff]  ;;  %v3029_v38 = vpack.c.bf16 %v282_v34, %v280_v32 }
  0xf7   : > { %1554 = vmatprep.subr.bf16.mxu0 %v2412_v40  ;;  %1747 = vmatprep.subr.bf16.mxu1 %v2414_v43  ;;  %v3031_v40 = vpack.c.bf16 %v287_v37, %v285_v35  ;;  %v286_v43 = vld [vmem:[%s2877_s20 + $0x190] sm:$0xff] }
  0xf8   : > { %v3041_v47 = vpack.c.bf16 %v286_v43, %v284_v41 }
  0xfa   : > { %1555 = vmatpush1.bf16.msra.mxu0 %v2411_v52  ;;  %1748 = vmatpush1.bf16.msra.mxu1 %v2413_v53  ;;  %v295_v52 = vld [vmem:[%s2877_s20 + $0x1d8] sm:$0xff]  ;;  %v3053_v53 = vpack.c.bf16 %v290_v50, %v288_v49 }
  0xfb   : > { %1556 = vmatprep.subr.bf16.mxu0 %v2420_v54  ;;  %1749 = vmatprep.subr.bf16.mxu1 %v2422_v56  ;;  %v3055_v54 = vpack.c.bf16 %v295_v52, %v293_v51  ;;  %v292_v56 = vld [vmem:[%s2877_s20 + $0x1c0] sm:$0xff] }
  0xfc   : > { %1245 = vmatmul.mubr.bf16.gmra.mrb[28].mxu0 %v2981_v55  ;;  %1438 = vmatmul.mubr.bf16.gmra.mrb[28].mxu1 %v2981_v55  ;;  %v3065_v0 = vpack.c.bf16 %v294_v59, %v292_v56 }
  0xfd   : > { %1254 = vmatprep.mubr.bf16.mxu0 %v2983_v61  ;;  %1447 = vmatprep.mubr.bf16.mxu1 %v2983_v61 }
  0xfe   : > { %1557 = vmatpush1.bf16.msra.mxu0 %v2419_v1  ;;  %1750 = vmatpush1.bf16.msra.mxu1 %v2421_v2  ;;  %v3067_v1 = vpack.c.bf16 %v299_v63, %v297_v60  ;;  %v296_v2 = vld [vmem:[%s2877_s20 + $0x1e0] sm:$0xff] }
  0xff   : > { %1558 = vmatprep.subr.bf16.mxu0 %v2428_v4  ;;  %1751 = vmatprep.subr.bf16.mxu1 %v2430_v5  ;;  %v298_v4 = vld [vmem:[%s2877_s20 + $0x1f0] sm:$0xff] }
 0x100   : > { %v3075_v5 = vpack.c.bf16 %v298_v4, %v296_v2 }
 0x102   : > { %1559 = vmatpush1.bf16.msra.mxu0 %v2427_v11  ;;  %1752 = vmatpush1.bf16.msra.mxu1 %v2429_v12 }
 0x104   : > { %1255 = vmatmul.mubr.bf16.gmra.mrb[32].mxu0 %v2993_v13  ;;  %1448 = vmatmul.mubr.bf16.gmra.mrb[32].mxu1 %v2993_v13 }
 0x105   : > { %1264 = vmatprep.mubr.bf16.mxu0 %v2995_v15  ;;  %1457 = vmatprep.mubr.bf16.mxu1 %v2995_v15 }
 0x10c   : > { %1265 = vmatmul.mubr.bf16.gmra.mrb[36].mxu0 %v3005_v23  ;;  %1458 = vmatmul.mubr.bf16.gmra.mrb[36].mxu1 %v3005_v23 }
 0x10d   : > { %1274 = vmatprep.mubr.bf16.mxu0 %v3007_v24  ;;  %1467 = vmatprep.mubr.bf16.mxu1 %v3007_v24 }
 0x114   : > { %1275 = vmatmul.mubr.bf16.gmra.mrb[40].mxu0 %v3017_v30  ;;  %1468 = vmatmul.mubr.bf16.gmra.mrb[40].mxu1 %v3017_v30 }
 0x115   : > { %1284 = vmatprep.mubr.bf16.mxu0 %v3019_v31  ;;  %1477 = vmatprep.mubr.bf16.mxu1 %v3019_v31 }
 0x11c   : > { %1285 = vmatmul.mubr.bf16.gmra.mrb[44].mxu0 %v3029_v38  ;;  %1478 = vmatmul.mubr.bf16.gmra.mrb[44].mxu1 %v3029_v38 }
 0x11d   : > { %1294 = vmatprep.mubr.bf16.mxu0 %v3031_v40  ;;  %1487 = vmatprep.mubr.bf16.mxu1 %v3031_v40 }
 0x124   : > { %1295 = vmatmul.mubr.bf16.gmra.mrb[48].mxu0 %v3041_v47  ;;  %1488 = vmatmul.mubr.bf16.gmra.mrb[48].mxu1 %v3041_v47 }
 0x125   : > { %1304 = vmatprep.mubr.bf16.mxu0 %v3043_v48  ;;  %1497 = vmatprep.mubr.bf16.mxu1 %v3043_v48 }
 0x12c   : > { %1305 = vmatmul.mubr.bf16.gmra.mrb[52].mxu0 %v3053_v53  ;;  %1498 = vmatmul.mubr.bf16.gmra.mrb[52].mxu1 %v3053_v53 }
 0x12d   : > { %1314 = vmatprep.mubr.bf16.mxu0 %v3055_v54  ;;  %1507 = vmatprep.mubr.bf16.mxu1 %v3055_v54 }
 0x134   : > { %1315 = vmatmul.mubr.bf16.gmra.mrb[56].mxu0 %v3065_v0  ;;  %1508 = vmatmul.mubr.bf16.gmra.mrb[56].mxu1 %v3065_v0 }
 0x135   : > { %1324 = vmatprep.mubr.bf16.mxu0 %v3067_v1  ;;  %1517 = vmatprep.mubr.bf16.mxu1 %v3067_v1 }
 0x13c   : > { %1325 = vmatmul.mubr.bf16.gmra.mrb[60].mxu0 %v3075_v5  ;;  %1518 = vmatmul.mubr.bf16.gmra.mrb[60].mxu1 %v3075_v5 }
 0x13d   : > { %1560 = vmatprep.mubr.bf16.mxu0 %v2889_v58  ;;  %1753 = vmatprep.mubr.bf16.mxu1 %v2889_v58  ;;  %v462_v58 = vlaneseq }
 0x144   : > { %1561 = vmatmul.mubr.bf16.vlgmr.msra.gmra.mrb[64].mxu0 %v2897_v14  ;;  %1754 = vmatmul.mubr.bf16.vlgmr.msra.gmra.mrb[64].mxu1 %v2897_v14  ;;  %v3118_v14 = vshrl.u32 %v462_v58, 7 }
 0x145   : > { %1570 = vmatprep.mubr.bf16.mxu0 %v2899_v21  ;;  %1763 = vmatprep.mubr.bf16.mxu1 %v2899_v21 }
 0x146   : > { %v464_v21 = vsub.s32 0, %v3118_v14 }
 0x14c   : > { %1571 = vmatmul.mubr.bf16.gmra.mrb[68].mxu0 %v2909_v36  ;;  %1764 = vmatmul.mubr.bf16.gmra.mrb[68].mxu1 %v2909_v36  ;;  %v3124_v36 = vld [vmem:[#allocation7] sm:$0xff] }
 0x14d   : > { %1580 = vmatprep.mubr.bf16.mxu0 %v2911_v39  ;;  %1773 = vmatprep.mubr.bf16.mxu1 %v2911_v39  ;;  %v472_v39 = vsub.s32 2, %v3118_v14 }
 0x154   : > { %1581 = vmatmul.mubr.bf16.gmra.mrb[72].mxu0 %v2921_v57  ;;  %1774 = vmatmul.mubr.bf16.gmra.mrb[72].mxu1 %v2921_v57  ;;  %v468_v57 = vsub.s32 1, %v3118_v14 }
 0x155   : > { %1590 = vmatprep.mubr.bf16.mxu0 %v2923_v62  ;;  %1783 = vmatprep.mubr.bf16.mxu1 %v2923_v62  ;;  %v476_v62 = vsub.s32 3, %v3118_v14 }
 0x15c   : > { %1591 = vmatmul.mubr.bf16.gmra.mrb[76].mxu0 %v2933_v17  ;;  %1784 = vmatmul.mubr.bf16.gmra.mrb[76].mxu1 %v2933_v17  ;;  %v3131_v17 = vrot.slane %v3124_v36, %v464_v21 }
 0x15d   : > { %1600 = vmatprep.mubr.bf16.mxu0 %v2935_v22  ;;  %1793 = vmatprep.mubr.bf16.mxu1 %v2935_v22  ;;  %v3135_v22 = vrot.slane %v3124_v36, %v472_v39 }
 0x164   : > { %1601 = vmatmul.mubr.bf16.gmra.mrb[80].mxu0 %v2945_v42  ;;  %1794 = vmatmul.mubr.bf16.gmra.mrb[80].mxu1 %v2945_v42  ;;  %v3138_v42 = vrot.slane %v3124_v36, %v468_v57 }
 0x165   : > { %1610 = vmatprep.mubr.bf16.mxu0 %v2947_v46  ;;  %1803 = vmatprep.mubr.bf16.mxu1 %v2947_v46  ;;  %v3142_v46 = vrot.slane %v3124_v36, %v476_v62 }
 0x16c   : > { %1611 = vmatmul.mubr.bf16.gmra.mrb[84].mxu0 %v2957_v3  ;;  %1804 = vmatmul.mubr.bf16.gmra.mrb[84].mxu1 %v2957_v3 }
 0x16d   : > { %1620 = vmatprep.mubr.bf16.mxu0 %v2959_v7  ;;  %1813 = vmatprep.mubr.bf16.mxu1 %v2959_v7 }
 0x174   : > { %1621 = vmatmul.mubr.bf16.gmra.mrb[88].mxu0 %v2969_v29  ;;  %1814 = vmatmul.mubr.bf16.gmra.mrb[88].mxu1 %v2969_v29 }
 0x175   : > { %1630 = vmatprep.mubr.bf16.mxu0 %v2971_v33  ;;  %1823 = vmatprep.mubr.bf16.mxu1 %v2971_v33 }
 0x17c   : > { %1631 = vmatmul.mubr.bf16.gmra.mrb[92].mxu0 %v2981_v55  ;;  %1824 = vmatmul.mubr.bf16.gmra.mrb[92].mxu1 %v2981_v55 }
 0x17d   : > { %1640 = vmatprep.mubr.bf16.mxu0 %v2983_v61  ;;  %1833 = vmatprep.mubr.bf16.mxu1 %v2983_v61 }
 0x184   : > { %1641 = vmatmul.mubr.bf16.gmra.mrb[96].mxu0 %v2993_v13  ;;  %1834 = vmatmul.mubr.bf16.gmra.mrb[96].mxu1 %v2993_v13 }
 0x185   : > { %1650 = vmatprep.mubr.bf16.mxu0 %v2995_v15  ;;  %1843 = vmatprep.mubr.bf16.mxu1 %v2995_v15 }
 0x18c   : > { %1651 = vmatmul.mubr.bf16.gmra.mrb[100].mxu0 %v3005_v23  ;;  %1844 = vmatmul.mubr.bf16.gmra.mrb[100].mxu1 %v3005_v23 }
 0x18d   : > { %1660 = vmatprep.mubr.bf16.mxu0 %v3007_v24  ;;  %1853 = vmatprep.mubr.bf16.mxu1 %v3007_v24 }
 0x194   : > { %1661 = vmatmul.mubr.bf16.gmra.mrb[104].mxu0 %v3017_v30  ;;  %1854 = vmatmul.mubr.bf16.gmra.mrb[104].mxu1 %v3017_v30 }
 0x195   : > { %1670 = vmatprep.mubr.bf16.mxu0 %v3019_v31  ;;  %1863 = vmatprep.mubr.bf16.mxu1 %v3019_v31 }
 0x197   : > { %v1176_v3 = vpop.f32.mrb[0].mxu0  ;;  %v1369_v29 = vpop.f32.mrb[0].mxu1 }
 0x198   : > { %v3146_v7 = vadd.f32 %v1176_v3, %v3131_v17  ;;  %v1178_v33 = vpop.f32.mrb[1].mxu0  ;;  %v3149_v55 = vadd.f32 %v1369_v29, %v3135_v22  ;;  %v1371_v6 = vpop.f32.mrb[1].mxu1 }
 0x199   : > { %v3152_v61 = vadd.f32 %v1178_v33, %v3138_v42  ;;  %v1180_v8 = vpop.f32.mrb[2].mxu0  ;;  %v3155_v9 = vadd.f32 %v1371_v6, %v3142_v46  ;;  %v1373_v11 = vpop.f32.mrb[2].mxu1 }
 0x19a   : > { %v3158_v10 = vadd.f32 %v1180_v8, %v3131_v17  ;;  %v1182_v12 = vpop.f32.mrb[3].mxu0  ;;  %v3163_v15 = vadd.f32 %v1373_v11, %v3135_v22  ;;  %v1375_v18 = vpop.f32.mrb[3].mxu1 }
 0x19b   : > { %v3166_v16 = vadd.f32 %v1182_v12, %v3138_v42  ;;  %v3171_v20 = vadd.f32 %v1375_v18, %v3142_v46 }
 0x19c   : > { %1671 = vmatmul.mubr.bf16.gmra.mrb[108].mxu0 %v3029_v38  ;;  %1864 = vmatmul.mubr.bf16.gmra.mrb[108].mxu1 %v3029_v38 }
 0x19d   : > { %1680 = vmatprep.mubr.bf16.mxu0 %v3031_v40  ;;  %1873 = vmatprep.mubr.bf16.mxu1 %v3031_v40 }
 0x19f   : > { %v1186_v25 = vpop.f32.mrb[4].mxu0  ;;  %v1379_v27 = vpop.f32.mrb[4].mxu1 }
 0x1a0   : > { %v3182_v26 = vadd.f32 %v1186_v25, %v3131_v17  ;;  %v1188_v28 = vpop.f32.mrb[5].mxu0  ;;  %v3185_v30 = vadd.f32 %v1379_v27, %v3135_v22  ;;  %v1381_v32 = vpop.f32.mrb[5].mxu1 }
 0x1a1   : > { %v3188_v31 = vadd.f32 %v1188_v28, %v3138_v42  ;;  %v1190_v34 = vpop.f32.mrb[6].mxu0  ;;  %v3191_v35 = vadd.f32 %v1381_v32, %v3142_v46  ;;  %v1383_v38 = vpop.f32.mrb[6].mxu1 }
 0x1a2   : > { %v3194_v37 = vadd.f32 %v1190_v34, %v3131_v17  ;;  %v1192_v40 = vpop.f32.mrb[7].mxu0  ;;  %v3199_v43 = vadd.f32 %v1383_v38, %v3135_v22  ;;  %v1385_v45 = vpop.f32.mrb[7].mxu1 }
 0x1a3   : > { %v3202_v44 = vadd.f32 %v1192_v40, %v3138_v42  ;;  %v3207_v50 = vadd.f32 %v1385_v45, %v3142_v46 }
 0x1a4   : > { %1681 = vmatmul.mubr.bf16.gmra.mrb[112].mxu0 %v3041_v47  ;;  %1874 = vmatmul.mubr.bf16.gmra.mrb[112].mxu1 %v3041_v47 }
 0x1a5   : > { %1690 = vmatprep.mubr.bf16.mxu0 %v3043_v48  ;;  %1883 = vmatprep.mubr.bf16.mxu1 %v3043_v48 }
 0x1a7   : > { %v1196_v56 = vpop.f32.mrb[8].mxu0  ;;  %v1389_v60 = vpop.f32.mrb[8].mxu1 }
 0x1a8   : > { %v3218_v59 = vadd.f32 %v1196_v56, %v3131_v17  ;;  %v1198_v63 = vpop.f32.mrb[9].mxu0  ;;  %v3221_v2 = vadd.f32 %v1389_v60, %v3135_v22  ;;  %v1391_v47 = vpop.f32.mrb[9].mxu1 }
 0x1a9   : > { %v3224_v4 = vadd.f32 %v1198_v63, %v3138_v42  ;;  %v1200_v58 = vpop.f32.mrb[10].mxu0  ;;  %v3227_v21 = vadd.f32 %v1391_v47, %v3142_v46  ;;  %v1393_v48 = vpop.f32.mrb[10].mxu1 }
 0x1aa   : > { %v3230_v39 = vadd.f32 %v1200_v58, %v3131_v17  ;;  %v1202_v57 = vpop.f32.mrb[11].mxu0  ;;  %v3235_v3 = vadd.f32 %v1393_v48, %v3135_v22  ;;  %v1395_v33 = vpop.f32.mrb[11].mxu1 }
 0x1ab   : > { %v3238_v29 = vadd.f32 %v1202_v57, %v3138_v42  ;;  %v3243_v8 = vadd.f32 %v1395_v33, %v3142_v46 }
 0x1ac   : > { %1691 = vmatmul.mubr.bf16.gmra.mrb[116].mxu0 %v3053_v53  ;;  %1884 = vmatmul.mubr.bf16.gmra.mrb[116].mxu1 %v3053_v53 }
 0x1ad   : > { %1700 = vmatprep.mubr.bf16.mxu0 %v3055_v54  ;;  %1893 = vmatprep.mubr.bf16.mxu1 %v3055_v54 }
 0x1af   : > { %v1206_v18 = vpop.f32.mrb[12].mxu0  ;;  %v1399_v27 = vpop.f32.mrb[12].mxu1 }
 0x1b0   : > { %v3254_v25 = vadd.f32 %v1206_v18, %v3131_v17  ;;  %v1208_v28 = vpop.f32.mrb[13].mxu0  ;;  %v3257_v32 = vadd.f32 %v1399_v27, %v3135_v22  ;;  %v1401_v53 = vpop.f32.mrb[13].mxu1 }
 0x1b1   : > { %v3260_v34 = vadd.f32 %v1208_v28, %v3138_v42  ;;  %v1210_v38 = vpop.f32.mrb[14].mxu0  ;;  %v3263_v40 = vadd.f32 %v1401_v53, %v3142_v46  ;;  %v1403_v54 = vpop.f32.mrb[14].mxu1 }
 0x1b2   : > { %v3266_v45 = vadd.f32 %v1210_v38, %v3131_v17  ;;  %v1212_v56 = vpop.f32.mrb[15].mxu0  ;;  %v3271_v63 = vadd.f32 %v1403_v54, %v3135_v22  ;;  %v1405_v58 = vpop.f32.mrb[15].mxu1 }
 0x1b3   : > { %v3274_v47 = vadd.f32 %v1212_v56, %v3138_v42  ;;  %v3279_v57 = vadd.f32 %v1405_v58, %v3142_v46 }
 0x1b4   : > { %1701 = vmatmul.mubr.bf16.gmra.mrb[120].mxu0 %v3065_v0  ;;  %1894 = vmatmul.mubr.bf16.gmra.mrb[120].mxu1 %v3065_v0 }
 0x1b5   : > { %1710 = vmatprep.mubr.bf16.mxu0 %v3067_v1  ;;  %1903 = vmatprep.mubr.bf16.mxu1 %v3067_v1 }
 0x1b7   : > { %v1216_v27 = vpop.f32.mrb[16].mxu0  ;;  %v1409_v53 = vpop.f32.mrb[16].mxu1 }
 0x1b8   : > { %v3290_v28 = vadd.f32 %v1216_v27, %v3131_v17  ;;  %v1218_v38 = vpop.f32.mrb[17].mxu0  ;;  %v3293_v54 = vadd.f32 %v1409_v53, %v3135_v22  ;;  %v1411_v0 = vpop.f32.mrb[17].mxu1 }
 0x1b9   : > { %v3296_v56 = vadd.f32 %v1218_v38, %v3138_v42  ;;  %v1220_v58 = vpop.f32.mrb[18].mxu0  ;;  %v3299_v33 = vadd.f32 %v1411_v0, %v3142_v46  ;;  %v1413_v1 = vpop.f32.mrb[18].mxu1 }
 0x1ba   : > { %v3302_v18 = vadd.f32 %v1220_v58, %v3131_v17  ;;  %v1222_v48 = vpop.f32.mrb[19].mxu0  ;;  %v3307_v60 = vadd.f32 %v1413_v1, %v3135_v22  ;;  %v1415_v38 = vpop.f32.mrb[19].mxu1 }
 0x1bb   : > { %v3310_v53 = vadd.f32 %v1222_v48, %v3138_v42  ;;  %v3315_v0 = vadd.f32 %v1415_v38, %v3142_v46 }
 0x1bc   : > { %1711 = vmatmul.mubr.bf16.gmra.mrb[124].mxu0 %v3075_v5  ;;  %1904 = vmatmul.mubr.bf16.gmra.mrb[124].mxu1 %v3075_v5 }
 0x1bf   : > { %v1226_v27 = vpop.f32.mrb[20].mxu0  ;;  %v1419_v11 = vpop.f32.mrb[20].mxu1 }
 0x1c0   : > { %v3324_v48 = vadd.f32 %v1226_v27, %v3131_v17  ;;  %v1228_v6 = vpop.f32.mrb[21].mxu0  ;;  %v3327_v12 = vadd.f32 %v1419_v11, %v3135_v22  ;;  %v1421_v62 = vpop.f32.mrb[21].mxu1 }
 0x1c1   : > { %v3330_v38 = vadd.f32 %v1228_v6, %v3138_v42  ;;  %v1230_v52 = vpop.f32.mrb[22].mxu0  ;;  %v3333_v58 = vadd.f32 %v1421_v62, %v3142_v46  ;;  %v1423_v1 = vpop.f32.mrb[22].mxu1 }
 0x1c2   : > { %4246 = vst [vmem:[#allocation12_spill] sm:$0xff] %v3327_v12  ;;  %v3336_v5 = vadd.f32 %v1230_v52, %v3131_v17  ;;  %v1232_v51 = vpop.f32.mrb[23].mxu0  ;;  %v3341_v49 = vadd.f32 %v1423_v1, %v3135_v22  ;;  %v1425_v6 = vpop.f32.mrb[23].mxu1 }
 0x1c3   : > { %4247 = vst [vmem:[#allocation13_spill] sm:$0xff] %v3330_v38  ;;  %4248 = vst [vmem:[#allocation14_spill] sm:$0xff] %v3333_v58  ;;  %v3344_v11 = vadd.f32 %v1232_v51, %v3138_v42  ;;  %v3349_v62 = vadd.f32 %v1425_v6, %v3142_v46 }
 0x1c4   : > { %4249 = vst [vmem:[#allocation15_spill] sm:$0xff] %v3336_v5  ;;  %4250 = vst [vmem:[#allocation16_spill] sm:$0xff] %v3341_v49 }
 0x1c5   : > { %4251 = vst [vmem:[#allocation17_spill] sm:$0xff] %v3344_v11  ;;  %4252 = vst [vmem:[#allocation18_spill] sm:$0xff] %v3349_v62 }
 0x1c7   : > { %v1236_v27 = vpop.f32.mrb[24].mxu0  ;;  %v1429_v23 = vpop.f32.mrb[24].mxu1 }
 0x1c8   : > { %v3356_v1 = vadd.f32 %v1236_v27, %v3131_v17  ;;  %v1238_v51 = vpop.f32.mrb[25].mxu0  ;;  %v3359_v19 = vadd.f32 %v1429_v23, %v3135_v22  ;;  %v1431_v6 = vpop.f32.mrb[25].mxu1 }
 0x1c9   : > { %v3362_v41 = vadd.f32 %v1238_v51, %v3138_v42  ;;  %v1240_v13 = vpop.f32.mrb[26].mxu0  ;;  %v3365_v58 = vadd.f32 %v1431_v6, %v3142_v46  ;;  %v1433_v24 = vpop.f32.mrb[26].mxu1 }
 0x1ca   : > { %4253 = vst [vmem:[#allocation19_spill] sm:$0xff] %v3356_v1  ;;  %4254 = vst [vmem:[#allocation20_spill] sm:$0xff] %v3359_v19  ;;  %v3368_v52 = vadd.f32 %v1240_v13, %v3131_v17  ;;  %v1242_v62 = vpop.f32.mrb[27].mxu0  ;;  %v3373_v11 = vadd.f32 %v1433_v24, %v3135_v22  ;;  %v1435_v51 = vpop.f32.mrb[27].mxu1 }
 0x1cb   : > { %4255 = vst [vmem:[#allocation21_spill] sm:$0xff] %v3362_v41  ;;  %4256 = vst [vmem:[#allocation22_spill] sm:$0xff] %v3365_v58  ;;  %v3376_v23 = vadd.f32 %v1242_v62, %v3138_v42  ;;  %v3381_v6 = vadd.f32 %v1435_v51, %v3142_v46 }
 0x1cc   : > { %4257 = vst [vmem:[#allocation23_spill] sm:$0xff] %v3368_v52  ;;  %4258 = vst [vmem:[#allocation24_spill] sm:$0xff] %v3373_v11 }
 0x1cd   : > { %4259 = vst [vmem:[#allocation25_spill] sm:$0xff] %v3376_v23  ;;  %4260 = vst [vmem:[#allocation26_spill] sm:$0xff] %v3381_v6 }
 0x1cf   : > { %v1246_v27 = vpop.f32.mrb[28].mxu0  ;;  %v1439_v19 = vpop.f32.mrb[28].mxu1 }
 0x1d0   : > { %v3388_v24 = vadd.f32 %v1246_v27, %v3131_v17  ;;  %v1248_v62 = vpop.f32.mrb[29].mxu0  ;;  %v3391_v1 = vadd.f32 %v1439_v19, %v3135_v22  ;;  %v1441_v51 = vpop.f32.mrb[29].mxu1 }
 0x1d1   : > { %v3394_v49 = vadd.f32 %v1248_v62, %v3138_v42  ;;  %v1250_v58 = vpop.f32.mrb[30].mxu0  ;;  %v3397_v41 = vadd.f32 %v1441_v51, %v3142_v46  ;;  %v1443_v5 = vpop.f32.mrb[30].mxu1 }
 0x1d2   : > { %4261 = vst [vmem:[#allocation27_spill] sm:$0xff] %v3388_v24  ;;  %4262 = vst [vmem:[#allocation28_spill] sm:$0xff] %v3391_v1  ;;  %v3400_v13 = vadd.f32 %v1250_v58, %v3131_v17  ;;  %v1252_v6 = vpop.f32.mrb[31].mxu0  ;;  %v3405_v23 = vadd.f32 %v1443_v5, %v3135_v22  ;;  %v1445_v62 = vpop.f32.mrb[31].mxu1 }
 0x1d3   : > { %4263 = vst [vmem:[#allocation29_spill] sm:$0xff] %v3394_v49  ;;  %4264 = vst [vmem:[#allocation30_spill] sm:$0xff] %v3397_v41  ;;  %v3408_v19 = vadd.f32 %v1252_v6, %v3138_v42  ;;  %v3413_v51 = vadd.f32 %v1445_v62, %v3142_v46 }
 0x1d4   : > { %4265 = vst [vmem:[#allocation31_spill] sm:$0xff] %v3400_v13  ;;  %4266 = vst [vmem:[#allocation32_spill] sm:$0xff] %v3405_v23 }
 0x1d5   : > { %4267 = vst [vmem:[#allocation33_spill] sm:$0xff] %v3408_v19  ;;  %4268 = vst [vmem:[#allocation34_spill] sm:$0xff] %v3413_v51 }
 0x1d7   : > { %v1256_v27 = vpop.f32.mrb[32].mxu0  ;;  %v1449_v1 = vpop.f32.mrb[32].mxu1 }
 0x1d8   : > { %v3420_v5 = vadd.f32 %v1256_v27, %v3131_v17  ;;  %v1258_v6 = vpop.f32.mrb[33].mxu0  ;;  %v3423_v24 = vadd.f32 %v1449_v1, %v3135_v22  ;;  %v1451_v62 = vpop.f32.mrb[33].mxu1 }
 0x1d9   : > { %v3426_v11 = vadd.f32 %v1258_v6, %v3138_v42  ;;  %v1260_v41 = vpop.f32.mrb[34].mxu0  ;;  %v3429_v49 = vadd.f32 %v1451_v62, %v3142_v46  ;;  %v1453_v52 = vpop.f32.mrb[34].mxu1 }
 0x1da   : > { %4269 = vst [vmem:[#allocation35_spill] sm:$0xff] %v3420_v5  ;;  %4270 = vst [vmem:[#allocation36_spill] sm:$0xff] %v3423_v24  ;;  %v3432_v58 = vadd.f32 %v1260_v41, %v3131_v17  ;;  %v1262_v51 = vpop.f32.mrb[35].mxu0  ;;  %v3437_v19 = vadd.f32 %v1453_v52, %v3135_v22  ;;  %v1455_v6 = vpop.f32.mrb[35].mxu1 }
 0x1db   : > { %4271 = vst [vmem:[#allocation37_spill] sm:$0xff] %v3426_v11  ;;  %4272 = vst [vmem:[#allocation38_spill] sm:$0xff] %v3429_v49  ;;  %v3440_v1 = vadd.f32 %v1262_v51, %v3138_v42  ;;  %v3445_v62 = vadd.f32 %v1455_v6, %v3142_v46 }
 0x1dc   : > { %4273 = vst [vmem:[#allocation39_spill] sm:$0xff] %v3432_v58  ;;  %4274 = vst [vmem:[#allocation40_spill] sm:$0xff] %v3437_v19 }
 0x1dd   : > { %4275 = vst [vmem:[#allocation41_spill] sm:$0xff] %v3440_v1  ;;  %4276 = vst [vmem:[#allocation42_spill] sm:$0xff] %v3445_v62 }
 0x1df   : > { %v1266_v27 = vpop.f32.mrb[36].mxu0  ;;  %v1459_v24 = vpop.f32.mrb[36].mxu1 }
 0x1e0   : > { %v3452_v52 = vadd.f32 %v1266_v27, %v3131_v17  ;;  %v1268_v51 = vpop.f32.mrb[37].mxu0  ;;  %v3455_v5 = vadd.f32 %v1459_v24, %v3135_v22  ;;  %v1461_v6 = vpop.f32.mrb[37].mxu1 }
 0x1e1   : > { %v3458_v23 = vadd.f32 %v1268_v51, %v3138_v42  ;;  %v1270_v49 = vpop.f32.mrb[38].mxu0  ;;  %v3461_v11 = vadd.f32 %v1461_v6, %v3142_v46  ;;  %v1463_v13 = vpop.f32.mrb[38].mxu1 }
 0x1e2   : > { %4277 = vst [vmem:[#allocation43_spill] sm:$0xff] %v3452_v52  ;;  %4278 = vst [vmem:[#allocation44_spill] sm:$0xff] %v3455_v5  ;;  %v3464_v41 = vadd.f32 %v1270_v49, %v3131_v17  ;;  %v1272_v62 = vpop.f32.mrb[39].mxu0  ;;  %v3469_v1 = vadd.f32 %v1463_v13, %v3135_v22  ;;  %v1465_v51 = vpop.f32.mrb[39].mxu1 }
 0x1e3   : > { %4279 = vst [vmem:[#allocation45_spill] sm:$0xff] %v3458_v23  ;;  %4280 = vst [vmem:[#allocation46_spill] sm:$0xff] %v3461_v11  ;;  %v3472_v24 = vadd.f32 %v1272_v62, %v3138_v42  ;;  %v3477_v6 = vadd.f32 %v1465_v51, %v3142_v46 }
 0x1e4   : > { %4281 = vst [vmem:[#allocation47_spill] sm:$0xff] %v3464_v41  ;;  %4282 = vst [vmem:[#allocation48_spill] sm:$0xff] %v3469_v1 }
 0x1e5   : > { %4283 = vst [vmem:[#allocation49_spill] sm:$0xff] %v3472_v24  ;;  %4284 = vst [vmem:[#allocation50_spill] sm:$0xff] %v3477_v6 }
 0x1e7   : > { %v1276_v27 = vpop.f32.mrb[40].mxu0  ;;  %v1469_v5 = vpop.f32.mrb[40].mxu1 }
 0x1e8   : > { %v3484_v13 = vadd.f32 %v1276_v27, %v3131_v17  ;;  %v1278_v62 = vpop.f32.mrb[41].mxu0  ;;  %v3487_v52 = vadd.f32 %v1469_v5, %v3135_v22  ;;  %v1471_v51 = vpop.f32.mrb[41].mxu1 }
 0x1e9   : > { %v3490_v19 = vadd.f32 %v1278_v62, %v3138_v42  ;;  %v1280_v11 = vpop.f32.mrb[42].mxu0  ;;  %v3493_v23 = vadd.f32 %v1471_v51, %v3142_v46  ;;  %v1473_v58 = vpop.f32.mrb[42].mxu1 }
 0x1ea   : > { %4285 = vst [vmem:[#allocation51_spill] sm:$0xff] %v3484_v13  ;;  %4286 = vst [vmem:[#allocation52_spill] sm:$0xff] %v3487_v52  ;;  %v3496_v49 = vadd.f32 %v1280_v11, %v3131_v17  ;;  %v1282_v6 = vpop.f32.mrb[43].mxu0  ;;  %v3501_v24 = vadd.f32 %v1473_v58, %v3135_v22  ;;  %v1475_v62 = vpop.f32.mrb[43].mxu1 }
 0x1eb   : > { %4287 = vst [vmem:[#allocation53_spill] sm:$0xff] %v3490_v19  ;;  %4288 = vst [vmem:[#allocation54_spill] sm:$0xff] %v3493_v23  ;;  %v3504_v5 = vadd.f32 %v1282_v6, %v3138_v42  ;;  %v3509_v51 = vadd.f32 %v1475_v62, %v3142_v46 }
 0x1ec   : > { %4289 = vst [vmem:[#allocation55_spill] sm:$0xff] %v3496_v49  ;;  %4290 = vst [vmem:[#allocation56_spill] sm:$0xff] %v3501_v24 }
 0x1ed   : > { %4291 = vst [vmem:[#allocation57_spill] sm:$0xff] %v3504_v5  ;;  %4292 = vst [vmem:[#allocation58_spill] sm:$0xff] %v3509_v51 }
 0x1ef   : > { %v1286_v27 = vpop.f32.mrb[44].mxu0  ;;  %v1479_v52 = vpop.f32.mrb[44].mxu1 }
 0x1f0   : > { %v3516_v58 = vadd.f32 %v1286_v27, %v3131_v17  ;;  %v1288_v6 = vpop.f32.mrb[45].mxu0  ;;  %v3519_v13 = vadd.f32 %v1479_v52, %v3135_v22  ;;  %v1481_v62 = vpop.f32.mrb[45].mxu1 }
 0x1f1   : > { %v3522_v1 = vadd.f32 %v1288_v6, %v3138_v42  ;;  %v1290_v23 = vpop.f32.mrb[46].mxu0  ;;  %v3525_v19 = vadd.f32 %v1481_v62, %v3142_v46  ;;  %v1483_v41 = vpop.f32.mrb[46].mxu1 }
 0x1f2   : > { %4293 = vst [vmem:[#allocation59_spill] sm:$0xff] %v3516_v58  ;;  %4294 = vst [vmem:[#allocation60_spill] sm:$0xff] %v3519_v13  ;;  %v3528_v11 = vadd.f32 %v1290_v23, %v3131_v17  ;;  %v1292_v51 = vpop.f32.mrb[47].mxu0  ;;  %v3533_v5 = vadd.f32 %v1483_v41, %v3135_v22  ;;  %v1485_v6 = vpop.f32.mrb[47].mxu1 }
 0x1f3   : > { %4295 = vst [vmem:[#allocation61_spill] sm:$0xff] %v3522_v1  ;;  %4296 = vst [vmem:[#allocation62_spill] sm:$0xff] %v3525_v19  ;;  %v3536_v52 = vadd.f32 %v1292_v51, %v3138_v42  ;;  %v3541_v62 = vadd.f32 %v1485_v6, %v3142_v46 }
 0x1f4   : > { %4297 = vst [vmem:[#allocation63_spill] sm:$0xff] %v3528_v11  ;;  %4298 = vst [vmem:[#allocation64_spill] sm:$0xff] %v3533_v5 }
 0x1f5   : > { %4299 = vst [vmem:[#allocation65_spill] sm:$0xff] %v3536_v52  ;;  %4300 = vst [vmem:[#allocation66_spill] sm:$0xff] %v3541_v62 }
 0x1f7   : > { %v1296_v27 = vpop.f32.mrb[48].mxu0  ;;  %v1489_v13 = vpop.f32.mrb[48].mxu1 }
 0x1f8   : > { %v3548_v41 = vadd.f32 %v1296_v27, %v3131_v17  ;;  %v1298_v51 = vpop.f32.mrb[49].mxu0  ;;  %v3551_v58 = vadd.f32 %v1489_v13, %v3135_v22  ;;  %v1491_v6 = vpop.f32.mrb[49].mxu1 }
 0x1f9   : > { %v3554_v24 = vadd.f32 %v1298_v51, %v3138_v42  ;;  %v1300_v19 = vpop.f32.mrb[50].mxu0  ;;  %v3557_v1 = vadd.f32 %v1491_v6, %v3142_v46  ;;  %v1493_v49 = vpop.f32.mrb[50].mxu1 }
 0x1fa   : > { %4301 = vst [vmem:[#allocation67_spill] sm:$0xff] %v3548_v41  ;;  %4302 = vst [vmem:[#allocation68_spill] sm:$0xff] %v3551_v58  ;;  %v3560_v23 = vadd.f32 %v1300_v19, %v3131_v17  ;;  %v1302_v62 = vpop.f32.mrb[51].mxu0  ;;  %v3565_v52 = vadd.f32 %v1493_v49, %v3135_v22  ;;  %v1495_v51 = vpop.f32.mrb[51].mxu1 }
 0x1fb   : > { %4303 = vst [vmem:[#allocation69_spill] sm:$0xff] %v3554_v24  ;;  %4304 = vst [vmem:[#allocation70_spill] sm:$0xff] %v3557_v1  ;;  %v3568_v13 = vadd.f32 %v1302_v62, %v3138_v42  ;;  %v3573_v6 = vadd.f32 %v1495_v51, %v3142_v46 }
 0x1fc   : > { %4305 = vst [vmem:[#allocation71_spill] sm:$0xff] %v3560_v23  ;;  %4306 = vst [vmem:[#allocation72_spill] sm:$0xff] %v3565_v52 }
 0x1fd   : > { %4307 = vst [vmem:[#allocation73_spill] sm:$0xff] %v3568_v13  ;;  %4308 = vst [vmem:[#allocation74_spill] sm:$0xff] %v3573_v6 }
 0x1ff   : > { %v1306_v27 = vpop.f32.mrb[52].mxu0  ;;  %v1499_v58 = vpop.f32.mrb[52].mxu1 }
 0x200   : > { %v3580_v49 = vadd.f32 %v1306_v27, %v3131_v17  ;;  %v1308_v62 = vpop.f32.mrb[53].mxu0  ;;  %v3583_v41 = vadd.f32 %v1499_v58, %v3135_v22  ;;  %v1501_v51 = vpop.f32.mrb[53].mxu1 }
 0x201   : > { %v3586_v5 = vadd.f32 %v1308_v62, %v3138_v42  ;;  %v1310_v1 = vpop.f32.mrb[54].mxu0  ;;  %v3589_v24 = vadd.f32 %v1501_v51, %v3142_v46  ;;  %v1503_v11 = vpop.f32.mrb[54].mxu1 }
 0x202   : > { %4309 = vst [vmem:[#allocation75_spill] sm:$0xff] %v3580_v49  ;;  %4310 = vst [vmem:[#allocation76_spill] sm:$0xff] %v3583_v41  ;;  %v3592_v19 = vadd.f32 %v1310_v1, %v3131_v17  ;;  %v1312_v6 = vpop.f32.mrb[55].mxu0  ;;  %v3597_v13 = vadd.f32 %v1503_v11, %v3135_v22  ;;  %v1505_v62 = vpop.f32.mrb[55].mxu1 }
 0x203   : > { %4311 = vst [vmem:[#allocation77_spill] sm:$0xff] %v3586_v5  ;;  %4312 = vst [vmem:[#allocation78_spill] sm:$0xff] %v3589_v24  ;;  %v3600_v58 = vadd.f32 %v1312_v6, %v3138_v42  ;;  %v3605_v51 = vadd.f32 %v1505_v62, %v3142_v46 }
 0x204   : > { %4313 = vst [vmem:[#allocation79_spill] sm:$0xff] %v3592_v19  ;;  %4314 = vst [vmem:[#allocation80_spill] sm:$0xff] %v3597_v13  ;;  %v484_v19 = vsub.s32 5, %v3118_v14 }
 0x205   : > { %4315 = vst [vmem:[#allocation81_spill] sm:$0xff] %v3600_v58  ;;  %4316 = vst [vmem:[#allocation82_spill] sm:$0xff] %v3605_v51 }
 0x207   : > { %v1316_v27 = vpop.f32.mrb[56].mxu0  ;;  %v1509_v41 = vpop.f32.mrb[56].mxu1 }
 0x208   : > { %v3612_v11 = vadd.f32 %v1316_v27, %v3131_v17  ;;  %v1318_v6 = vpop.f32.mrb[57].mxu0  ;;  %v3615_v49 = vadd.f32 %v1509_v41, %v3135_v22  ;;  %v1511_v62 = vpop.f32.mrb[57].mxu1 }
 0x209   : > { %v3618_v52 = vadd.f32 %v1318_v6, %v3138_v42  ;;  %v1320_v24 = vpop.f32.mrb[58].mxu0  ;;  %v3621_v5 = vadd.f32 %v1511_v62, %v3142_v46  ;;  %v1513_v23 = vpop.f32.mrb[58].mxu1 }
 0x20a   : > { %4317 = vst [vmem:[#allocation83_spill] sm:$0xff] %v3612_v11  ;;  %4318 = vst [vmem:[#allocation84_spill] sm:$0xff] %v3615_v49  ;;  %v3624_v1 = vadd.f32 %v1320_v24, %v3131_v17  ;;  %v1322_v51 = vpop.f32.mrb[59].mxu0  ;;  %v3629_v58 = vadd.f32 %v1513_v23, %v3135_v22  ;;  %v1515_v6 = vpop.f32.mrb[59].mxu1  ;;  %v480_v11 = vsub.s32 4, %v3118_v14  ;;  %v488_v24 = vsub.s32 6, %v3118_v14 }
 0x20b   : > { %4319 = vst [vmem:[#allocation85_spill] sm:$0xff] %v3618_v52  ;;  %4320 = vst [vmem:[#allocation86_spill] sm:$0xff] %v3621_v5  ;;  %v3632_v41 = vadd.f32 %v1322_v51, %v3138_v42  ;;  %v3637_v62 = vadd.f32 %v1515_v6, %v3142_v46 }
 0x20c   : > { %4321 = vst [vmem:[#allocation87_spill] sm:$0xff] %v3624_v1  ;;  %4322 = vst [vmem:[#allocation88_spill] sm:$0xff] %v3629_v58 }
 0x20d   : > { %4323 = vst [vmem:[#allocation89_spill] sm:$0xff] %v3632_v41  ;;  %4324 = vst [vmem:[#allocation90_spill] sm:$0xff] %v3637_v62 }
 0x20f   : > { %v1326_v27 = vpop.f32.mrb[60].mxu0  ;;  %v1519_v49 = vpop.f32.mrb[60].mxu1 }
 0x210   : > { %v3644_v23 = vadd.f32 %v1326_v27, %v3131_v17  ;;  %v1328_v51 = vpop.f32.mrb[61].mxu0  ;;  %v3648_v38 = vadd.f32 %v1519_v49, %v3135_v22  ;;  %v1521_v13 = vpop.f32.mrb[61].mxu1  ;;  %v492_v49 = vsub.s32 7, %v3118_v14 }
 0x211   : > { %v3651_v6 = vadd.f32 %v1328_v51, %v3138_v42  ;;  %v1330_v5 = vpop.f32.mrb[62].mxu0  ;;  %v3656_v62 = vadd.f32 %v1521_v13, %v3142_v46  ;;  %v1523_v41 = vpop.f32.mrb[62].mxu1  ;;  %v3681_v51 = vrot.slane %v3124_v36, %v488_v24 }
 0x212   : > { %4325 = vst [vmem:[#allocation91_spill] sm:$0xff] %v3648_v38  ;;  %v3659_v27 = vadd.f32 %v1330_v5, %v3131_v17  ;;  %v1332_v58 = vpop.f32.mrb[63].mxu0  ;;  %v3665_v1 = vadd.f32 %v1523_v41, %v3135_v22  ;;  %v1525_v12 = vpop.f32.mrb[63].mxu1  ;;  %v3676_v5 = vrot.slane %v3124_v36, %v480_v11  ;;  %v3684_v22 = vrot.slane %v3124_v36, %v484_v19 }
 0x213   : > { %4326 = vst [vmem:[#allocation92_spill] sm:$0xff] %v3651_v6  ;;  %4327 = vst [vmem:[#allocation93_spill] sm:$0xff] %v3656_v62  ;;  %v3668_v52 = vadd.f32 %v1332_v58, %v3138_v42  ;;  %v3673_v17 = vadd.f32 %v1525_v12, %v3142_v46  ;;  %v3689_v58 = vrot.slane %v3124_v36, %v492_v49 }
 0x214   : > { %4328 = vst [vmem:[#allocation94_spill] sm:$0xff] %v3659_v27  ;;  %4329 = vst [vmem:[#allocation95_spill] sm:$0xff] %v3665_v1  ;;  %v4332_v19 = vmax.f32 %v3146_v7, %v3149_v55  ;;  %v4334_v6 = vmax.f32 %v3158_v10, %v3163_v15 }
 0x215   : > { %4330 = vst [vmem:[#allocation96_spill] sm:$0xff] %v3668_v52  ;;  %4331 = vst [vmem:[#allocation97_spill] sm:$0xff] %v3673_v17 }
 0x217   : > { %v1562_v46 = vpop.f32.mrb[64].mxu0  ;;  %v1755_v11 = vpop.f32.mrb[64].mxu1 }
 0x218   : > { %v1563_v12 = vadd.f32 %v1562_v46, %v3676_v5  ;;  %v1564_v41 = vpop.f32.mrb[65].mxu0  ;;  %v1756_v13 = vadd.f32 %v1755_v11, %v3681_v51  ;;  %v1757_v24 = vpop.f32.mrb[65].mxu1  ;;  %v4333_v46 = vmax.f32 %v3152_v61, %v3155_v9 }
 0x219   : > { %v1565_v14 = vadd.f32 %v1564_v41, %v3684_v22  ;;  %v1566_v1 = vpop.f32.mrb[66].mxu0  ;;  %v1758_v42 = vadd.f32 %v1757_v24, %v3689_v58  ;;  %v1759_v49 = vpop.f32.mrb[66].mxu1 }
 0x21a   : > { %v1978_v27 = vmax.f32 %v4332_v19, %v1563_v12  ;;  %v1567_v36 = vadd.f32 %v1566_v1, %v3676_v5  ;;  %v1568_v17 = vpop.f32.mrb[67].mxu0  ;;  %v1761_v41 = vpop.f32.mrb[67].mxu1  ;;  %v1760_v7 = vadd.f32 %v1759_v49, %v3681_v51  ;;  %v4335_v1 = vmax.f32 %v3166_v16, %v3171_v20 }
 0x21b   : > { %v1979_v52 = vmax.f32 %v4333_v46, %v1565_v14  ;;  %v1569_v11 = vadd.f32 %v1568_v17, %v3684_v22  ;;  %v1762_v24 = vadd.f32 %v1761_v41, %v3689_v58 }
 0x21c   : > { %v2042_v62 = vmax.f32 %v1978_v27, %v1756_v13  ;;  %v1980_v38 = vmax.f32 %v4334_v6, %v1567_v36  ;;  %v4337_v36 = vmax.f32 %v3188_v31, %v3191_v35 }
 0x21d   : > { %v2043_v55 = vmax.f32 %v1979_v52, %v1758_v42  ;;  %v1981_v12 = vmax.f32 %v4335_v1, %v1569_v11  ;;  %v4339_v1 = vmax.f32 %v3202_v44, %v3207_v50  ;;  %v4340_v50 = vmax.f32 %v3218_v59, %v3221_v2 }
 0x21e   : > { %2106 = vst [vmem:[%s3713_s23] sm:$0xff] %v2042_v62  ;;  %v2044_v61 = vmax.f32 %v1980_v38, %v1760_v7  ;;  %v4336_v62 = vmax.f32 %v3182_v26, %v3185_v30  ;;  %v4338_v26 = vmax.f32 %v3194_v37, %v3199_v43  ;;  %v4342_v59 = vmax.f32 %v3230_v39, %v3235_v3 }
 0x21f   : > { %2107 = vst [vmem:[%s3713_s23 + $0x8] sm:$0xff] %v2043_v55  ;;  %v2045_v9 = vmax.f32 %v1981_v12, %v1762_v24  ;;  %v1572_v10 = vpop.f32.mrb[68].mxu0  ;;  %v1765_v52 = vpop.f32.mrb[68].mxu1 }
 0x220   : > { %2108 = vst [vmem:[%s3713_s23 + $0x10] sm:$0xff] %v2044_v61  ;;  %v1573_v15 = vadd.f32 %v1572_v10, %v3676_v5  ;;  %v1574_v16 = vpop.f32.mrb[69].mxu0  ;;  %v1766_v20 = vadd.f32 %v1765_v52, %v3681_v51  ;;  %v1767_v27 = vpop.f32.mrb[69].mxu1 }
 0x221   : > { %2109 = vst [vmem:[%s3713_s23 + $0x18] sm:$0xff] %v2045_v9  ;;  %v1575_v6 = vadd.f32 %v1574_v16, %v3684_v22  ;;  %v1576_v13 = vpop.f32.mrb[70].mxu0  ;;  %v1768_v17 = vadd.f32 %v1767_v27, %v3689_v58  ;;  %v1769_v42 = vpop.f32.mrb[70].mxu1 }
 0x222   : > { %v1982_v38 = vmax.f32 %v4336_v62, %v1573_v15  ;;  %v1577_v14 = vadd.f32 %v1576_v13, %v3676_v5  ;;  %v1578_v19 = vpop.f32.mrb[71].mxu0  ;;  %v1771_v11 = vpop.f32.mrb[71].mxu1  ;;  %v1770_v7 = vadd.f32 %v1769_v42, %v3681_v51  ;;  %v4341_v62 = vmax.f32 %v3224_v4, %v3227_v21 }
 0x223   : > { %v1983_v49 = vmax.f32 %v4337_v36, %v1575_v6  ;;  %v1579_v46 = vadd.f32 %v1578_v19, %v3684_v22  ;;  %v1772_v24 = vadd.f32 %v1771_v11, %v3689_v58 }
 0x224   : > { %v2046_v41 = vmax.f32 %v1982_v38, %v1766_v20  ;;  %v1984_v30 = vmax.f32 %v4338_v26, %v1577_v14 }
 0x225   : > { %v2047_v55 = vmax.f32 %v1983_v49, %v1768_v17  ;;  %v1985_v12 = vmax.f32 %v4339_v1, %v1579_v46  ;;  %v4343_v49 = vmax.f32 %v3238_v29, %v3243_v8  ;;  %v4344_v8 = vmax.f32 %v3254_v25, %v3257_v32 }
 0x226   : > { %2110 = vst [vmem:[%s3713_s23 + $0x20] sm:$0xff] %v2046_v41  ;;  %v2048_v31 = vmax.f32 %v1984_v30, %v1770_v7  ;;  %v4346_v25 = vmax.f32 %v3266_v45, %v3271_v63 }
 0x227   : > { %2111 = vst [vmem:[%s3713_s23 + $0x28] sm:$0xff] %v2047_v55  ;;  %v2049_v35 = vmax.f32 %v1985_v12, %v1772_v24  ;;  %v1582_v61 = vpop.f32.mrb[72].mxu0  ;;  %v1775_v10 = vpop.f32.mrb[72].mxu1 }
 0x228   : > { %2112 = vst [vmem:[%s3713_s23 + $0x30] sm:$0xff] %v2048_v31  ;;  %v1583_v9 = vadd.f32 %v1582_v61, %v3676_v5  ;;  %v1584_v37 = vpop.f32.mrb[73].mxu0  ;;  %v1776_v43 = vadd.f32 %v1775_v10, %v3681_v51  ;;  %v1777_v52 = vpop.f32.mrb[73].mxu1  ;;  %v4345_v61 = vmax.f32 %v3260_v34, %v3263_v40 }
 0x229   : > { %2113 = vst [vmem:[%s3713_s23 + $0x38] sm:$0xff] %v2049_v35  ;;  %v1585_v15 = vadd.f32 %v1584_v37, %v3684_v22  ;;  %v1586_v44 = vpop.f32.mrb[74].mxu0  ;;  %v1778_v20 = vadd.f32 %v1777_v52, %v3689_v58  ;;  %v1779_v27 = vpop.f32.mrb[74].mxu1 }
 0x22a   : > { %v1986_v16 = vmax.f32 %v4340_v50, %v1583_v9  ;;  %v1587_v6 = vadd.f32 %v1586_v44, %v3676_v5  ;;  %v1588_v13 = vpop.f32.mrb[75].mxu0  ;;  %v1781_v14 = vpop.f32.mrb[75].mxu1  ;;  %v1780_v19 = vadd.f32 %v1779_v27, %v3681_v51  ;;  %v4347_v44 = vmax.f32 %v3274_v47, %v3279_v57 }
 0x22b   : > { %v1987_v38 = vmax.f32 %v4341_v62, %v1585_v15  ;;  %v1589_v17 = vadd.f32 %v1588_v13, %v3684_v22  ;;  %v1782_v11 = vadd.f32 %v1781_v14, %v3689_v58  ;;  %v4348_v57 = vmax.f32 %v3290_v28, %v3293_v54 }
 0x22c   : > { %v2050_v42 = vmax.f32 %v1986_v16, %v1776_v43  ;;  %v1988_v2 = vmax.f32 %v4342_v59, %v1587_v6  ;;  %v4350_v28 = vmax.f32 %v3302_v18, %v3307_v60 }
 0x22d   : > { %v2051_v36 = vmax.f32 %v1987_v38, %v1778_v20  ;;  %v1989_v46 = vmax.f32 %v4343_v49, %v1589_v17 }
 0x22e   : > { %2114 = vst [vmem:[%s3713_s23 + $0x40] sm:$0xff] %v2050_v42  ;;  %v2052_v4 = vmax.f32 %v1988_v2, %v1780_v19  ;;  %v4349_v2 = vmax.f32 %v3296_v56, %v3299_v33 }
 0x22f   : > { %2115 = vst [vmem:[%s3713_s23 + $0x48] sm:$0xff] %v2051_v36  ;;  %v2053_v21 = vmax.f32 %v1989_v46, %v1782_v11  ;;  %v1592_v41 = vpop.f32.mrb[76].mxu0  ;;  %v1785_v30 = vpop.f32.mrb[76].mxu1 }
 0x230   : > { %2116 = vst [vmem:[%s3713_s23 + $0x50] sm:$0xff] %v2052_v4  ;;  %v1593_v26 = vadd.f32 %v1592_v41, %v3676_v5  ;;  %v1594_v39 = vpop.f32.mrb[77].mxu0  ;;  %v1786_v3 = vadd.f32 %v1785_v30, %v3681_v51  ;;  %v1787_v55 = vpop.f32.mrb[77].mxu1 }
 0x231   : > { %2117 = vst [vmem:[%s3713_s23 + $0x58] sm:$0xff] %v2053_v21  ;;  %v1595_v7 = vadd.f32 %v1594_v39, %v3684_v22  ;;  %v1596_v29 = vpop.f32.mrb[78].mxu0  ;;  %v1788_v12 = vadd.f32 %v1787_v55, %v3689_v58  ;;  %v1789_v31 = vpop.f32.mrb[78].mxu1  ;;  %v4351_v21 = vmax.f32 %v3310_v53, %v3315_v0  ;;  %v4352_v0 = vld [vmem:[#allocation12_spill] sm:$0xff] }
 0x232   : > { %v1990_v1 = vmax.f32 %v4344_v8, %v1593_v26  ;;  %v1597_v24 = vadd.f32 %v1596_v29, %v3676_v5  ;;  %v1598_v35 = vpop.f32.mrb[79].mxu0  ;;  %v1791_v37 = vpop.f32.mrb[79].mxu1  ;;  %v1790_v15 = vadd.f32 %v1789_v31, %v3681_v51  ;;  %v4353_v29 = vmax.f32 %v3324_v48, %v4352_v0  ;;  %v4358_v48 = vld [vmem:[#allocation16_spill] sm:$0xff] }
 0x233   : > { %v1991_v9 = vmax.f32 %v4345_v61, %v1595_v7  ;;  %v1599_v10 = vadd.f32 %v1598_v35, %v3684_v22  ;;  %v1792_v16 = vadd.f32 %v1791_v37, %v3689_v58  ;;  %v4354_v35 = vld [vmem:[#allocation13_spill] sm:$0xff]  ;;  %v4355_v61 = vld [vmem:[#allocation14_spill] sm:$0xff] }
 0x234   : > { %v2054_v43 = vmax.f32 %v1990_v1, %v1786_v3  ;;  %v1992_v32 = vmax.f32 %v4346_v25, %v1597_v24 }
 0x235   : > { %v2055_v52 = vmax.f32 %v1991_v9, %v1788_v12  ;;  %v1993_v50 = vmax.f32 %v4347_v44, %v1599_v10  ;;  %v4356_v9 = vmax.f32 %v4354_v35, %v4355_v61 }
 0x236   : > { %2118 = vst [vmem:[%s3713_s23 + $0x60] sm:$0xff] %v2054_v43  ;;  %v2056_v34 = vmax.f32 %v1992_v32, %v1790_v15  ;;  %v4357_v32 = vld [vmem:[#allocation15_spill] sm:$0xff] }
 0x237   : > { %2119 = vst [vmem:[%s3713_s23 + $0x68] sm:$0xff] %v2055_v52  ;;  %v2057_v40 = vmax.f32 %v1993_v50, %v1792_v16  ;;  %v1602_v20 = vpop.f32.mrb[80].mxu0  ;;  %v1795_v27 = vpop.f32.mrb[80].mxu1  ;;  %v4359_v15 = vmax.f32 %v4357_v32, %v4358_v48  ;;  %v4360_v16 = vld [vmem:[#allocation17_spill] sm:$0xff] }
 0x238   : > { %2120 = vst [vmem:[%s3713_s23 + $0x70] sm:$0xff] %v2056_v34  ;;  %v1603_v6 = vadd.f32 %v1602_v20, %v3676_v5  ;;  %v1604_v45 = vpop.f32.mrb[81].mxu0  ;;  %v1796_v63 = vadd.f32 %v1795_v27, %v3681_v51  ;;  %v1797_v62 = vpop.f32.mrb[81].mxu1  ;;  %v4361_v34 = vld [vmem:[#allocation18_spill] sm:$0xff] }
 0x239   : > { %2121 = vst [vmem:[%s3713_s23 + $0x78] sm:$0xff] %v2057_v40  ;;  %v1605_v13 = vadd.f32 %v1604_v45, %v3684_v22  ;;  %v1606_v47 = vpop.f32.mrb[82].mxu0  ;;  %v1798_v17 = vadd.f32 %v1797_v62, %v3689_v58  ;;  %v1799_v42 = vpop.f32.mrb[82].mxu1  ;;  %v4362_v40 = vmax.f32 %v4360_v16, %v4361_v34  ;;  %v4378_v16 = vld [vmem:[#allocation29_spill] sm:$0xff]  ;;  %v4379_v34 = vld [vmem:[#allocation30_spill] sm:$0xff] }
 0x23a   : > { %v1994_v38 = vmax.f32 %v4348_v57, %v1603_v6  ;;  %v1607_v14 = vadd.f32 %v1606_v47, %v3676_v5  ;;  %v1608_v59 = vpop.f32.mrb[83].mxu0  ;;  %v1801_v49 = vpop.f32.mrb[83].mxu1  ;;  %v1800_v11 = vadd.f32 %v1799_v42, %v3681_v51  ;;  %v4363_v42 = vld [vmem:[#allocation19_spill] sm:$0xff] }
 0x23b   : > { %v1995_v19 = vmax.f32 %v4349_v2, %v1605_v13  ;;  %v1609_v36 = vadd.f32 %v1608_v59, %v3684_v22  ;;  %v1802_v26 = vadd.f32 %v1801_v49, %v3689_v58  ;;  %v4364_v59 = vld [vmem:[#allocation20_spill] sm:$0xff] }
 0x23c   : > { %v2058_v46 = vmax.f32 %v1994_v38, %v1796_v63  ;;  %v1996_v54 = vmax.f32 %v4350_v28, %v1607_v14  ;;  %v4365_v2 = vmax.f32 %v4363_v42, %v4364_v59 }
 0x23d   : > { %v2059_v4 = vmax.f32 %v1995_v19, %v1798_v17  ;;  %v1997_v41 = vmax.f32 %v4351_v21, %v1609_v36 }
 0x23e   : > { %2122 = vst [vmem:[%s3713_s23 + $0x80] sm:$0xff] %v2058_v46  ;;  %v2060_v33 = vmax.f32 %v1996_v54, %v1800_v11  ;;  %v4366_v54 = vld [vmem:[#allocation21_spill] sm:$0xff]  ;;  %v4367_v11 = vld [vmem:[#allocation22_spill] sm:$0xff] }
 0x23f   : > { %2123 = vst [vmem:[%s3713_s23 + $0x88] sm:$0xff] %v2059_v4  ;;  %v2061_v56 = vmax.f32 %v1997_v41, %v1802_v26  ;;  %v1612_v30 = vpop.f32.mrb[84].mxu0  ;;  %v1805_v3 = vpop.f32.mrb[84].mxu1  ;;  %v4368_v4 = vmax.f32 %v4366_v54, %v4367_v11 }
 0x240   : > { %2124 = vst [vmem:[%s3713_s23 + $0x90] sm:$0xff] %v2060_v33  ;;  %v1613_v39 = vadd.f32 %v1612_v30, %v3676_v5  ;;  %v1614_v60 = vpop.f32.mrb[85].mxu0  ;;  %v1806_v18 = vadd.f32 %v1805_v3, %v3681_v51  ;;  %v1807_v55 = vpop.f32.mrb[85].mxu1  ;;  %v4370_v30 = vld [vmem:[#allocation24_spill] sm:$0xff] }
 0x241   : > { %2125 = vst [vmem:[%s3713_s23 + $0x98] sm:$0xff] %v2061_v56  ;;  %v1615_v7 = vadd.f32 %v1614_v60, %v3684_v22  ;;  %v1616_v53 = vpop.f32.mrb[86].mxu0  ;;  %v1808_v1 = vadd.f32 %v1807_v55, %v3689_v58  ;;  %v1809_v24 = vpop.f32.mrb[86].mxu1  ;;  %v4369_v56 = vld [vmem:[#allocation23_spill] sm:$0xff]  ;;  %v4373_v55 = vld [vmem:[#allocation26_spill] sm:$0xff] }
 0x242   : > { %v1998_v8 = vmax.f32 %v4353_v29, %v1613_v39  ;;  %v1617_v12 = vadd.f32 %v1616_v53, %v3676_v5  ;;  %v1618_v31 = vpop.f32.mrb[87].mxu0  ;;  %v1811_v43 = vpop.f32.mrb[87].mxu1  ;;  %v1810_v44 = vadd.f32 %v1809_v24, %v3681_v51  ;;  %v4371_v39 = vmax.f32 %v4369_v56, %v4370_v30 }
 0x243   : > { %v1999_v10 = vmax.f32 %v4356_v9, %v1615_v7  ;;  %v1619_v37 = vadd.f32 %v1618_v31, %v3684_v22  ;;  %v1812_v6 = vadd.f32 %v1811_v43, %v3689_v58  ;;  %v4372_v7 = vld [vmem:[#allocation25_spill] sm:$0xff]  ;;  %v4375_v43 = vld [vmem:[#allocation27_spill] sm:$0xff] }
 0x244   : > { %v2062_v25 = vmax.f32 %v1998_v8, %v1806_v18  ;;  %v2000_v52 = vmax.f32 %v4359_v15, %v1617_v12  ;;  %v4374_v53 = vmax.f32 %v4372_v7, %v4373_v55  ;;  %v4390_v7 = vld [vmem:[#allocation37_spill] sm:$0xff]  ;;  %v4391_v55 = vld [vmem:[#allocation38_spill] sm:$0xff] }
 0x245   : > { %v2063_v50 = vmax.f32 %v1999_v10, %v1808_v1  ;;  %v2001_v20 = vmax.f32 %v4362_v40, %v1619_v37  ;;  %v4380_v40 = vmax.f32 %v4378_v16, %v4379_v34 }
 0x246   : > { %2126 = vst [vmem:[%s3713_s23 + $0xa0] sm:$0xff] %v2062_v25  ;;  %v2064_v27 = vmax.f32 %v2000_v52, %v1810_v44  ;;  %v4376_v25 = vld [vmem:[#allocation28_spill] sm:$0xff] }
 0x247   : > { %2127 = vst [vmem:[%s3713_s23 + $0xa8] sm:$0xff] %v2063_v50  ;;  %v2065_v45 = vmax.f32 %v2001_v20, %v1812_v6  ;;  %v1622_v63 = vpop.f32.mrb[88].mxu0  ;;  %v1815_v62 = vpop.f32.mrb[88].mxu1  ;;  %v4377_v32 = vmax.f32 %v4375_v43, %v4376_v25 }
 0x248   : > { %2128 = vst [vmem:[%s3713_s23 + $0xb0] sm:$0xff] %v2064_v27  ;;  %v1623_v13 = vadd.f32 %v1622_v63, %v3676_v5  ;;  %v1624_v47 = vpop.f32.mrb[89].mxu0  ;;  %v1816_v57 = vadd.f32 %v1815_v62, %v3681_v51  ;;  %v1817_v17 = vpop.f32.mrb[89].mxu1  ;;  %v4381_v63 = vld [vmem:[#allocation31_spill] sm:$0xff] }
 0x249   : > { %2129 = vst [vmem:[%s3713_s23 + $0xb8] sm:$0xff] %v2065_v45  ;;  %v1625_v38 = vadd.f32 %v1624_v47, %v3684_v22  ;;  %v1626_v14 = vpop.f32.mrb[90].mxu0  ;;  %v1818_v36 = vadd.f32 %v1817_v17, %v3689_v58  ;;  %v1819_v46 = vpop.f32.mrb[90].mxu1  ;;  %v4384_v17 = vld [vmem:[#allocation33_spill] sm:$0xff] }
 0x24a   : > { %v2002_v19 = vmax.f32 %v4365_v2, %v1623_v13  ;;  %v1627_v49 = vadd.f32 %v1626_v14, %v3676_v5  ;;  %v1628_v28 = vpop.f32.mrb[91].mxu0  ;;  %v1821_v26 = vpop.f32.mrb[91].mxu1  ;;  %v1820_v60 = vadd.f32 %v1819_v46, %v3681_v51  ;;  %v4382_v13 = vld [vmem:[#allocation32_spill] sm:$0xff]  ;;  %v4385_v14 = vld [vmem:[#allocation34_spill] sm:$0xff] }
 0x24b   : > { %v2003_v21 = vmax.f32 %v4368_v4, %v1625_v38  ;;  %v1629_v41 = vadd.f32 %v1628_v28, %v3684_v22  ;;  %v1822_v29 = vadd.f32 %v1821_v26, %v3689_v58  ;;  %v4383_v62 = vmax.f32 %v4381_v63, %v4382_v13  ;;  %v4387_v26 = vld [vmem:[#allocation35_spill] sm:$0xff] }
 0x24c   : > { %v2066_v33 = vmax.f32 %v2002_v19, %v1816_v57  ;;  %v2004_v3 = vmax.f32 %v4371_v39, %v1627_v49  ;;  %v4386_v42 = vmax.f32 %v4384_v17, %v4385_v14  ;;  %v4402_v17 = vld [vmem:[#allocation45_spill] sm:$0xff]  ;;  %v4403_v14 = vld [vmem:[#allocation46_spill] sm:$0xff] }
 0x24d   : > { %v2067_v18 = vmax.f32 %v2003_v21, %v1818_v36  ;;  %v2005_v0 = vmax.f32 %v4374_v53, %v1629_v41  ;;  %v4392_v53 = vmax.f32 %v4390_v7, %v4391_v55 }
 0x24e   : > { %2130 = vst [vmem:[%s3713_s23 + $0xc0] sm:$0xff] %v2066_v33  ;;  %v2068_v8 = vmax.f32 %v2004_v3, %v1820_v60  ;;  %v4388_v33 = vld [vmem:[#allocation36_spill] sm:$0xff] }
 0x24f   : > { %2131 = vst [vmem:[%s3713_s23 + $0xc8] sm:$0xff] %v2067_v18  ;;  %v2069_v1 = vmax.f32 %v2005_v0, %v1822_v29  ;;  %v1632_v12 = vpop.f32.mrb[92].mxu0  ;;  %v1825_v31 = vpop.f32.mrb[92].mxu1  ;;  %v4389_v56 = vmax.f32 %v4387_v26, %v4388_v33 }
 0x250   : > { %2132 = vst [vmem:[%s3713_s23 + $0xd0] sm:$0xff] %v2068_v8  ;;  %v1633_v24 = vadd.f32 %v1632_v12, %v3676_v5  ;;  %v1634_v35 = vpop.f32.mrb[93].mxu0  ;;  %v1826_v61 = vadd.f32 %v1825_v31, %v3681_v51  ;;  %v1827_v10 = vpop.f32.mrb[93].mxu1  ;;  %v4393_v12 = vld [vmem:[#allocation39_spill] sm:$0xff] }
 0x251   : > { %2133 = vst [vmem:[%s3713_s23 + $0xd8] sm:$0xff] %v2069_v1  ;;  %v1635_v9 = vadd.f32 %v1634_v35, %v3684_v22  ;;  %v1636_v37 = vpop.f32.mrb[94].mxu0  ;;  %v1828_v15 = vadd.f32 %v1827_v10, %v3689_v58  ;;  %v1829_v44 = vpop.f32.mrb[94].mxu1  ;;  %v4396_v10 = vld [vmem:[#allocation41_spill] sm:$0xff] }
 0x252   : > { %v2006_v48 = vmax.f32 %v4377_v32, %v1633_v24  ;;  %v1637_v52 = vadd.f32 %v1636_v37, %v3676_v5  ;;  %v1638_v50 = vpop.f32.mrb[95].mxu0  ;;  %v1831_v27 = vpop.f32.mrb[95].mxu1  ;;  %v1830_v57 = vadd.f32 %v1829_v44, %v3681_v51  ;;  %v4394_v24 = vld [vmem:[#allocation40_spill] sm:$0xff]  ;;  %v4397_v37 = vld [vmem:[#allocation42_spill] sm:$0xff] }
 0x253   : > { %v2007_v20 = vmax.f32 %v4380_v40, %v1635_v9  ;;  %v1639_v6 = vadd.f32 %v1638_v50, %v3684_v22  ;;  %v1832_v2 = vadd.f32 %v1831_v27, %v3689_v58  ;;  %v4395_v31 = vmax.f32 %v4393_v12, %v4394_v24  ;;  %v4399_v27 = vld [vmem:[#allocation43_spill] sm:$0xff] }
 0x254   : > { %v2070_v45 = vmax.f32 %v2006_v48, %v1826_v61  ;;  %v2008_v47 = vmax.f32 %v4383_v62, %v1637_v52  ;;  %v4398_v43 = vmax.f32 %v4396_v10, %v4397_v37  ;;  %v4414_v10 = vld [vmem:[#allocation53_spill] sm:$0xff]  ;;  %v4415_v37 = vld [vmem:[#allocation54_spill] sm:$0xff] }
 0x255   : > { %v2071_v38 = vmax.f32 %v2007_v20, %v1828_v15  ;;  %v2009_v59 = vmax.f32 %v4386_v42, %v1639_v6  ;;  %v4404_v42 = vmax.f32 %v4402_v17, %v4403_v14 }
 0x256   : > { %2134 = vst [vmem:[%s3713_s23 + $0xe0] sm:$0xff] %v2070_v45  ;;  %v2072_v19 = vmax.f32 %v2008_v47, %v1830_v57  ;;  %v4400_v45 = vld [vmem:[#allocation44_spill] sm:$0xff] }
 0x257   : > { %2135 = vst [vmem:[%s3713_s23 + $0xe8] sm:$0xff] %v2071_v38  ;;  %v2073_v36 = vmax.f32 %v2009_v59, %v1832_v2  ;;  %v1642_v49 = vpop.f32.mrb[96].mxu0  ;;  %v1835_v28 = vpop.f32.mrb[96].mxu1  ;;  %v4401_v63 = vmax.f32 %v4399_v27, %v4400_v45 }
 0x258   : > { %2136 = vst [vmem:[%s3713_s23 + $0xf0] sm:$0xff] %v2072_v19  ;;  %v1643_v46 = vadd.f32 %v1642_v49, %v3676_v5  ;;  %v1644_v54 = vpop.f32.mrb[97].mxu0  ;;  %v1836_v11 = vadd.f32 %v1835_v28, %v3681_v51  ;;  %v1837_v21 = vpop.f32.mrb[97].mxu1  ;;  %v4405_v49 = vld [vmem:[#allocation47_spill] sm:$0xff] }
 0x259   : > { %2137 = vst [vmem:[%s3713_s23 + $0xf8] sm:$0xff] %v2073_v36  ;;  %v1645_v4 = vadd.f32 %v1644_v54, %v3684_v22  ;;  %v1646_v41 = vpop.f32.mrb[98].mxu0  ;;  %v1838_v39 = vadd.f32 %v1837_v21, %v3689_v58  ;;  %v1839_v60 = vpop.f32.mrb[98].mxu1  ;;  %v4408_v21 = vld [vmem:[#allocation49_spill] sm:$0xff] }
 0x25a   : > { %v2010_v30 = vmax.f32 %v4389_v56, %v1643_v46  ;;  %v1647_v3 = vadd.f32 %v1646_v41, %v3676_v5  ;;  %v1648_v18 = vpop.f32.mrb[99].mxu0  ;;  %v1841_v8 = vpop.f32.mrb[99].mxu1  ;;  %v1840_v61 = vadd.f32 %v1839_v60, %v3681_v51  ;;  %v4406_v46 = vld [vmem:[#allocation48_spill] sm:$0xff]  ;;  %v4409_v41 = vld [vmem:[#allocation50_spill] sm:$0xff] }
 0x25b   : > { %v2011_v0 = vmax.f32 %v4392_v53, %v1645_v4  ;;  %v1649_v29 = vadd.f32 %v1648_v18, %v3684_v22  ;;  %v1842_v32 = vadd.f32 %v1841_v8, %v3689_v58  ;;  %v4407_v28 = vmax.f32 %v4405_v49, %v4406_v46  ;;  %v4411_v8 = vld [vmem:[#allocation51_spill] sm:$0xff] }
 0x25c   : > { %v2074_v1 = vmax.f32 %v2010_v30, %v1836_v11  ;;  %v2012_v35 = vmax.f32 %v4395_v31, %v1647_v3  ;;  %v4410_v26 = vmax.f32 %v4408_v21, %v4409_v41  ;;  %v4426_v21 = vld [vmem:[#allocation61_spill] sm:$0xff]  ;;  %v4427_v41 = vld [vmem:[#allocation62_spill] sm:$0xff] }
 0x25d   : > { %v2075_v9 = vmax.f32 %v2011_v0, %v1838_v39  ;;  %v2013_v25 = vmax.f32 %v4398_v43, %v1649_v29  ;;  %v4416_v43 = vmax.f32 %v4414_v10, %v4415_v37 }
 0x25e   : > { %2138 = vst [vmem:[%s3713_s23 + $0x100] sm:$0xff] %v2074_v1  ;;  %v2076_v48 = vmax.f32 %v2012_v35, %v1840_v61  ;;  %v4412_v1 = vld [vmem:[#allocation52_spill] sm:$0xff] }
 0x25f   : > { %2139 = vst [vmem:[%s3713_s23 + $0x108] sm:$0xff] %v2075_v9  ;;  %v2077_v15 = vmax.f32 %v2013_v25, %v1842_v32  ;;  %v1652_v52 = vpop.f32.mrb[100].mxu0  ;;  %v1845_v50 = vpop.f32.mrb[100].mxu1  ;;  %v4413_v12 = vmax.f32 %v4411_v8, %v4412_v1 }
 0x260   : > { %2140 = vst [vmem:[%s3713_s23 + $0x110] sm:$0xff] %v2076_v48  ;;  %v1653_v44 = vadd.f32 %v1652_v52, %v3676_v5  ;;  %v1654_v16 = vpop.f32.mrb[101].mxu0  ;;  %v1846_v34 = vadd.f32 %v1845_v50, %v3681_v51  ;;  %v1847_v20 = vpop.f32.mrb[101].mxu1  ;;  %v4417_v52 = vld [vmem:[#allocation55_spill] sm:$0xff] }
 0x261   : > { %2141 = vst [vmem:[%s3713_s23 + $0x118] sm:$0xff] %v2077_v15  ;;  %v1655_v40 = vadd.f32 %v1654_v16, %v3684_v22  ;;  %v1656_v6 = vpop.f32.mrb[102].mxu0  ;;  %v1848_v62 = vadd.f32 %v1847_v20, %v3689_v58  ;;  %v1849_v57 = vpop.f32.mrb[102].mxu1  ;;  %v4420_v20 = vld [vmem:[#allocation57_spill] sm:$0xff] }
 0x262   : > { %v2014_v13 = vmax.f32 %v4401_v63, %v1653_v44  ;;  %v1657_v47 = vadd.f32 %v1656_v6, %v3676_v5  ;;  %v1658_v38 = vpop.f32.mrb[103].mxu0  ;;  %v1851_v19 = vpop.f32.mrb[103].mxu1  ;;  %v1850_v11 = vadd.f32 %v1849_v57, %v3681_v51  ;;  %v4418_v44 = vld [vmem:[#allocation56_spill] sm:$0xff]  ;;  %v4421_v6 = vld [vmem:[#allocation58_spill] sm:$0xff] }
 0x263   : > { %v2015_v59 = vmax.f32 %v4404_v42, %v1655_v40  ;;  %v1659_v2 = vadd.f32 %v1658_v38, %v3684_v22  ;;  %v1852_v56 = vadd.f32 %v1851_v19, %v3689_v58  ;;  %v4419_v50 = vmax.f32 %v4417_v52, %v4418_v44  ;;  %v4423_v19 = vld [vmem:[#allocation59_spill] sm:$0xff] }
 0x264   : > { %v2078_v36 = vmax.f32 %v2014_v13, %v1846_v34  ;;  %v2016_v54 = vmax.f32 %v4407_v28, %v1657_v47  ;;  %v4422_v27 = vmax.f32 %v4420_v20, %v4421_v6  ;;  %v4438_v20 = vld [vmem:[#allocation69_spill] sm:$0xff]  ;;  %v4439_v6 = vld [vmem:[#allocation70_spill] sm:$0xff] }
 0x265   : > { %v2079_v4 = vmax.f32 %v2015_v59, %v1848_v62  ;;  %v2017_v33 = vmax.f32 %v4410_v26, %v1659_v2  ;;  %v4428_v26 = vmax.f32 %v4426_v21, %v4427_v41 }
 0x266   : > { %2142 = vst [vmem:[%s3713_s23 + $0x120] sm:$0xff] %v2078_v36  ;;  %v2080_v30 = vmax.f32 %v2016_v54, %v1850_v11  ;;  %v4424_v36 = vld [vmem:[#allocation60_spill] sm:$0xff] }
 0x267   : > { %2143 = vst [vmem:[%s3713_s23 + $0x128] sm:$0xff] %v2079_v4  ;;  %v2081_v39 = vmax.f32 %v2017_v33, %v1852_v56  ;;  %v1662_v3 = vpop.f32.mrb[104].mxu0  ;;  %v1855_v18 = vpop.f32.mrb[104].mxu1  ;;  %v4425_v49 = vmax.f32 %v4423_v19, %v4424_v36 }
 0x268   : > { %2144 = vst [vmem:[%s3713_s23 + $0x130] sm:$0xff] %v2080_v30  ;;  %v1663_v60 = vadd.f32 %v1662_v3, %v3676_v5  ;;  %v1664_v7 = vpop.f32.mrb[105].mxu0  ;;  %v1856_v55 = vadd.f32 %v1855_v18, %v3681_v51  ;;  %v1857_v0 = vpop.f32.mrb[105].mxu1  ;;  %v4429_v3 = vld [vmem:[#allocation63_spill] sm:$0xff] }
 0x269   : > { %2145 = vst [vmem:[%s3713_s23 + $0x138] sm:$0xff] %v2081_v39  ;;  %v1665_v53 = vadd.f32 %v1664_v7, %v3684_v22  ;;  %v1666_v29 = vpop.f32.mrb[106].mxu0  ;;  %v1858_v31 = vadd.f32 %v1857_v0, %v3689_v58  ;;  %v1859_v61 = vpop.f32.mrb[106].mxu1  ;;  %v4432_v0 = vld [vmem:[#allocation65_spill] sm:$0xff] }
 0x26a   : > { %v2018_v24 = vmax.f32 %v4413_v12, %v1663_v60  ;;  %v1667_v35 = vadd.f32 %v1666_v29, %v3676_v5  ;;  %v1668_v9 = vpop.f32.mrb[107].mxu0  ;;  %v1861_v48 = vpop.f32.mrb[107].mxu1  ;;  %v1860_v34 = vadd.f32 %v1859_v61, %v3681_v51  ;;  %v4430_v60 = vld [vmem:[#allocation64_spill] sm:$0xff]  ;;  %v4433_v29 = vld [vmem:[#allocation66_spill] sm:$0xff] }
 0x26b   : > { %v2019_v25 = vmax.f32 %v4416_v43, %v1665_v53  ;;  %v1669_v32 = vadd.f32 %v1668_v9, %v3684_v22  ;;  %v1862_v63 = vadd.f32 %v1861_v48, %v3689_v58  ;;  %v4431_v18 = vmax.f32 %v4429_v3, %v4430_v60  ;;  %v4435_v48 = vld [vmem:[#allocation67_spill] sm:$0xff] }
 0x26c   : > { %v2082_v15 = vmax.f32 %v2018_v24, %v1856_v55  ;;  %v2020_v16 = vmax.f32 %v4419_v50, %v1667_v35  ;;  %v4434_v8 = vmax.f32 %v4432_v0, %v4433_v29  ;;  %v4450_v0 = vld [vmem:[#allocation77_spill] sm:$0xff]  ;;  %v4451_v29 = vld [vmem:[#allocation78_spill] sm:$0xff] }
 0x26d   : > { %v2083_v40 = vmax.f32 %v2019_v25, %v1858_v31  ;;  %v2021_v45 = vmax.f32 %v4422_v27, %v1669_v32  ;;  %v4440_v27 = vmax.f32 %v4438_v20, %v4439_v6 }
 0x26e   : > { %2146 = vst [vmem:[%s3713_s23 + $0x140] sm:$0xff] %v2082_v15  ;;  %v2084_v13 = vmax.f32 %v2020_v16, %v1860_v34  ;;  %v4436_v15 = vld [vmem:[#allocation68_spill] sm:$0xff] }
 0x26f   : > { %2147 = vst [vmem:[%s3713_s23 + $0x148] sm:$0xff] %v2083_v40  ;;  %v2085_v62 = vmax.f32 %v2021_v45, %v1862_v63  ;;  %v1672_v47 = vpop.f32.mrb[108].mxu0  ;;  %v1865_v38 = vpop.f32.mrb[108].mxu1  ;;  %v4437_v52 = vmax.f32 %v4435_v48, %v4436_v15 }
 0x270   : > { %2148 = vst [vmem:[%s3713_s23 + $0x150] sm:$0xff] %v2084_v13  ;;  %v1673_v57 = vadd.f32 %v1672_v47, %v3676_v5  ;;  %v1674_v17 = vpop.f32.mrb[109].mxu0  ;;  %v1866_v14 = vadd.f32 %v1865_v38, %v3681_v51  ;;  %v1867_v59 = vpop.f32.mrb[109].mxu1  ;;  %v4441_v47 = vld [vmem:[#allocation71_spill] sm:$0xff] }
 0x271   : > { %2149 = vst [vmem:[%s3713_s23 + $0x158] sm:$0xff] %v2085_v62  ;;  %v1675_v42 = vadd.f32 %v1674_v17, %v3684_v22  ;;  %v1676_v2 = vpop.f32.mrb[110].mxu0  ;;  %v1868_v28 = vadd.f32 %v1867_v59, %v3689_v58  ;;  %v1869_v11 = vpop.f32.mrb[110].mxu1  ;;  %v4444_v59 = vld [vmem:[#allocation73_spill] sm:$0xff] }
 0x272   : > { %v2022_v46 = vmax.f32 %v4425_v49, %v1673_v57  ;;  %v1677_v54 = vadd.f32 %v1676_v2, %v3676_v5  ;;  %v1678_v4 = vpop.f32.mrb[111].mxu0  ;;  %v1871_v30 = vpop.f32.mrb[111].mxu1  ;;  %v1870_v55 = vadd.f32 %v1869_v11, %v3681_v51  ;;  %v4442_v57 = vld [vmem:[#allocation72_spill] sm:$0xff]  ;;  %v4445_v2 = vld [vmem:[#allocation74_spill] sm:$0xff] }
 0x273   : > { %v2023_v33 = vmax.f32 %v4428_v26, %v1675_v42  ;;  %v1679_v56 = vadd.f32 %v1678_v4, %v3684_v22  ;;  %v1872_v12 = vadd.f32 %v1871_v30, %v3689_v58  ;;  %v4443_v38 = vmax.f32 %v4441_v47, %v4442_v57  ;;  %v4447_v30 = vld [vmem:[#allocation75_spill] sm:$0xff] }
 0x274   : > { %v2086_v39 = vmax.f32 %v2022_v46, %v1866_v14  ;;  %v2024_v7 = vmax.f32 %v4431_v18, %v1677_v54  ;;  %v4446_v19 = vmax.f32 %v4444_v59, %v4445_v2  ;;  %v4462_v59 = vld [vmem:[#allocation85_spill] sm:$0xff]  ;;  %v4463_v2 = vld [vmem:[#allocation86_spill] sm:$0xff] }
 0x275   : > { %v2087_v53 = vmax.f32 %v2023_v33, %v1868_v28  ;;  %v2025_v1 = vmax.f32 %v4434_v8, %v1679_v56  ;;  %v4452_v8 = vmax.f32 %v4450_v0, %v4451_v29 }
 0x276   : > { %2150 = vst [vmem:[%s3713_s23 + $0x160] sm:$0xff] %v2086_v39  ;;  %v2088_v24 = vmax.f32 %v2024_v7, %v1870_v55  ;;  %v4448_v39 = vld [vmem:[#allocation76_spill] sm:$0xff] }
 0x277   : > { %2151 = vst [vmem:[%s3713_s23 + $0x168] sm:$0xff] %v2087_v53  ;;  %v2089_v31 = vmax.f32 %v2025_v1, %v1872_v12  ;;  %v1682_v35 = vpop.f32.mrb[112].mxu0  ;;  %v1875_v9 = vpop.f32.mrb[112].mxu1  ;;  %v4449_v3 = vmax.f32 %v4447_v30, %v4448_v39 }
 0x278   : > { %2152 = vst [vmem:[%s3713_s23 + $0x170] sm:$0xff] %v2088_v24  ;;  %v1683_v61 = vadd.f32 %v1682_v35, %v3676_v5  ;;  %v1684_v10 = vpop.f32.mrb[113].mxu0  ;;  %v1876_v37 = vadd.f32 %v1875_v9, %v3681_v51  ;;  %v1877_v25 = vpop.f32.mrb[113].mxu1  ;;  %v4453_v35 = vld [vmem:[#allocation79_spill] sm:$0xff] }
 0x279   : > { %2153 = vst [vmem:[%s3713_s23 + $0x178] sm:$0xff] %v2089_v31  ;;  %v1685_v43 = vadd.f32 %v1684_v10, %v3684_v22  ;;  %v1686_v32 = vpop.f32.mrb[114].mxu0  ;;  %v1878_v50 = vadd.f32 %v1877_v25, %v3689_v58  ;;  %v1879_v34 = vpop.f32.mrb[114].mxu1  ;;  %v4456_v25 = vld [vmem:[#allocation81_spill] sm:$0xff] }
 0x27a   : > { %v2026_v44 = vmax.f32 %v4437_v52, %v1683_v61  ;;  %v1687_v16 = vadd.f32 %v1686_v32, %v3676_v5  ;;  %v1688_v40 = vpop.f32.mrb[115].mxu0  ;;  %v1881_v13 = vpop.f32.mrb[115].mxu1  ;;  %v1880_v14 = vadd.f32 %v1879_v34, %v3681_v51  ;;  %v4454_v61 = vld [vmem:[#allocation80_spill] sm:$0xff]  ;;  %v4457_v32 = vld [vmem:[#allocation82_spill] sm:$0xff] }
 0x27b   : > { %v2027_v45 = vmax.f32 %v4440_v27, %v1685_v43  ;;  %v1689_v63 = vadd.f32 %v1688_v40, %v3684_v22  ;;  %v1882_v49 = vadd.f32 %v1881_v13, %v3689_v58  ;;  %v4455_v9 = vmax.f32 %v4453_v35, %v4454_v61  ;;  %v4459_v13 = vld [vmem:[#allocation83_spill] sm:$0xff] }
 0x27c   : > { %v2090_v62 = vmax.f32 %v2026_v44, %v1876_v37  ;;  %v2028_v17 = vmax.f32 %v4443_v38, %v1687_v16  ;;  %v4458_v48 = vmax.f32 %v4456_v25, %v4457_v32  ;;  %v4474_v25 = vld [vmem:[#allocation93_spill] sm:$0xff] }
 0x27d   : > { %v2091_v42 = vmax.f32 %v2027_v45, %v1878_v50  ;;  %v2029_v36 = vmax.f32 %v4446_v19, %v1689_v63  ;;  %v4464_v19 = vmax.f32 %v4462_v59, %v4463_v2 }
 0x27e   : > { %2154 = vst [vmem:[%s3713_s23 + $0x180] sm:$0xff] %v2090_v62  ;;  %v2092_v46 = vmax.f32 %v2028_v17, %v1880_v14  ;;  %v4460_v62 = vld [vmem:[#allocation84_spill] sm:$0xff] }
 0x27f   : > { %2155 = vst [vmem:[%s3713_s23 + $0x188] sm:$0xff] %v2091_v42  ;;  %v2093_v28 = vmax.f32 %v2029_v36, %v1882_v49  ;;  %v1692_v54 = vpop.f32.mrb[116].mxu0  ;;  %v1885_v4 = vpop.f32.mrb[116].mxu1  ;;  %v4461_v47 = vmax.f32 %v4459_v13, %v4460_v62 }
 0x280   : > { %2156 = vst [vmem:[%s3713_s23 + $0x190] sm:$0xff] %v2092_v46  ;;  %v1693_v11 = vadd.f32 %v1692_v54, %v3676_v5  ;;  %v1694_v21 = vpop.f32.mrb[117].mxu0  ;;  %v1886_v41 = vadd.f32 %v1885_v4, %v3681_v51  ;;  %v1887_v33 = vpop.f32.mrb[117].mxu1  ;;  %v4465_v54 = vld [vmem:[#allocation87_spill] sm:$0xff] }
 0x281   : > { %2157 = vst [vmem:[%s3713_s23 + $0x198] sm:$0xff] %v2093_v28  ;;  %v1695_v26 = vadd.f32 %v1694_v21, %v3684_v22  ;;  %v1696_v56 = vpop.f32.mrb[118].mxu0  ;;  %v1888_v18 = vadd.f32 %v1887_v33, %v3689_v58  ;;  %v1889_v55 = vpop.f32.mrb[118].mxu1  ;;  %v4468_v33 = vld [vmem:[#allocation89_spill] sm:$0xff] }
 0x282   : > { %v2030_v60 = vmax.f32 %v4449_v3, %v1693_v11  ;;  %v1697_v7 = vadd.f32 %v1696_v56, %v3676_v5  ;;  %v1698_v53 = vpop.f32.mrb[119].mxu0  ;;  %v1891_v24 = vpop.f32.mrb[119].mxu1  ;;  %v1890_v37 = vadd.f32 %v1889_v55, %v3681_v51  ;;  %v4466_v11 = vld [vmem:[#allocation88_spill] sm:$0xff]  ;;  %v4469_v56 = vld [vmem:[#allocation90_spill] sm:$0xff] }
 0x283   : > { %v2031_v1 = vmax.f32 %v4452_v8, %v1695_v26  ;;  %v1699_v12 = vadd.f32 %v1698_v53, %v3684_v22  ;;  %v1892_v52 = vadd.f32 %v1891_v24, %v3689_v58  ;;  %v4467_v4 = vmax.f32 %v4465_v54, %v4466_v11  ;;  %v4471_v24 = vld [vmem:[#allocation91_spill] sm:$0xff] }
 0x284   : > { %v2094_v31 = vmax.f32 %v2030_v60, %v1886_v41  ;;  %v2032_v10 = vmax.f32 %v4455_v9, %v1697_v7  ;;  %v4470_v30 = vmax.f32 %v4468_v33, %v4469_v56 }
 0x285   : > { %v2095_v43 = vmax.f32 %v2031_v1, %v1888_v18  ;;  %v2033_v15 = vmax.f32 %v4458_v48, %v1699_v12 }
 0x286   : > { %2158 = vst [vmem:[%s3713_s23 + $0x1a0] sm:$0xff] %v2094_v31  ;;  %v2096_v44 = vmax.f32 %v2032_v10, %v1890_v37  ;;  %v4472_v31 = vmax.f32 %v3644_v23, %v4471_v24  ;;  %v4476_v23 = vld [vmem:[#allocation94_spill] sm:$0xff] }
 0x287   : > { %2159 = vst [vmem:[%s3713_s23 + $0x1a8] sm:$0xff] %v2095_v43  ;;  %v2097_v50 = vmax.f32 %v2033_v15, %v1892_v52  ;;  %v1702_v16 = vpop.f32.mrb[120].mxu0  ;;  %v1895_v40 = vpop.f32.mrb[120].mxu1  ;;  %v4473_v43 = vld [vmem:[#allocation92_spill] sm:$0xff] }
 0x288   : > { %2160 = vst [vmem:[%s3713_s23 + $0x1b0] sm:$0xff] %v2096_v44  ;;  %v1703_v34 = vadd.f32 %v1702_v16, %v3676_v5  ;;  %v1704_v20 = vpop.f32.mrb[121].mxu0  ;;  %v1896_v6 = vadd.f32 %v1895_v40, %v3681_v51  ;;  %v1897_v45 = vpop.f32.mrb[121].mxu1  ;;  %v4475_v32 = vmax.f32 %v4473_v43, %v4474_v25 }
 0x289   : > { %2161 = vst [vmem:[%s3713_s23 + $0x1b8] sm:$0xff] %v2097_v50  ;;  %v1705_v27 = vadd.f32 %v1704_v20, %v3684_v22  ;;  %v1706_v63 = vpop.f32.mrb[122].mxu0  ;;  %v1898_v38 = vadd.f32 %v1897_v45, %v3689_v58  ;;  %v1899_v14 = vpop.f32.mrb[122].mxu1  ;;  %v4477_v50 = vld [vmem:[#allocation95_spill] sm:$0xff]  ;;  %v4479_v20 = vld [vmem:[#allocation96_spill] sm:$0xff] }
 0x28a   : > { %v2034_v57 = vmax.f32 %v4461_v47, %v1703_v34  ;;  %v1707_v17 = vadd.f32 %v1706_v63, %v3676_v5  ;;  %v1708_v42 = vpop.f32.mrb[123].mxu0  ;;  %v1901_v46 = vpop.f32.mrb[123].mxu1  ;;  %v1900_v41 = vadd.f32 %v1899_v14, %v3681_v51  ;;  %v4478_v16 = vmax.f32 %v4476_v23, %v4477_v50 }
 0x28b   : > { %v2035_v36 = vmax.f32 %v4464_v19, %v1705_v27  ;;  %v1709_v49 = vadd.f32 %v1708_v42, %v3684_v22  ;;  %v1902_v3 = vadd.f32 %v1901_v46, %v3689_v58 }
 0x28c   : > { %v2098_v28 = vmax.f32 %v2034_v57, %v1896_v6  ;;  %v2036_v21 = vmax.f32 %v4467_v4, %v1707_v17  ;;  %v4480_v6 = vld [vmem:[#allocation97_spill] sm:$0xff] }
 0x28d   : > { %v2099_v26 = vmax.f32 %v2035_v36, %v1898_v38  ;;  %v2037_v39 = vmax.f32 %v4470_v30, %v1709_v49  ;;  %v4481_v27 = vmax.f32 %v4479_v20, %v4480_v6 }
 0x28e   : > { %2162 = vst [vmem:[%s3713_s23 + $0x1c0] sm:$0xff] %v2098_v28  ;;  %v2100_v60 = vmax.f32 %v2036_v21, %v1900_v41 }
 0x28f   : > { %2163 = vst [vmem:[%s3713_s23 + $0x1c8] sm:$0xff] %v2099_v26  ;;  %v2101_v18 = vmax.f32 %v2037_v39, %v1902_v3  ;;  %v1712_v7 = vpop.f32.mrb[124].mxu0  ;;  %v1905_v53 = vpop.f32.mrb[124].mxu1 }
 0x290   : > { %2164 = vst [vmem:[%s3713_s23 + $0x1d0] sm:$0xff] %v2100_v60  ;;  %v1713_v55 = vadd.f32 %v1712_v7, %v3676_v5  ;;  %v1714_v0 = vpop.f32.mrb[125].mxu0  ;;  %v1906_v29 = vadd.f32 %v1905_v53, %v3681_v51  ;;  %v1907_v1 = vpop.f32.mrb[125].mxu1 }
 0x291   : > { %2165 = vst [vmem:[%s3713_s23 + $0x1d8] sm:$0xff] %v2101_v18  ;;  %v1715_v8 = vadd.f32 %v1714_v0, %v3684_v22  ;;  %v1716_v12 = vpop.f32.mrb[126].mxu0  ;;  %v1908_v61 = vadd.f32 %v1907_v1, %v3689_v58  ;;  %v1909_v10 = vpop.f32.mrb[126].mxu1 }
 0x292   : > { %v2038_v35 = vmax.f32 %v4472_v31, %v1713_v55  ;;  %v1717_v9 = vadd.f32 %v1716_v12, %v3676_v5  ;;  %v1718_v37 = vpop.f32.mrb[127].mxu0  ;;  %v1911_v52 = vpop.f32.mrb[127].mxu1  ;;  %v1910_v40 = vadd.f32 %v1909_v10, %v3681_v51 }
 0x293   : > { %v2039_v48 = vmax.f32 %v4475_v32, %v1715_v8  ;;  %v1719_v15 = vadd.f32 %v1718_v37, %v3684_v22  ;;  %v1912_v63 = vadd.f32 %v1911_v52, %v3689_v58  ;;  %2177 = sbr.rel (!%p4482_p9) target bundleno = 694 (0x2b6), region = 48 }
 0x294   : > { %v2102_v44 = vmax.f32 %v2038_v35, %v1906_v29  ;;  %v2040_v34 = vmax.f32 %v4478_v16, %v1717_v9 }
 0x295   : > { %v2103_v5 = vmax.f32 %v2039_v48, %v1908_v61  ;;  %v2041_v45 = vmax.f32 %v4481_v27, %v1719_v15 }
 0x296   : > { %2166 = vst [vmem:[%s3713_s23 + $0x1e0] sm:$0xff] %v2102_v44  ;;  %v2104_v13 = vmax.f32 %v2040_v34, %v1910_v40 }
 0x297   : > { %2167 = vst [vmem:[%s3713_s23 + $0x1e8] sm:$0xff] %v2103_v5  ;;  %v2105_v62 = vmax.f32 %v2041_v45, %v1912_v63 }
 0x298   : > { %2168 = vst [vmem:[%s3713_s23 + $0x1f0] sm:$0xff] %v2104_v13 }
 0x299   : > { %2169 = vst [vmem:[%s3713_s23 + $0x1f8] sm:$0xff] %v2105_v62 }
 0x29a   : > { %s4491_s6 = smov (!%p2180_p10, %s2179_s6), 32 }
 0x29b   : > { %s4083_s10 = sshll.u32 %s4491_s6, 8 }
 0x29c   : > { %s2185_s11 = ssub.s32 8192, %s4083_s10 }
 0x29d   : > { %2186 = vsyncadd %s2171_s26, %s2185_s11  ;;  %p2435_p1 = scmp.ne.s32.totalorder %s4083_s10, 0  ;;  %s2447_s24 = sshll.u32 %s2721_s16, 13 }
 0x29e   : > { %s4093_s5 = scalar_lea.hbm %s4145_s3, %s2447_s24  ;;  %s2192_s4 = sshll.u32 %s3713_s23, 4  ;;  %s4096_s4 = int_to_ptr.vmem [resolvable:$true] %s2192_s4 }
 0x29f   : > { %s2598_s7 = scalar_lea.vmem %s4096_s4, %s4083_s10  ;;  %s2677_s22 = smov [#allocation8]  }
 0x2a0   : > { %p2599_p3 = scmp.ne.s32.totalorder %s4096_s4, %s2598_s7  ;;  %s2602_s8 = sshll.u32 %s2677_s22, 4  ;;  %s2603_s8 = int_to_ptr.vmem [resolvable:$false] %s2602_s8 }
 0x2a1   : > { %s2604_s16 = scalar_lea.vmem %s2603_s8, 16384  ;;  %p2605_p11 = scmp.lt.s32.totalorder %s4096_s4, %s2603_s8 }
 0x2a2   : > { %p2600_p5 = pnand %p2599_p3, %p2435_p1  ;;  %p2606_p13 = scmp.lt.s32.totalorder %s2604_s16, %s2598_s7 }
 0x2a4   : > { %p2601_p6 = pneg %p2600_p5  ;;  %p2607_p0 = por %p2606_p13, %p2605_p11 }
 0x2a6   : > { %p2608_p12 = pnand %p2607_p0, %p2601_p6 }
 0x2a8   : > { %2611 = shalt.err (!%p2608_p12)
}
 0x2a9   : > { %s2612_s9 = scalar_lea.hbm %s4093_s5, %s4083_s10  ;;  %s2616_s20 = scalar_lea.hbm %s4145_s3, 12288 }
 0x2aa   : > { %p2613_p7 = scmp.ne.s32.totalorder %s4093_s5, %s2612_s9  ;;  %p2617_p9 = scmp.lt.u32.totalorder %s4093_s5, %s4145_s3 }
 0x2ab   : > { %p2618_p10 = scmp.lt.u32.totalorder %s2616_s20, %s2612_s9  ;;  %p2620_p5 = scmp.lt.u32.totalorder %s2612_s9, %s4093_s5 }
 0x2ac   : > { %p2614_p2 = pnand %p2613_p7, %p2435_p1 }
 0x2ad   : > { %p2619_p3 = por %p2618_p10, %p2617_p9 }
 0x2ae   : > { %p2615_p8 = pneg %p2614_p2 }
 0x2af   : > { %p2621_p6 = por %p2620_p5, %p2619_p3 }
 0x2b1   : > { %p2622_p11 = pnand %p2621_p6, %p2615_p8 }
 0x2b3   : > { %2625 = shalt.err (!%p2622_p11)
}
 0x2b4   : > { %s2678_s6 = smov 256   ;;  %s2679_s11 = smov 16  }
 0x2b5   : > { %2198 = dma.vmem_to_hbm [thread:$0]  (%p2435_p1), %s4096_s4, %s4083_s10, %s4093_s5, %s2171_s26, %s2678_s6, %s2678_s6, %s2679_s11  }
 0x2b6 PF: > { %s2207_s24 = sand.u32 1, %s2656_s12   ;;  %p4483_p13 = scmp.ne.s32.totalorder %s4238_s25, 0 }
 0x2b7   : > { %s2208_s27 = scalar_lea.sflag [#allocation4], %s2207_s24 }
 0x2b8   : > { %p2466_p0 = pnand %p2288_p4, %p4483_p13 }
 0x2ba   : > { %2651 = dma.done.wait (!%p2466_p0), %s2208_s27, 8192  }
 0x2bb   : > { %2653 = vsyncadd (!%p2466_p0), %s2208_s27, 4294959104  ;;  %p17_p12 = scmp.ge.s32.totalorder %s2725_s18, 4   ;;  %s4484_s12 = smov %s2660_s13 }
 0x2bc   : > { %s4485_s13 = smov %s2664_s14  ;;  %s4486_s14 = smov %s2737_s21 }
 0x2bd   : > { %s4487_s15 = smov %s2725_s18  ;;  %19 = sbr.rel (!%p17_p12) target bundleno = 6 (0x6), region = 85 }
 0x2c4   :  { %2213 = vsyncpa [#allocation3], 1 }
 0x2c5   :  { %2215 = vsyncpa [#allocation3 + $0x1], 1 }
 0x2c6   :  { %2216 = vsyncpa [#allocation6], 1 }
 0x2c7   :  { %2217 = vsyncpa [#allocation4], 1 }
 0x2c8   :  { %2219 = vsyncpa [#allocation4 + $0x1], 1 }

</bundles_post_ra>
